<compile_context>
chip_gen: v7x
topology: tpu7x:2x2x1
jax: 0.10.0
libtpu: 0.0.40
codegen_flags: <defaults>
</compile_context>

<pallas_src>
import numpy as np
import jax
import jax.numpy as jnp
from jax.experimental import pallas as pl
from jax.experimental.pallas import tpu as pltpu
from functools import partial

# ----------------------------- configuration --------------------------------
ENSEMBLE_GRID = (2, 2, 2)          # opt['ensemble_grid']  (z, y, x order in opt)
# model_grid_shape buffer is flip(ensemble_grid) -> multiplies coord dims (x,y,z)
MODEL_GRID = (ENSEMBLE_GRID[2], ENSEMBLE_GRID[1], ENSEMBLE_GRID[0])
M = MODEL_GRID[0] * MODEL_GRID[1] * MODEL_GRID[2]   # number of sub-models (8)
H = 32                             # hidden width of each synthetic sub-SRN
N = 2048                           # number of query points
TILE_N = 1024                      # points per grid step (>=2 steps for v7x)


# ------------------------------- kernel --------------------------------------
def ensemble_srn_kernel(x_ref, l1_ref, l2_ref, l3_ref, y_ref, *,
                        grid_shape, num_models, hidden):
    G0, G1, G2 = grid_shape
    MH = num_models * hidden

    # (8, T) f32, lane-major: rows 0..2 = coords, row 3 = 1.0, rows 4..7 = 0.
    x8 = x_ref[...]
    T = x8.shape[1]

    # --- per-point flat sub-model index (f32 scalar constants only) ---
    s = jnp.clip((x8 + 1.0) * 0.5, 0.0, 0.99)
    i0 = (s[0:1, :] * float(G0)).astype(jnp.int32)      # trunc == floor (s >= 0)
    i1 = (s[1:2, :] * float(G1)).astype(jnp.int32)
    i2 = (s[2:3, :] * float(G2)).astype(jnp.int32)
    flat = i0 + i1 * G0 + i2 * (G0 * G1)                 # (1, T) int32

    # --- layer 1 (renorm folded into weights) as a K=8 MXU matmul ---
    # L1 columns: 0..2 = W1', 3 = b1', 4 = b2, 5 = b3 (rows 0..M-1), 6..7 = 0.
    # Rows 4..7 of x8 are zero, so the bias-carrier columns do not pollute h1.
    L1 = l1_ref[...]                                      # (MH, 8) f32
    h1 = jnp.dot(L1, x8, preferred_element_type=jnp.float32)   # (MH, T) = W1'x + b1'
    h1 = jnp.maximum(h1, 0.0)

    b2 = L1[:, 4:5]                                       # (MH, 1) f32
    b3 = L1[0:num_models, 5:6]                            # (M, 1)  f32

    # --- layer 2: block-diagonal fused 256x256 bf16 MXU matmul ---
    h2 = jnp.dot(l2_ref[...], h1.astype(jnp.bfloat16),
                 preferred_element_type=jnp.float32) + b2
    h2 = jnp.maximum(h2, 0.0)                             # (MH, T) f32

    # --- layer 3: all models' scalar outputs at once (bf16 MXU) ---
    o_all = jnp.dot(l3_ref[...], h2.astype(jnp.bfloat16),
                    preferred_element_type=jnp.float32) + b3   # (M, T) f32

    # --- one-hot dispatch: pick each point's own sub-model output ---
    model_ids = jax.lax.broadcasted_iota(jnp.int32, (num_models, T), 0)
    sel = jnp.where(model_ids == flat, o_all, 0.0)        # (M, T)
    y_ref[...] = jnp.sum(sel, axis=0, keepdims=True)      # (1, T) lane-dense


# ------------------- one-time (offline) parameter packing --------------------
def pack_ensemble_params(local_min, local_max, W1, b1, W2, b2, W3, b3):
    """Fold the per-model renormalization into layer-1 weights and pack all
    sub-models into three MXU-aligned slabs. Runs once per trained ensemble
    (numpy, outside any jit), not per forward call."""
    local_min = np.asarray(local_min, np.float32)
    local_max = np.asarray(local_max, np.float32)
    W1 = np.asarray(W1, np.float32); b1 = np.asarray(b1, np.float32)
    W2 = np.asarray(W2, np.float32); b2 = np.asarray(b2, np.float32)
    W3 = np.asarray(W3, np.float32); b3 = np.asarray(b3, np.float32)
    m, _, h = W1.shape
    mh = m * h

    # renorm fold: xi = scale*x + off  ->  W1' = scale*W1 (per input dim),
    # b1' = off @ W1 + b1
    scale = 2.0 / (local_max - local_min)                 # (M, 3)
    off = -1.0 - scale * local_min                        # (M, 3)
    W1f = scale[:, :, None] * W1                          # (M, 3, H)
    b1f = np.sum(off[:, :, None] * W1, axis=1) + b1       # (M, H)

    # L1 slab (MH, 8) f32: [W1' | b1' | b2 | b3 | 0 | 0]  (lanes pad to 128 anyway)
    L1 = np.zeros((mh, 8), np.float32)
    L1[:, 0:3] = np.transpose(W1f, (0, 2, 1)).reshape(mh, 3)
    L1[:, 3] = b1f.reshape(mh)
    L1[:, 4] = b2.reshape(mh)
    L1[0:m, 5] = b3.reshape(m)

    # L2 slab (MH, MH): block-diagonal fused layer-2 weights (bf16 for the MXU)
    A2 = np.zeros((mh, mh), np.float32)
    # L3 slab (M, MH): each model's output row (bf16)
    A3 = np.zeros((m, mh), np.float32)
    for i in range(m):
        A2[i * h:(i + 1) * h, i * h:(i + 1) * h] = W2[i].T
        A3[i, i * h:(i + 1) * h] = W3[i, :, 0]

    return (jnp.asarray(L1),
            jnp.asarray(A2).astype(jnp.bfloat16),
            jnp.asarray(A3).astype(jnp.bfloat16))


# ------------------------------ wrapper ---------------------------------------
def ensemble_srn_forward(x, L1, L2, L3, *, tile_n=TILE_N):
    n = x.shape[0]
    MH = M * H

    # ---- lane-major points padded to a tile multiple, with a constant 1 row ----
    n_pad = ((n + tile_n - 1) // tile_n) * tile_n
    x8 = jnp.zeros((8, n_pad), jnp.float32)
    x8 = x8.at[0:3, :n].set(x.T.astype(jnp.float32))      # pad coords = 0 (valid cell)
    x8 = x8.at[3, :].set(1.0)                             # bias row

    kernel = partial(ensemble_srn_kernel,
                     grid_shape=MODEL_GRID, num_models=M, hidden=H)

    y2d = pl.pallas_call(
        kernel,
        out_shape=jax.ShapeDtypeStruct((1, n_pad), jnp.float32),
        grid_spec=pltpu.PrefetchScalarGridSpec(
            num_scalar_prefetch=0,
            grid=(n_pad // tile_n,),
            in_specs=[
                pl.BlockSpec((8, tile_n), lambda i: (0, i)),    # points (lane-major)
                pl.BlockSpec((MH, 8), lambda i: (0, 0)),        # L1 [W1'|b1'|b2|b3] f32
                pl.BlockSpec((MH, MH), lambda i: (0, 0)),       # L2 block-diag bf16
                pl.BlockSpec((M, MH), lambda i: (0, 0)),        # L3 rows bf16
            ],
            out_specs=pl.BlockSpec((1, tile_n), lambda i: (0, i)),
        ),
        compiler_params=pltpu.CompilerParams(
            dimension_semantics=("parallel",)),
    )(x8, L1, L2, L3)

    return y2d[0, :n].reshape(n, 1).astype(x.dtype)


# --------------------------- reference (pure JAX) ------------------------------
def reference_forward(x, local_min, local_max, W1, b1, W2, b2, W3, b3):
    G0, G1, G2 = MODEL_GRID
    hp = jax.lax.Precision.HIGHEST
    s = jnp.clip((x + 1.0) * 0.5, 0.0, 0.99)
    i0 = (s[:, 0] * G0).astype(jnp.int32)
    i1 = (s[:, 1] * G1).astype(jnp.int32)
    i2 = (s[:, 2] * G2).astype(jnp.int32)
    flat = i0 + i1 * G0 + i2 * (G0 * G1)
    y = jnp.zeros((x.shape[0], 1), x.dtype)
    for i in range(M):
        xi = -1.0 + 2.0 * (x - local_min[i]) / (local_max[i] - local_min[i])
        h = jax.nn.relu(jnp.dot(xi, W1[i], precision=hp) + b1[i])
        h = jax.nn.relu(jnp.dot(h, W2[i], precision=hp) + b2[i])
        o = jnp.dot(h, W3[i], precision=hp) + b3[i]
        y = jnp.where((flat == i)[:, None], o, y)
    return y


# --------------------------------- main ----------------------------------------
if __name__ == "__main__":
    key = jax.random.PRNGKey(0)
    kx, k1, k2, k3, kb1, kb2, kb3 = jax.random.split(key, 7)

    # query points in [-1, 1]^3
    x = jax.random.uniform(kx, (N, 3), jnp.float32, minval=-1.0, maxval=1.0)

    # deterministic synthetic per-model MLP parameters
    # TODO(synk): real Ensemble_SRN loads trained sub-SRN checkpoints from disk;
    # synthetic weights stand in for the per-model networks here.
    W1 = jax.random.normal(k1, (M, 3, H), jnp.float32) * 0.3
    b1 = jax.random.normal(kb1, (M, H), jnp.float32) * 0.1
    W2 = jax.random.normal(k2, (M, H, H), jnp.float32) * (1.0 / jnp.sqrt(H))
    b2 = jax.random.normal(kb2, (M, H), jnp.float32) * 0.1
    W3 = jax.random.normal(k3, (M, H, 1), jnp.float32) * (1.0 / jnp.sqrt(H))
    b3 = jax.random.normal(kb3, (M, 1), jnp.float32) * 0.1

    # local_min_extents / local_max_extents: one axis-aligned cell of [-1,1]^3
    # per sub-model, ordered by flat index ix + iy*G0 + iz*G0*G1.
    G0, G1, G2 = MODEL_GRID
    mins, maxs = [], []
    for iz in range(G2):
        for iy in range(G1):
            for ix in range(G0):
                lo = [-1.0 + 2.0 * ix / G0, -1.0 + 2.0 * iy / G1, -1.0 + 2.0 * iz / G2]
                hi = [lo[0] + 2.0 / G0, lo[1] + 2.0 / G1, lo[2] + 2.0 / G2]
                mins.append(lo); maxs.append(hi)
    local_min = jnp.array(mins, jnp.float32)   # (M, 3)
    local_max = jnp.array(maxs, jnp.float32)   # (M, 3)

    # one-time offline packing (renorm fold + block-diagonal slabs + bf16 cast)
    L1, L2, L3 = pack_ensemble_params(local_min, local_max,
                                      W1, b1, W2, b2, W3, b3)

    y = ensemble_srn_forward(x, L1, L2, L3)
    y = jax.block_until_ready(y)

    y_ref = reference_forward(x, local_min, local_max, W1, b1, W2, b2, W3, b3)
    assert y.shape == (N, 1)
    assert jnp.allclose(y, y_ref, atol=2e-2, rtol=2e-2), (
        "mismatch vs reference, max abs err = %g"
        % float(jnp.max(jnp.abs(y - y_ref))))

    print("KERNEL_OK")
</pallas_src>

<mosaic_0001>
module attributes {stable_mosaic.version = 11 : i64} {
  func.func @ensemble_srn_kernel(%arg0: i32, %arg1: memref<8x1024xf32, #tpu.memory_space<vmem>>, %arg2: memref<256x8xf32, #tpu.memory_space<vmem>>, %arg3: memref<256x256xbf16, #tpu.memory_space<vmem>>, %arg4: memref<8x256xbf16, #tpu.memory_space<vmem>>, %arg5: memref<1x1024xf32, #tpu.memory_space<vmem>>) attributes {dimension_semantics = [#tpu.dimension_semantics<parallel>], iteration_bounds = array<i64: 2>, scalar_prefetch = 0 : i64, scratch_operands = 0 : i64, tpu.core_type = #tpu.core_type<tc>, window_params = [{transform_indices = @transform_0, window_bounds = array<i64: 8, 1024>}, {pipeline_mode = #tpu.pipeline_mode<synchronous>, transform_indices = @transform_1, window_bounds = array<i64: 256, 8>}, {pipeline_mode = #tpu.pipeline_mode<synchronous>, transform_indices = @transform_2, window_bounds = array<i64: 256, 256>}, {pipeline_mode = #tpu.pipeline_mode<synchronous>, transform_indices = @transform_3, window_bounds = array<i64: 8, 256>}, {transform_indices = @transform_4, window_bounds = array<i64: 1, 1024>}]} {
    %c0 = arith.constant 0 : index
    %c0_0 = arith.constant 0 : index
    %0 = vector.load %arg1[%c0, %c0_0] : memref<8x1024xf32, #tpu.memory_space<vmem>>, vector<8x1024xf32>
    %cst = arith.constant 1.000000e+00 : f32
    %1 = vector.broadcast %cst : f32 to vector<8x1024xf32>
    %2 = arith.addf %0, %1 : vector<8x1024xf32>
    %cst_1 = arith.constant 5.000000e-01 : f32
    %3 = vector.broadcast %cst_1 : f32 to vector<8x1024xf32>
    %4 = arith.mulf %2, %3 : vector<8x1024xf32>
    %cst_2 = arith.constant 0.000000e+00 : f32
    %cst_3 = arith.constant 9.900000e-01 : f32
    %5 = vector.broadcast %cst_2 : f32 to vector<8x1024xf32>
    %6 = arith.maximumf %5, %4 : vector<8x1024xf32>
    %7 = vector.broadcast %cst_3 : f32 to vector<8x1024xf32>
    %8 = arith.minimumf %7, %6 : vector<8x1024xf32>
    %9 = vector.extract_strided_slice %8 {offsets = [0, 0], sizes = [1, 1024], strides = [1, 1]} : vector<8x1024xf32> to vector<1x1024xf32>
    %cst_4 = arith.constant 2.000000e+00 : f32
    %10 = vector.broadcast %cst_4 : f32 to vector<1x1024xf32>
    %11 = arith.mulf %9, %10 : vector<1x1024xf32>
    %12 = arith.fptosi %11 : vector<1x1024xf32> to vector<1x1024xi32>
    %13 = vector.extract_strided_slice %8 {offsets = [1, 0], sizes = [1, 1024], strides = [1, 1]} : vector<8x1024xf32> to vector<1x1024xf32>
    %cst_5 = arith.constant 2.000000e+00 : f32
    %14 = vector.broadcast %cst_5 : f32 to vector<1x1024xf32>
    %15 = arith.mulf %13, %14 : vector<1x1024xf32>
    %16 = arith.fptosi %15 : vector<1x1024xf32> to vector<1x1024xi32>
    %17 = vector.extract_strided_slice %8 {offsets = [2, 0], sizes = [1, 1024], strides = [1, 1]} : vector<8x1024xf32> to vector<1x1024xf32>
    %cst_6 = arith.constant 2.000000e+00 : f32
    %18 = vector.broadcast %cst_6 : f32 to vector<1x1024xf32>
    %19 = arith.mulf %17, %18 : vector<1x1024xf32>
    %20 = arith.fptosi %19 : vector<1x1024xf32> to vector<1x1024xi32>
    %c2_i32 = arith.constant 2 : i32
    %21 = vector.broadcast %c2_i32 : i32 to vector<1x1024xi32>
    %22 = arith.muli %16, %21 : vector<1x1024xi32>
    %23 = arith.addi %12, %22 : vector<1x1024xi32>
    %c4_i32 = arith.constant 4 : i32
    %24 = vector.broadcast %c4_i32 : i32 to vector<1x1024xi32>
    %25 = arith.muli %20, %24 : vector<1x1024xi32>
    %26 = arith.addi %23, %25 : vector<1x1024xi32>
    %c0_7 = arith.constant 0 : index
    %c0_8 = arith.constant 0 : index
    %27 = vector.load %arg2[%c0_7, %c0_8] : memref<256x8xf32, #tpu.memory_space<vmem>>, vector<256x8xf32>
    %cst_9 = arith.constant dense<0.000000e+00> : vector<256x1024xf32>
    %28 = tpu.matmul %27, %0, %cst_9 {dimension_numbers = #tpu.dot_dimension_numbers<[1], [0], [0], [1], [0, 0, 1, 1], [], []>} : vector<256x8xf32>, vector<8x1024xf32>, vector<256x1024xf32> -> vector<256x1024xf32>
    %cst_10 = arith.constant 0.000000e+00 : f32
    %29 = vector.broadcast %cst_10 : f32 to vector<256x1024xf32>
    %30 = arith.maximumf %28, %29 : vector<256x1024xf32>
    %31 = vector.extract_strided_slice %27 {offsets = [0, 4], sizes = [256, 1], strides = [1, 1]} : vector<256x8xf32> to vector<256x1xf32>
    %32 = vector.extract_strided_slice %27 {offsets = [0, 5], sizes = [8, 1], strides = [1, 1]} : vector<256x8xf32> to vector<8x1xf32>
    %c0_11 = arith.constant 0 : index
    %c0_12 = arith.constant 0 : index
    %33 = vector.load %arg3[%c0_11, %c0_12] : memref<256x256xbf16, #tpu.memory_space<vmem>>, vector<256x256xbf16>
    %34 = arith.truncf %30 : vector<256x1024xf32> to vector<256x1024xbf16>
    %cst_13 = arith.constant dense<0.000000e+00> : vector<256x1024xf32>
    %35 = tpu.matmul %33, %34, %cst_13 {dimension_numbers = #tpu.dot_dimension_numbers<[1], [0], [0], [1], [0, 0, 1, 1], [], []>} : vector<256x256xbf16>, vector<256x1024xbf16>, vector<256x1024xf32> -> vector<256x1024xf32>
    %36 = vector.broadcast %31 : vector<256x1xf32> to vector<256x1024xf32>
    %37 = arith.addf %35, %36 : vector<256x1024xf32>
    %cst_14 = arith.constant 0.000000e+00 : f32
    %38 = vector.broadcast %cst_14 : f32 to vector<256x1024xf32>
    %39 = arith.maximumf %37, %38 : vector<256x1024xf32>
    %c0_15 = arith.constant 0 : index
    %c0_16 = arith.constant 0 : index
    %40 = vector.load %arg4[%c0_15, %c0_16] : memref<8x256xbf16, #tpu.memory_space<vmem>>, vector<8x256xbf16>
    %41 = arith.truncf %39 : vector<256x1024xf32> to vector<256x1024xbf16>
    %cst_17 = arith.constant dense<0.000000e+00> : vector<8x1024xf32>
    %42 = tpu.matmul %40, %41, %cst_17 {dimension_numbers = #tpu.dot_dimension_numbers<[1], [0], [0], [1], [0, 0, 1, 1], [], []>} : vector<8x256xbf16>, vector<256x1024xbf16>, vector<8x1024xf32> -> vector<8x1024xf32>
    %43 = vector.broadcast %32 : vector<8x1xf32> to vector<8x1024xf32>
    %44 = arith.addf %42, %43 : vector<8x1024xf32>
    %45 = tpu.iota {dimensions = array<i32: 0>} : vector<8x1024xi32>
    %46 = vector.broadcast %26 : vector<1x1024xi32> to vector<8x1024xi32>
    %47 = arith.cmpi eq, %45, %46 : vector<8x1024xi32>
    %cst_18 = arith.constant 0.000000e+00 : f32
    %48 = vector.broadcast %cst_18 : f32 to vector<8x1024xf32>
    %49 = arith.select %47, %44, %48 : vector<8x1024xi1>, vector<8x1024xf32>
    %cst_19 = arith.constant dense<0.000000e+00> : vector<1024xf32>
    %50 = vector.multi_reduction <add>, %49, %cst_19 [0] : vector<8x1024xf32> to vector<1024xf32>
    %51 = vector.shape_cast %50 : vector<1024xf32> to vector<1x1024xf32>
    %c0_20 = arith.constant 0 : index
    %c0_21 = arith.constant 0 : index
    %52 = vector.load %arg5[%c0_20, %c0_21] : memref<1x1024xf32, #tpu.memory_space<vmem>>, vector<1x1024xf32>
    tpu.vector_store %arg5[%c0_20, %c0_21], %51 {strides = array<i32>} : memref<1x1024xf32, #tpu.memory_space<vmem>>, vector<1x1024xf32>,
    return
  }
  func.func @transform_0(%arg0: i32) -> (i32, i32) {
    %c0_i32 = arith.constant 0 : i32
    %c0_i32_0 = arith.constant 0 : i32
    return %c0_i32, %arg0 : i32, i32
  }
  func.func @transform_1(%arg0: i32) -> (i32, i32) {
    %c0_i32 = arith.constant 0 : i32
    %c0_i32_0 = arith.constant 0 : i32
    %c0_i32_1 = arith.constant 0 : i32
    return %c0_i32, %c0_i32_0 : i32, i32
  }
  func.func @transform_2(%arg0: i32) -> (i32, i32) {
    %c0_i32 = arith.constant 0 : i32
    %c0_i32_0 = arith.constant 0 : i32
    %c0_i32_1 = arith.constant 0 : i32
    return %c0_i32, %c0_i32_0 : i32, i32
  }
  func.func @transform_3(%arg0: i32) -> (i32, i32) {
    %c0_i32 = arith.constant 0 : i32
    %c0_i32_0 = arith.constant 0 : i32
    %c0_i32_1 = arith.constant 0 : i32
    return %c0_i32, %c0_i32_0 : i32, i32
  }
  func.func @transform_4(%arg0: i32) -> (i32, i32) {
    %c0_i32 = arith.constant 0 : i32
    %c0_i32_0 = arith.constant 0 : i32
    return %c0_i32, %arg0 : i32, i32
  }
}

</mosaic_0001>

<bundles_post_ra>
// kernel: tpu_custom_call.1
= control target key start
LH: loop header
LB: loop body
LE: loop exit
PB: predicated region body
PF: predicated region fallthrough
CT: control target
= control target key end

     0   :  { %9 = vsyncpa [#allocation3], 0  ;;  %s5721_s0 = inlined_call_operand.hbm [shape: f32[8,2048], index: 0, kind: input, shape index: {}]   ;;  %s5722_s1 = inlined_call_operand.vmem [shape: f32[256,8], index: 1, kind: input, shape index: {}]   ;;  %s5723_s2 = inlined_call_operand.vmem [shape: bf16[256,256], index: 2, kind: input, shape index: {}]   ;;  %s5724_s3 = inlined_call_operand.vmem [shape: bf16[8,256], index: 3, kind: input, shape index: {}]   ;;  %s5725_s4 = inlined_call_operand.hbm [shape: f32[1,2048], index: 4, kind: output, shape index: {}]  }
   0x1   :  { %11 = vsyncpa [#allocation3 + $0x1], 0 }
   0x2   :  { %12 = vsyncpa [#allocation4], 0 }
   0x3   :  { %14 = vsyncpa [#allocation4 + $0x1], 0  ;;  %s4223_s15 = smov 0   ;;  %s4225_s16 = smov 0  }
   0x4   :  { %s4227_s17 = smov 0   ;;  %s4229_s18 = smov 0  }
   0x5 LB: > { %s4244_s19 = sadd.s32 4294967295, %s4190_s18   ;;  %s3755_s20 = sadd.s32 4294967294, %s4190_s18   ;;  %s4190_s18 = sphi %s4229_s18, %s5740_s18   ;;  %s4186_s17 = sphi %s4227_s17, %s5739_s17   ;;  %s4182_s16 = sphi %s4225_s16, %s5738_s16   ;;  %s4178_s15 = sphi %s4223_s15, %s5737_s15  }
   0x6   : > { %s4248_s21 = sadd.s32 1, %s4190_s18   ;;  %s27_s22 = sadd.s32 1, %s4186_s17 }
   0x7   : > { %s24_s23 = ssub.s32 %s4190_s18, %s4248_s21  ;;  %p34_p0 = scmp.ne.s32.totalorder %s4186_s17, %s4182_s16 }
   0x8   : > { %p25_p1 = scmp.eq.s32.totalorder %s24_s23, 0  ;;  %p35_p2 = scmp.eq.s32.totalorder %s4190_s18, 0 }
   0x9   : > { %p40_p3 = scmp.ne.s32.totalorder %s4182_s16, %s4178_s15  ;;  %p41_p4 = scmp.eq.s32.totalorder %s4244_s19, 0 }
   0xa   : > { %s4260_s24 = scalar_select %p25_p1, %s4186_s17, %s27_s22  }
   0xb   : > { %p4262_p5 = por %p35_p2, %p34_p0  ;;  %p4266_p6 = por %p41_p4, %p40_p3 }
   0xc   : > { %p127_p7 = scmp.eq.s32.totalorder %s4244_s19, 1  ;;  %p133_p8 = scmp.eq.s32.totalorder %s3755_s20, 1 }
   0xd   : > { %p3961_p10 = scmp.lt.s32.totalorder %s4190_s18, 2  ;;  %s162_s29 = sand.u32 1, %s4186_s17  }
   0xe   : > { %p4273_p11 = por %p127_p7, %p34_p0  ;;  %p4277_p12 = por %p133_p8, %p40_p3 }
   0xf   : > { %s3931_s30 = sshll.u32 %s4190_s18, 10  ;;  %s3758_s5 = sshll.u32 %s162_s29, 6 }
  0x10   : > { %s5729_s27 = scalar_select %p4273_p11, 1, 0 }
  0x11   : > { %s5730_s28 = scalar_select %p4277_p12, 1, 0 }
  0x12   : > { %s4286_s8 = scalar_lea.hbm %s5721_s0, %s3931_s30  ;;  %s166_s9 = scalar_lea.vmem [#allocation2], %s3758_s5 }
  0x13   : > { %s174_s10 = sshll.u32 %s166_s9, 4  ;;  %p4290_p13 = pnand %p3961_p10, %p4262_p5  ;;  %s4294_s10 = int_to_ptr.vmem [resolvable:$true] %s174_s10 }
  0x14   : > { %s163_s12 = scalar_lea.sflag [#allocation3], %s162_s29  ;;  %s4094_s13 = scalar_lea.hbm %s4286_s8, 1024 }
  0x15   : > { %p4095_p2 = scmp.ne.s32.totalorder %s4286_s8, %s4094_s13  ;;  %p4096_p3 = pneg %p4290_p13 }
  0x16   : > { %s4099_s22 = scalar_lea.hbm %s5721_s0, 2048  ;;  %p4100_p5 = scmp.lt.u32.totalorder %s4286_s8, %s5721_s0 }
  0x17   : > { %p4097_p4 = pnand %p4096_p3, %p4095_p2  ;;  %p4101_p8 = scmp.lt.u32.totalorder %s4099_s22, %s4094_s13 }
  0x18   : > { %p4103_p9 = scmp.lt.u32.totalorder %s4094_s13, %s4286_s8 }
  0x19   : > { %p4098_p7 = pneg %p4097_p4  ;;  %p4102_p10 = por %p4101_p8, %p4100_p5 }
  0x1b   : > { %p4104_p0 = por %p4103_p9, %p4102_p10 }
  0x1d   : > { %p4105_p1 = pnand %p4104_p0, %p4098_p7 }
  0x1f   : > { %4108 = shalt.err (!%p4105_p1)
}
  0x20   : > { %s4109_s29 = scalar_lea.vmem %s4294_s10, 1024  ;;  %s4192_s30 = smov [#allocation2]  }
  0x21   : > { %p4110_p2 = scmp.ne.s32.totalorder %s4294_s10, %s4109_s29  ;;  %s4114_s5 = sshll.u32 %s4192_s30, 4  ;;  %s4115_s5 = int_to_ptr.vmem [resolvable:$false] %s4114_s5 }
  0x22   : > { %s4116_s6 = scalar_lea.vmem %s4115_s5, 2048  ;;  %p4117_p11 = scmp.lt.s32.totalorder %s4294_s10, %s4115_s5 }
  0x23   : > { %p4112_p4 = pnand %p4110_p2, %p4096_p3  ;;  %p4118_p5 = scmp.lt.s32.totalorder %s4116_s6, %s4109_s29 }
  0x25   : > { %p4113_p12 = pneg %p4112_p4  ;;  %p4119_p8 = por %p4118_p5, %p4117_p11 }
  0x27   : > { %p4120_p9 = pnand %p4119_p8, %p4113_p12 }
  0x29   : > { %4123 = shalt.err (!%p4120_p9)
}
  0x2a   : > { %3956 = dma.hbm_to_vmem [thread:$0]  (!%p4290_p13), %s4286_s8, 1024, %s4294_s10, %s163_s12  }
  0x2b   : > { %p5732_p0 = scmp.lt.s32.totalorder %s4190_s18, 3  ;;  %p5733_p1 = scmp.ge.s32.totalorder %s4190_s18, 1 }
  0x2d   : > { %p180_p3 = pnand %p5733_p1, %p5732_p0 }
  0x2e   : > { %s4328_s7 = sand.u32 (!%p180_p3), 1, %s4182_s16  }
  0x2f   : > { %183 = sbr.rel (%p180_p3) target bundleno = 1129 (0x469), region = 36  ;;  %s3762_s9 = sshll.u32 (!%p180_p3), %s4328_s7, 6 }
  0x30   : > { %s186_s13 = scalar_lea.sflag (!%p180_p3), [#allocation3], %s4328_s7  ;;  %s4332_s14 = scalar_lea.vmem (!%p180_p3), [#allocation2], %s3762_s9 }
  0x36   : > { %4169 = dma.done.wait (%p4266_p6), %s186_s13, 1024  }
  0x37   : > { %4171 = vsyncadd (%p4266_p6), %s186_s13, 4294966272  ;;  %v4193_v0 = vmov 0.0   ;;  %v217_v1 = vld [vmem:[%s4332_s14 + $0x8] sm:$0xff]  ;;  %v219_v2 = vld [vmem:[%s4332_s14 + $0x18] sm:$0xff]  ;;  %vm352_vm0 = vcmask 64512   ;;  %s3932_s11 = sshll.u32 %s4244_s19, 7 }
  0x38   : > { %513 = vmatprep.mubr.f32.mxu0 %v4193_v0  ;;  %770 = vmatprep.mubr.f32.mxu1 %v4193_v0  ;;  %v216_v3 = vld [vmem:[%s4332_s14] sm:$0xff]  ;;  %v218_v4 = vld [vmem:[%s4332_s14 + $0x10] sm:$0xff]  ;;  %v221_v6 = vld [vmem:[%s4332_s14 + $0x28] sm:$0xff]  ;;  %s5677_s25 = scalar_lea.hbm %s5725_s4, %s3932_s11  ;;  %s3671_s19 = scalar_lea.sflag [#allocation4], %s4328_s7 }
  0x39   : > { %449 = vmatprep.subr.mxu0 %v217_v1  ;;  %706 = vmatprep.subr.mxu1 %v219_v2  ;;  %v4347_v5 = vld [vmem:[%s5722_s1] sm:$0xff]  ;;  %v223_v7 = vld [vmem:[%s4332_s14 + $0x38] sm:$0xff]  ;;  %v222_v9 = vld [vmem:[%s4332_s14 + $0x30] sm:$0xff]  ;;  %p5734_p11 = scmp.ne.s32.totalorder %s5729_s27, 0  ;;  %s4197_s30 = smov [#allocation5]  }
  0x3a   : > { %450 = vmatpush1.msra.mxu0 %v216_v3  ;;  %707 = vmatpush1.msra.mxu1 %v218_v4  ;;  %v220_v8 = vld [vmem:[%s4332_s14 + $0x20] sm:$0xff]  ;;  %v4362_v10 = vld [vmem:[%s5722_s1 + $0x8] sm:$0xff]  ;;  %v4373_v11 = vld [vmem:[%s5722_s1 + $0x10] sm:$0xff]  ;;  %s4128_s5 = sshll.u32 %s4197_s30, 4  ;;  %s4129_s5 = int_to_ptr.vmem [resolvable:$false] %s4128_s5 }
  0x3b   : > { %3764 = vmatmul.mubr.msk.f32.vlgmr.msra.gmra.mrb[0].mxu0 %vm352_vm0, %v4347_v5  ;;  %3796 = vmatmul.mubr.msk.f32.vlgmr.msra.gmra.mrb[0].mxu1 %vm352_vm0, %v4347_v5  ;;  %v4384_v12 = vld [vmem:[%s5722_s1 + $0x18] sm:$0xff]  ;;  %v4395_v13 = vld [vmem:[%s5722_s1 + $0x20] sm:$0xff]  ;;  %v4400_v14 = vld [vmem:[%s5722_s1 + $0x28] sm:$0xff]  ;;  %s4130_s6 = scalar_lea.vmem %s4129_s5, 256 }
  0x3c   : > { %519 = vmatprep.mubr.f32.mxu0 %v4193_v0  ;;  %776 = vmatprep.mubr.f32.mxu1 %v4193_v0  ;;  %v4411_v15 = vld [vmem:[%s5722_s1 + $0x30] sm:$0xff]  ;;  %v4428_v16 = vld [vmem:[%s5722_s1 + $0x38] sm:$0xff]  ;;  %v4439_v17 = vld [vmem:[%s5722_s1 + $0x40] sm:$0xff] }
  0x3d   : > { %963 = vmatprep.subr.mxu0 %v221_v6  ;;  %1220 = vmatprep.subr.mxu1 %v223_v7  ;;  %v4450_v18 = vld [vmem:[%s5722_s1 + $0x48] sm:$0xff]  ;;  %v4461_v19 = vld [vmem:[%s5722_s1 + $0x50] sm:$0xff]  ;;  %v4472_v20 = vld [vmem:[%s5722_s1 + $0x58] sm:$0xff] }
  0x3e   : > { %964 = vmatpush1.msra.mxu0 %v220_v8  ;;  %1221 = vmatpush1.msra.mxu1 %v222_v9  ;;  %v4483_v21 = vld [vmem:[%s5722_s1 + $0x60] sm:$0xff]  ;;  %v4494_v22 = vld [vmem:[%s5722_s1 + $0x68] sm:$0xff]  ;;  %v4505_v23 = vld [vmem:[%s5722_s1 + $0x70] sm:$0xff] }
  0x3f   : > { %3765 = vmatmul.mubr.msk.f32.gmra.mrb[2].mxu0 %vm352_vm0, %v4362_v10  ;;  %3797 = vmatmul.mubr.msk.f32.gmra.mrb[2].mxu1 %vm352_vm0, %v4362_v10  ;;  %v4516_v24 = vld [vmem:[%s5722_s1 + $0x78] sm:$0xff]  ;;  %v4527_v25 = vld [vmem:[%s5722_s1 + $0x80] sm:$0xff]  ;;  %v4538_v26 = vld [vmem:[%s5722_s1 + $0x88] sm:$0xff] }
  0x40   : > { %525 = vmatprep.mubr.f32.mxu0 %v4193_v0  ;;  %782 = vmatprep.mubr.f32.mxu1 %v4193_v0  ;;  %v4549_v27 = vld [vmem:[%s5722_s1 + $0x90] sm:$0xff]  ;;  %v4560_v28 = vld [vmem:[%s5722_s1 + $0x98] sm:$0xff]  ;;  %v4571_v29 = vld [vmem:[%s5722_s1 + $0xa0] sm:$0xff] }
  0x41   : > { %v4582_v30 = vld [vmem:[%s5722_s1 + $0xa8] sm:$0xff]  ;;  %v4593_v31 = vld [vmem:[%s5722_s1 + $0xb0] sm:$0xff]  ;;  %v4604_v32 = vld [vmem:[%s5722_s1 + $0xb8] sm:$0xff] }
  0x42   : > { %v4615_v33 = vld [vmem:[%s5722_s1 + $0xc0] sm:$0xff]  ;;  %v4626_v34 = vld [vmem:[%s5722_s1 + $0xc8] sm:$0xff]  ;;  %v4637_v35 = vld [vmem:[%s5722_s1 + $0xd0] sm:$0xff] }
  0x43   : > { %3766 = vmatmul.mubr.msk.f32.gmra.mrb[4].mxu0 %vm352_vm0, %v4373_v11  ;;  %3798 = vmatmul.mubr.msk.f32.gmra.mrb[4].mxu1 %vm352_vm0, %v4373_v11  ;;  %v4648_v36 = vld [vmem:[%s5722_s1 + $0xd8] sm:$0xff]  ;;  %v4659_v37 = vld [vmem:[%s5722_s1 + $0xe0] sm:$0xff]  ;;  %v4670_v38 = vld [vmem:[%s5722_s1 + $0xe8] sm:$0xff] }
  0x44   : > { %531 = vmatprep.mubr.f32.mxu0 %v4193_v0  ;;  %788 = vmatprep.mubr.f32.mxu1 %v4193_v0  ;;  %v4681_v39 = vld [vmem:[%s5722_s1 + $0xf0] sm:$0xff]  ;;  %v4692_v40 = vld [vmem:[%s5722_s1 + $0xf8] sm:$0xff] }
  0x47   : > { %3767 = vmatmul.mubr.msk.f32.gmra.mrb[6].mxu0 %vm352_vm0, %v4384_v12  ;;  %3799 = vmatmul.mubr.msk.f32.gmra.mrb[6].mxu1 %vm352_vm0, %v4384_v12 }
  0x48   : > { %537 = vmatprep.mubr.f32.mxu0 %v4193_v0  ;;  %794 = vmatprep.mubr.f32.mxu1 %v4193_v0 }
  0x4b   : > { %3768 = vmatmul.mubr.msk.f32.gmra.mrb[8].mxu0 %vm352_vm0, %v4395_v13  ;;  %3800 = vmatmul.mubr.msk.f32.gmra.mrb[8].mxu1 %vm352_vm0, %v4395_v13 }
  0x4c   : > { %543 = vmatprep.mubr.f32.mxu0 %v4193_v0  ;;  %800 = vmatprep.mubr.f32.mxu1 %v4193_v0 }
  0x4f   : > { %3769 = vmatmul.mubr.msk.f32.gmra.mrb[10].mxu0 %vm352_vm0, %v4400_v14  ;;  %3801 = vmatmul.mubr.msk.f32.gmra.mrb[10].mxu1 %vm352_vm0, %v4400_v14 }
  0x50   : > { %549 = vmatprep.mubr.f32.mxu0 %v4193_v0  ;;  %806 = vmatprep.mubr.f32.mxu1 %v4193_v0 }
  0x53   : > { %3770 = vmatmul.mubr.msk.f32.gmra.mrb[12].mxu0 %vm352_vm0, %v4411_v15  ;;  %3802 = vmatmul.mubr.msk.f32.gmra.mrb[12].mxu1 %vm352_vm0, %v4411_v15 }
  0x54   : > { %555 = vmatprep.mubr.f32.mxu0 %v4193_v0  ;;  %812 = vmatprep.mubr.f32.mxu1 %v4193_v0 }
  0x57   : > { %3771 = vmatmul.mubr.msk.f32.gmra.mrb[14].mxu0 %vm352_vm0, %v4428_v16  ;;  %3803 = vmatmul.mubr.msk.f32.gmra.mrb[14].mxu1 %vm352_vm0, %v4428_v16 }
  0x58   : > { %561 = vmatprep.mubr.f32.mxu0 %v4193_v0  ;;  %818 = vmatprep.mubr.f32.mxu1 %v4193_v0 }
  0x5b   : > { %3772 = vmatmul.mubr.msk.f32.gmra.mrb[16].mxu0 %vm352_vm0, %v4439_v17  ;;  %3804 = vmatmul.mubr.msk.f32.gmra.mrb[16].mxu1 %vm352_vm0, %v4439_v17 }
  0x5c   : > { %567 = vmatprep.mubr.f32.mxu0 %v4193_v0  ;;  %824 = vmatprep.mubr.f32.mxu1 %v4193_v0 }
  0x5f   : > { %3773 = vmatmul.mubr.msk.f32.gmra.mrb[18].mxu0 %vm352_vm0, %v4450_v18  ;;  %3805 = vmatmul.mubr.msk.f32.gmra.mrb[18].mxu1 %vm352_vm0, %v4450_v18 }
  0x60   : > { %573 = vmatprep.mubr.f32.mxu0 %v4193_v0  ;;  %830 = vmatprep.mubr.f32.mxu1 %v4193_v0 }
  0x63   : > { %3774 = vmatmul.mubr.msk.f32.gmra.mrb[20].mxu0 %vm352_vm0, %v4461_v19  ;;  %3806 = vmatmul.mubr.msk.f32.gmra.mrb[20].mxu1 %vm352_vm0, %v4461_v19 }
  0x64   : > { %579 = vmatprep.mubr.f32.mxu0 %v4193_v0  ;;  %836 = vmatprep.mubr.f32.mxu1 %v4193_v0 }
  0x67   : > { %3775 = vmatmul.mubr.msk.f32.gmra.mrb[22].mxu0 %vm352_vm0, %v4472_v20  ;;  %3807 = vmatmul.mubr.msk.f32.gmra.mrb[22].mxu1 %vm352_vm0, %v4472_v20 }
  0x68   : > { %585 = vmatprep.mubr.f32.mxu0 %v4193_v0  ;;  %842 = vmatprep.mubr.f32.mxu1 %v4193_v0 }
  0x6b   : > { %3776 = vmatmul.mubr.msk.f32.gmra.mrb[24].mxu0 %vm352_vm0, %v4483_v21  ;;  %3808 = vmatmul.mubr.msk.f32.gmra.mrb[24].mxu1 %vm352_vm0, %v4483_v21 }
  0x6c   : > { %591 = vmatprep.mubr.f32.mxu0 %v4193_v0  ;;  %848 = vmatprep.mubr.f32.mxu1 %v4193_v0 }
  0x6f   : > { %3777 = vmatmul.mubr.msk.f32.gmra.mrb[26].mxu0 %vm352_vm0, %v4494_v22  ;;  %3809 = vmatmul.mubr.msk.f32.gmra.mrb[26].mxu1 %vm352_vm0, %v4494_v22 }
  0x70   : > { %597 = vmatprep.mubr.f32.mxu0 %v4193_v0  ;;  %854 = vmatprep.mubr.f32.mxu1 %v4193_v0 }
  0x73   : > { %3778 = vmatmul.mubr.msk.f32.gmra.mrb[28].mxu0 %vm352_vm0, %v4505_v23  ;;  %3810 = vmatmul.mubr.msk.f32.gmra.mrb[28].mxu1 %vm352_vm0, %v4505_v23 }
  0x74   : > { %603 = vmatprep.mubr.f32.mxu0 %v4193_v0  ;;  %860 = vmatprep.mubr.f32.mxu1 %v4193_v0 }
  0x77   : > { %3779 = vmatmul.mubr.msk.f32.gmra.mrb[30].mxu0 %vm352_vm0, %v4516_v24  ;;  %3811 = vmatmul.mubr.msk.f32.gmra.mrb[30].mxu1 %vm352_vm0, %v4516_v24 }
  0x78   : > { %609 = vmatprep.mubr.f32.mxu0 %v4193_v0  ;;  %866 = vmatprep.mubr.f32.mxu1 %v4193_v0 }
  0x7b   : > { %3780 = vmatmul.mubr.msk.f32.gmra.mrb[32].mxu0 %vm352_vm0, %v4527_v25  ;;  %3812 = vmatmul.mubr.msk.f32.gmra.mrb[32].mxu1 %vm352_vm0, %v4527_v25 }
  0x7c   : > { %615 = vmatprep.mubr.f32.mxu0 %v4193_v0  ;;  %872 = vmatprep.mubr.f32.mxu1 %v4193_v0 }
  0x7f   : > { %3781 = vmatmul.mubr.msk.f32.gmra.mrb[34].mxu0 %vm352_vm0, %v4538_v26  ;;  %3813 = vmatmul.mubr.msk.f32.gmra.mrb[34].mxu1 %vm352_vm0, %v4538_v26 }
  0x80   : > { %621 = vmatprep.mubr.f32.mxu0 %v4193_v0  ;;  %878 = vmatprep.mubr.f32.mxu1 %v4193_v0 }
  0x83   : > { %3782 = vmatmul.mubr.msk.f32.gmra.mrb[36].mxu0 %vm352_vm0, %v4549_v27  ;;  %3814 = vmatmul.mubr.msk.f32.gmra.mrb[36].mxu1 %vm352_vm0, %v4549_v27 }
  0x84   : > { %627 = vmatprep.mubr.f32.mxu0 %v4193_v0  ;;  %884 = vmatprep.mubr.f32.mxu1 %v4193_v0 }
  0x87   : > { %3783 = vmatmul.mubr.msk.f32.gmra.mrb[38].mxu0 %vm352_vm0, %v4560_v28  ;;  %3815 = vmatmul.mubr.msk.f32.gmra.mrb[38].mxu1 %vm352_vm0, %v4560_v28 }
  0x88   : > { %633 = vmatprep.mubr.f32.mxu0 %v4193_v0  ;;  %890 = vmatprep.mubr.f32.mxu1 %v4193_v0 }
  0x8b   : > { %3784 = vmatmul.mubr.msk.f32.gmra.mrb[40].mxu0 %vm352_vm0, %v4571_v29  ;;  %3816 = vmatmul.mubr.msk.f32.gmra.mrb[40].mxu1 %vm352_vm0, %v4571_v29 }
  0x8c   : > { %639 = vmatprep.mubr.f32.mxu0 %v4193_v0  ;;  %896 = vmatprep.mubr.f32.mxu1 %v4193_v0 }
  0x8f   : > { %3785 = vmatmul.mubr.msk.f32.gmra.mrb[42].mxu0 %vm352_vm0, %v4582_v30  ;;  %3817 = vmatmul.mubr.msk.f32.gmra.mrb[42].mxu1 %vm352_vm0, %v4582_v30 }
  0x90   : > { %645 = vmatprep.mubr.f32.mxu0 %v4193_v0  ;;  %902 = vmatprep.mubr.f32.mxu1 %v4193_v0 }
  0x93   : > { %3786 = vmatmul.mubr.msk.f32.gmra.mrb[44].mxu0 %vm352_vm0, %v4593_v31  ;;  %3818 = vmatmul.mubr.msk.f32.gmra.mrb[44].mxu1 %vm352_vm0, %v4593_v31 }
  0x94   : > { %651 = vmatprep.mubr.f32.mxu0 %v4193_v0  ;;  %908 = vmatprep.mubr.f32.mxu1 %v4193_v0 }
  0x97   : > { %3787 = vmatmul.mubr.msk.f32.gmra.mrb[46].mxu0 %vm352_vm0, %v4604_v32  ;;  %3819 = vmatmul.mubr.msk.f32.gmra.mrb[46].mxu1 %vm352_vm0, %v4604_v32 }
  0x98   : > { %657 = vmatprep.mubr.f32.mxu0 %v4193_v0  ;;  %914 = vmatprep.mubr.f32.mxu1 %v4193_v0 }
  0x9b   : > { %3788 = vmatmul.mubr.msk.f32.gmra.mrb[48].mxu0 %vm352_vm0, %v4615_v33  ;;  %3820 = vmatmul.mubr.msk.f32.gmra.mrb[48].mxu1 %vm352_vm0, %v4615_v33 }
  0x9c   : > { %663 = vmatprep.mubr.f32.mxu0 %v4193_v0  ;;  %920 = vmatprep.mubr.f32.mxu1 %v4193_v0 }
  0x9f   : > { %3789 = vmatmul.mubr.msk.f32.gmra.mrb[50].mxu0 %vm352_vm0, %v4626_v34  ;;  %3821 = vmatmul.mubr.msk.f32.gmra.mrb[50].mxu1 %vm352_vm0, %v4626_v34 }
  0xa0   : > { %669 = vmatprep.mubr.f32.mxu0 %v4193_v0  ;;  %926 = vmatprep.mubr.f32.mxu1 %v4193_v0 }
  0xa3   : > { %3790 = vmatmul.mubr.msk.f32.gmra.mrb[52].mxu0 %vm352_vm0, %v4637_v35  ;;  %3822 = vmatmul.mubr.msk.f32.gmra.mrb[52].mxu1 %vm352_vm0, %v4637_v35 }
  0xa4   : > { %675 = vmatprep.mubr.f32.mxu0 %v4193_v0  ;;  %932 = vmatprep.mubr.f32.mxu1 %v4193_v0 }
  0xa7   : > { %3791 = vmatmul.mubr.msk.f32.gmra.mrb[54].mxu0 %vm352_vm0, %v4648_v36  ;;  %3823 = vmatmul.mubr.msk.f32.gmra.mrb[54].mxu1 %vm352_vm0, %v4648_v36 }
  0xa8   : > { %681 = vmatprep.mubr.f32.mxu0 %v4193_v0  ;;  %938 = vmatprep.mubr.f32.mxu1 %v4193_v0 }
  0xab   : > { %3792 = vmatmul.mubr.msk.f32.gmra.mrb[56].mxu0 %vm352_vm0, %v4659_v37  ;;  %3824 = vmatmul.mubr.msk.f32.gmra.mrb[56].mxu1 %vm352_vm0, %v4659_v37 }
  0xac   : > { %687 = vmatprep.mubr.f32.mxu0 %v4193_v0  ;;  %944 = vmatprep.mubr.f32.mxu1 %v4193_v0 }
  0xaf   : > { %3793 = vmatmul.mubr.msk.f32.gmra.mrb[58].mxu0 %vm352_vm0, %v4670_v38  ;;  %3825 = vmatmul.mubr.msk.f32.gmra.mrb[58].mxu1 %vm352_vm0, %v4670_v38 }
  0xb0   : > { %693 = vmatprep.mubr.f32.mxu0 %v4193_v0  ;;  %950 = vmatprep.mubr.f32.mxu1 %v4193_v0 }
  0xb3   : > { %3794 = vmatmul.mubr.msk.f32.gmra.mrb[60].mxu0 %vm352_vm0, %v4681_v39  ;;  %3826 = vmatmul.mubr.msk.f32.gmra.mrb[60].mxu1 %vm352_vm0, %v4681_v39 }
  0xb4   : > { %699 = vmatprep.mubr.f32.mxu0 %v4193_v0  ;;  %956 = vmatprep.mubr.f32.mxu1 %v4193_v0 }
  0xb7   : > { %3795 = vmatmul.mubr.msk.f32.gmra.mrb[62].mxu0 %vm352_vm0, %v4692_v40  ;;  %3827 = vmatmul.mubr.msk.f32.gmra.mrb[62].mxu1 %vm352_vm0, %v4692_v40 }
  0xb8   : > { %1027 = vmatprep.mubr.f32.mxu0 %v4193_v0  ;;  %1284 = vmatprep.mubr.f32.mxu1 %v4193_v0 }
  0xbb   : > { %3828 = vmatmul.mubr.msk.f32.vlgmr.msra.gmra.mrb[64].mxu0 %vm352_vm0, %v4347_v5  ;;  %3860 = vmatmul.mubr.msk.f32.vlgmr.msra.gmra.mrb[64].mxu1 %vm352_vm0, %v4347_v5 }
  0xbc   : > { %1033 = vmatprep.mubr.f32.mxu0 %v4193_v0  ;;  %1290 = vmatprep.mubr.f32.mxu1 %v4193_v0 }
  0xbf   : > { %3829 = vmatmul.mubr.msk.f32.gmra.mrb[66].mxu0 %vm352_vm0, %v4362_v10  ;;  %3861 = vmatmul.mubr.msk.f32.gmra.mrb[66].mxu1 %vm352_vm0, %v4362_v10 }
  0xc0   : > { %1039 = vmatprep.mubr.f32.mxu0 %v4193_v0  ;;  %1296 = vmatprep.mubr.f32.mxu1 %v4193_v0 }
  0xc3   : > { %3830 = vmatmul.mubr.msk.f32.gmra.mrb[68].mxu0 %vm352_vm0, %v4373_v11  ;;  %3862 = vmatmul.mubr.msk.f32.gmra.mrb[68].mxu1 %vm352_vm0, %v4373_v11 }
  0xc4   : > { %1045 = vmatprep.mubr.f32.mxu0 %v4193_v0  ;;  %1302 = vmatprep.mubr.f32.mxu1 %v4193_v0 }
  0xc7   : > { %3831 = vmatmul.mubr.msk.f32.gmra.mrb[70].mxu0 %vm352_vm0, %v4384_v12  ;;  %3863 = vmatmul.mubr.msk.f32.gmra.mrb[70].mxu1 %vm352_vm0, %v4384_v12 }
  0xc8   : > { %1051 = vmatprep.mubr.f32.mxu0 %v4193_v0  ;;  %1308 = vmatprep.mubr.f32.mxu1 %v4193_v0 }
  0xcb   : > { %3832 = vmatmul.mubr.msk.f32.gmra.mrb[72].mxu0 %vm352_vm0, %v4395_v13  ;;  %3864 = vmatmul.mubr.msk.f32.gmra.mrb[72].mxu1 %vm352_vm0, %v4395_v13 }
  0xcc   : > { %1057 = vmatprep.mubr.f32.mxu0 %v4193_v0  ;;  %1314 = vmatprep.mubr.f32.mxu1 %v4193_v0 }
  0xcf   : > { %3833 = vmatmul.mubr.msk.f32.gmra.mrb[74].mxu0 %vm352_vm0, %v4400_v14  ;;  %3865 = vmatmul.mubr.msk.f32.gmra.mrb[74].mxu1 %vm352_vm0, %v4400_v14 }
  0xd0   : > { %1063 = vmatprep.mubr.f32.mxu0 %v4193_v0  ;;  %1320 = vmatprep.mubr.f32.mxu1 %v4193_v0 }
  0xd3   : > { %3834 = vmatmul.mubr.msk.f32.gmra.mrb[76].mxu0 %vm352_vm0, %v4411_v15  ;;  %3866 = vmatmul.mubr.msk.f32.gmra.mrb[76].mxu1 %vm352_vm0, %v4411_v15 }
  0xd4   : > { %1069 = vmatprep.mubr.f32.mxu0 %v4193_v0  ;;  %1326 = vmatprep.mubr.f32.mxu1 %v4193_v0 }
  0xd7   : > { %3835 = vmatmul.mubr.msk.f32.gmra.mrb[78].mxu0 %vm352_vm0, %v4428_v16  ;;  %3867 = vmatmul.mubr.msk.f32.gmra.mrb[78].mxu1 %vm352_vm0, %v4428_v16 }
  0xd8   : > { %1075 = vmatprep.mubr.f32.mxu0 %v4193_v0  ;;  %1332 = vmatprep.mubr.f32.mxu1 %v4193_v0 }
  0xdb   : > { %3836 = vmatmul.mubr.msk.f32.gmra.mrb[80].mxu0 %vm352_vm0, %v4439_v17  ;;  %3868 = vmatmul.mubr.msk.f32.gmra.mrb[80].mxu1 %vm352_vm0, %v4439_v17 }
  0xdc   : > { %1081 = vmatprep.mubr.f32.mxu0 %v4193_v0  ;;  %1338 = vmatprep.mubr.f32.mxu1 %v4193_v0 }
  0xdf   : > { %3837 = vmatmul.mubr.msk.f32.gmra.mrb[82].mxu0 %vm352_vm0, %v4450_v18  ;;  %3869 = vmatmul.mubr.msk.f32.gmra.mrb[82].mxu1 %vm352_vm0, %v4450_v18 }
  0xe0   : > { %1087 = vmatprep.mubr.f32.mxu0 %v4193_v0  ;;  %1344 = vmatprep.mubr.f32.mxu1 %v4193_v0 }
  0xe3   : > { %3838 = vmatmul.mubr.msk.f32.gmra.mrb[84].mxu0 %vm352_vm0, %v4461_v19  ;;  %3870 = vmatmul.mubr.msk.f32.gmra.mrb[84].mxu1 %vm352_vm0, %v4461_v19 }
  0xe4   : > { %1093 = vmatprep.mubr.f32.mxu0 %v4193_v0  ;;  %1350 = vmatprep.mubr.f32.mxu1 %v4193_v0 }
  0xe7   : > { %3839 = vmatmul.mubr.msk.f32.gmra.mrb[86].mxu0 %vm352_vm0, %v4472_v20  ;;  %3871 = vmatmul.mubr.msk.f32.gmra.mrb[86].mxu1 %vm352_vm0, %v4472_v20 }
  0xe8   : > { %1099 = vmatprep.mubr.f32.mxu0 %v4193_v0  ;;  %1356 = vmatprep.mubr.f32.mxu1 %v4193_v0 }
  0xeb   : > { %3840 = vmatmul.mubr.msk.f32.gmra.mrb[88].mxu0 %vm352_vm0, %v4483_v21  ;;  %3872 = vmatmul.mubr.msk.f32.gmra.mrb[88].mxu1 %vm352_vm0, %v4483_v21 }
  0xec   : > { %1105 = vmatprep.mubr.f32.mxu0 %v4193_v0  ;;  %1362 = vmatprep.mubr.f32.mxu1 %v4193_v0 }
  0xef   : > { %3841 = vmatmul.mubr.msk.f32.gmra.mrb[90].mxu0 %vm352_vm0, %v4494_v22  ;;  %3873 = vmatmul.mubr.msk.f32.gmra.mrb[90].mxu1 %vm352_vm0, %v4494_v22 }
  0xf0   : > { %1111 = vmatprep.mubr.f32.mxu0 %v4193_v0  ;;  %1368 = vmatprep.mubr.f32.mxu1 %v4193_v0 }
  0xf3   : > { %3842 = vmatmul.mubr.msk.f32.gmra.mrb[92].mxu0 %vm352_vm0, %v4505_v23  ;;  %3874 = vmatmul.mubr.msk.f32.gmra.mrb[92].mxu1 %vm352_vm0, %v4505_v23 }
  0xf4   : > { %1117 = vmatprep.mubr.f32.mxu0 %v4193_v0  ;;  %1374 = vmatprep.mubr.f32.mxu1 %v4193_v0 }
  0xf7   : > { %3843 = vmatmul.mubr.msk.f32.gmra.mrb[94].mxu0 %vm352_vm0, %v4516_v24  ;;  %3875 = vmatmul.mubr.msk.f32.gmra.mrb[94].mxu1 %vm352_vm0, %v4516_v24 }
  0xf8   : > { %1123 = vmatprep.mubr.f32.mxu0 %v4193_v0  ;;  %1380 = vmatprep.mubr.f32.mxu1 %v4193_v0 }
  0xfb   : > { %3844 = vmatmul.mubr.msk.f32.gmra.mrb[96].mxu0 %vm352_vm0, %v4527_v25  ;;  %3876 = vmatmul.mubr.msk.f32.gmra.mrb[96].mxu1 %vm352_vm0, %v4527_v25 }
  0xfc   : > { %1129 = vmatprep.mubr.f32.mxu0 %v4193_v0  ;;  %1386 = vmatprep.mubr.f32.mxu1 %v4193_v0 }
  0xff   : > { %3845 = vmatmul.mubr.msk.f32.gmra.mrb[98].mxu0 %vm352_vm0, %v4538_v26  ;;  %3877 = vmatmul.mubr.msk.f32.gmra.mrb[98].mxu1 %vm352_vm0, %v4538_v26 }
 0x100   : > { %1135 = vmatprep.mubr.f32.mxu0 %v4193_v0  ;;  %1392 = vmatprep.mubr.f32.mxu1 %v4193_v0 }
 0x103   : > { %3846 = vmatmul.mubr.msk.f32.gmra.mrb[100].mxu0 %vm352_vm0, %v4549_v27  ;;  %3878 = vmatmul.mubr.msk.f32.gmra.mrb[100].mxu1 %vm352_vm0, %v4549_v27 }
 0x104   : > { %1141 = vmatprep.mubr.f32.mxu0 %v4193_v0  ;;  %1398 = vmatprep.mubr.f32.mxu1 %v4193_v0 }
 0x107   : > { %3847 = vmatmul.mubr.msk.f32.gmra.mrb[102].mxu0 %vm352_vm0, %v4560_v28  ;;  %3879 = vmatmul.mubr.msk.f32.gmra.mrb[102].mxu1 %vm352_vm0, %v4560_v28 }
 0x108   : > { %1147 = vmatprep.mubr.f32.mxu0 %v4193_v0  ;;  %1404 = vmatprep.mubr.f32.mxu1 %v4193_v0 }
 0x10b   : > { %3848 = vmatmul.mubr.msk.f32.gmra.mrb[104].mxu0 %vm352_vm0, %v4571_v29  ;;  %3880 = vmatmul.mubr.msk.f32.gmra.mrb[104].mxu1 %vm352_vm0, %v4571_v29 }
 0x10c   : > { %1153 = vmatprep.mubr.f32.mxu0 %v4193_v0  ;;  %1410 = vmatprep.mubr.f32.mxu1 %v4193_v0 }
 0x10e   : > { %v515_v41 = vpop.f32.mrb[0].mxu0  ;;  %v772_v42 = vpop.f32.mrb[0].mxu1 }
 0x10f   : > { %v517_v43 = vpop.f32.mrb[1].mxu0  ;;  %v774_v44 = vpop.f32.mrb[1].mxu1  ;;  %3849 = vmatmul.mubr.msk.f32.gmra.mrb[106].mxu0 %vm352_vm0, %v4582_v30  ;;  %3881 = vmatmul.mubr.msk.f32.gmra.mrb[106].mxu1 %vm352_vm0, %v4582_v30  ;;  %v1477_v47 = vmax.f32 %v515_v41, 0.0  ;;  %v1479_v48 = vmax.f32 %v772_v42, 0.0 }
 0x110   : > { %1159 = vmatprep.mubr.f32.mxu0 %v4193_v0  ;;  %1416 = vmatprep.mubr.f32.mxu1 %v4193_v0  ;;  %v1478_v53 = vmax.f32 %v517_v43, 0.0  ;;  %v1480_v54 = vmax.f32 %v774_v44, 0.0 }
 0x112   : > { %v521_v45 = vpop.f32.mrb[2].mxu0  ;;  %v778_v46 = vpop.f32.mrb[2].mxu1 }
 0x113   : > { %v1485_v49 = vmax.f32 %v521_v45, 0.0  ;;  %v1487_v50 = vmax.f32 %v778_v46, 0.0  ;;  %v523_v51 = vpop.f32.mrb[3].mxu0  ;;  %v780_v52 = vpop.f32.mrb[3].mxu1  ;;  %3850 = vmatmul.mubr.msk.f32.gmra.mrb[108].mxu0 %vm352_vm0, %v4593_v31  ;;  %3882 = vmatmul.mubr.msk.f32.gmra.mrb[108].mxu1 %vm352_vm0, %v4593_v31 }
 0x114   : > { %v1486_v55 = vmax.f32 %v523_v51, 0.0  ;;  %v1488_v56 = vmax.f32 %v780_v52, 0.0  ;;  %1165 = vmatprep.mubr.f32.mxu0 %v4193_v0  ;;  %1422 = vmatprep.mubr.f32.mxu1 %v4193_v0 }
 0x115   : > { %v1765_v57 = vpack.c.bf16 %v1485_v49, %v1477_v47  ;;  %v1767_v58 = vpack.c.bf16 %v1487_v50, %v1479_v48 }
 0x116   : > { %v527_v59 = vpop.f32.mrb[4].mxu0  ;;  %v784_v60 = vpop.f32.mrb[4].mxu1  ;;  %v1766_v61 = vpack.c.bf16 %v1486_v55, %v1478_v53  ;;  %v1768_v62 = vpack.c.bf16 %v1488_v56, %v1480_v54 }
 0x117   : > { %v529_v63 = vpop.f32.mrb[5].mxu0  ;;  %v786_v1 = vpop.f32.mrb[5].mxu1  ;;  %3851 = vmatmul.mubr.msk.f32.gmra.mrb[110].mxu0 %vm352_vm0, %v4604_v32  ;;  %3883 = vmatmul.mubr.msk.f32.gmra.mrb[110].mxu1 %vm352_vm0, %v4604_v32  ;;  %v1493_v4 = vmax.f32 %v527_v59, 0.0  ;;  %v1495_v5 = vmax.f32 %v784_v60, 0.0 }
 0x118   : > { %2181 = vmatprep.subr.bf16.mxu0 %v1766_v61  ;;  %2374 = vmatprep.subr.bf16.mxu1 %v1768_v62  ;;  %v1494_v10 = vmax.f32 %v529_v63, 0.0  ;;  %v1496_v11 = vmax.f32 %v786_v1, 0.0 }
 0x119   : > { %2182 = vmatpush1.bf16.msra.mxu0 %v1765_v57  ;;  %2375 = vmatpush1.bf16.msra.mxu1 %v1767_v58 }
 0x11a   : > { %v533_v2 = vpop.f32.mrb[6].mxu0  ;;  %v790_v3 = vpop.f32.mrb[6].mxu1  ;;  %1171 = vmatprep.mubr.f32.mxu0 %v4193_v0  ;;  %1428 = vmatprep.mubr.f32.mxu1 %v4193_v0 }
 0x11b   : > { %v1501_v6 = vmax.f32 %v533_v2, 0.0  ;;  %v1503_v7 = vmax.f32 %v790_v3, 0.0  ;;  %v535_v8 = vpop.f32.mrb[7].mxu0  ;;  %v792_v9 = vpop.f32.mrb[7].mxu1  ;;  %3852 = vmatmul.mubr.msk.f32.gmra.mrb[112].mxu0 %vm352_vm0, %v4615_v33  ;;  %3884 = vmatmul.mubr.msk.f32.gmra.mrb[112].mxu1 %vm352_vm0, %v4615_v33 }
 0x11c   : > { %v1502_v12 = vmax.f32 %v535_v8, 0.0  ;;  %v1504_v13 = vmax.f32 %v792_v9, 0.0  ;;  %1177 = vmatprep.mubr.f32.mxu0 %v4193_v0  ;;  %1434 = vmatprep.mubr.f32.mxu1 %v4193_v0 }
 0x11d   : > { %v1773_v14 = vpack.c.bf16 %v1501_v6, %v1493_v4  ;;  %v1775_v15 = vpack.c.bf16 %v1503_v7, %v1495_v5 }
 0x11e   : > { %v539_v16 = vpop.f32.mrb[8].mxu0  ;;  %v796_v17 = vpop.f32.mrb[8].mxu1  ;;  %v1774_v18 = vpack.c.bf16 %v1502_v12, %v1494_v10  ;;  %v1776_v19 = vpack.c.bf16 %v1504_v13, %v1496_v11 }
 0x11f   : > { %v541_v20 = vpop.f32.mrb[9].mxu0  ;;  %v798_v21 = vpop.f32.mrb[9].mxu1  ;;  %3853 = vmatmul.mubr.msk.f32.gmra.mrb[114].mxu0 %vm352_vm0, %v4626_v34  ;;  %3885 = vmatmul.mubr.msk.f32.gmra.mrb[114].mxu1 %vm352_vm0, %v4626_v34  ;;  %v1509_v24 = vmax.f32 %v539_v16, 0.0  ;;  %v1511_v25 = vmax.f32 %v796_v17, 0.0 }
 0x120   : > { %2183 = vmatprep.subr.bf16.mxu0 %v1774_v18  ;;  %2376 = vmatprep.subr.bf16.mxu1 %v1776_v19  ;;  %v1510_v30 = vmax.f32 %v541_v20, 0.0  ;;  %v1512_v31 = vmax.f32 %v798_v21, 0.0  ;;  %v4004_v19 = vld [vmem:[%s5723_s2 + $0x4] ss:$8 sps:$4 sm:$0xff]  }
 0x121   : > { %2184 = vmatpush1.bf16.msra.mxu0 %v1773_v14  ;;  %2377 = vmatpush1.bf16.msra.mxu1 %v1775_v15 }
 0x122   : > { %v545_v22 = vpop.f32.mrb[10].mxu0  ;;  %v802_v23 = vpop.f32.mrb[10].mxu1  ;;  %1183 = vmatprep.mubr.f32.mxu0 %v4193_v0  ;;  %1440 = vmatprep.mubr.f32.mxu1 %v4193_v0 }
 0x123   : > { %v1517_v26 = vmax.f32 %v545_v22, 0.0  ;;  %v1519_v27 = vmax.f32 %v802_v23, 0.0  ;;  %v547_v28 = vpop.f32.mrb[11].mxu0  ;;  %v804_v29 = vpop.f32.mrb[11].mxu1  ;;  %3854 = vmatmul.mubr.msk.f32.gmra.mrb[116].mxu0 %vm352_vm0, %v4637_v35  ;;  %3886 = vmatmul.mubr.msk.f32.gmra.mrb[116].mxu1 %vm352_vm0, %v4637_v35 }
 0x124   : > { %v1518_v32 = vmax.f32 %v547_v28, 0.0  ;;  %v1520_v33 = vmax.f32 %v804_v29, 0.0  ;;  %1189 = vmatprep.mubr.f32.mxu0 %v4193_v0  ;;  %1446 = vmatprep.mubr.f32.mxu1 %v4193_v0 }
 0x125   : > { %v1781_v34 = vpack.c.bf16 %v1517_v26, %v1509_v24  ;;  %v1783_v41 = vpack.c.bf16 %v1519_v27, %v1511_v25 }
 0x126   : > { %v1782_v42 = vpack.c.bf16 %v1518_v32, %v1510_v30  ;;  %v1784_v43 = vpack.c.bf16 %v1520_v33, %v1512_v31  ;;  %v551_v44 = vpop.f32.mrb[12].mxu0  ;;  %v808_v45 = vpop.f32.mrb[12].mxu1 }
 0x127   : > { %v553_v46 = vpop.f32.mrb[13].mxu0  ;;  %v810_v47 = vpop.f32.mrb[13].mxu1  ;;  %3855 = vmatmul.mubr.msk.f32.gmra.mrb[118].mxu0 %vm352_vm0, %v4648_v36  ;;  %3887 = vmatmul.mubr.msk.f32.gmra.mrb[118].mxu1 %vm352_vm0, %v4648_v36  ;;  %v1525_v49 = vmax.f32 %v551_v44, 0.0  ;;  %v1527_v50 = vmax.f32 %v808_v45, 0.0 }
 0x128   : > { %2185 = vmatprep.subr.bf16.mxu0 %v1782_v42  ;;  %2378 = vmatprep.subr.bf16.mxu1 %v1784_v43  ;;  %v1526_v36 = vmax.f32 %v553_v46, 0.0  ;;  %v1528_v55 = vmax.f32 %v810_v47, 0.0 }
 0x129   : > { %2186 = vmatpush1.bf16.msra.mxu0 %v1781_v34  ;;  %2379 = vmatpush1.bf16.msra.mxu1 %v1783_v41 }
 0x12a   : > { %v557_v35 = vpop.f32.mrb[14].mxu0  ;;  %v814_v48 = vpop.f32.mrb[14].mxu1  ;;  %1195 = vmatprep.mubr.f32.mxu0 %v4193_v0  ;;  %1452 = vmatprep.mubr.f32.mxu1 %v4193_v0 }
 0x12b   : > { %v1533_v51 = vmax.f32 %v557_v35, 0.0  ;;  %v1535_v52 = vmax.f32 %v814_v48, 0.0  ;;  %v559_v53 = vpop.f32.mrb[15].mxu0  ;;  %v816_v54 = vpop.f32.mrb[15].mxu1  ;;  %3856 = vmatmul.mubr.msk.f32.gmra.mrb[120].mxu0 %vm352_vm0, %v4659_v37  ;;  %3888 = vmatmul.mubr.msk.f32.gmra.mrb[120].mxu1 %vm352_vm0, %v4659_v37 }
 0x12c   : > { %v1534_v56 = vmax.f32 %v559_v53, 0.0  ;;  %v1536_v57 = vmax.f32 %v816_v54, 0.0  ;;  %1201 = vmatprep.mubr.f32.mxu0 %v4193_v0  ;;  %1458 = vmatprep.mubr.f32.mxu1 %v4193_v0 }
 0x12d   : > { %v1789_v58 = vpack.c.bf16 %v1533_v51, %v1525_v49  ;;  %v1791_v59 = vpack.c.bf16 %v1535_v52, %v1527_v50 }
 0x12e   : > { %v1790_v60 = vpack.c.bf16 %v1534_v56, %v1526_v36  ;;  %v1792_v61 = vpack.c.bf16 %v1536_v57, %v1528_v55  ;;  %v563_v62 = vpop.f32.mrb[16].mxu0  ;;  %v820_v63 = vpop.f32.mrb[16].mxu1 }
 0x12f   : > { %v565_v1 = vpop.f32.mrb[17].mxu0  ;;  %v822_v2 = vpop.f32.mrb[17].mxu1  ;;  %3857 = vmatmul.mubr.msk.f32.gmra.mrb[122].mxu0 %vm352_vm0, %v4670_v38  ;;  %3889 = vmatmul.mubr.msk.f32.gmra.mrb[122].mxu1 %vm352_vm0, %v4670_v38  ;;  %v1541_v4 = vmax.f32 %v563_v62, 0.0  ;;  %v1543_v5 = vmax.f32 %v820_v63, 0.0 }
 0x130   : > { %2187 = vmatprep.subr.bf16.mxu0 %v1790_v60  ;;  %2380 = vmatprep.subr.bf16.mxu1 %v1792_v61  ;;  %v1542_v38 = vmax.f32 %v565_v1, 0.0  ;;  %v1544_v10 = vmax.f32 %v822_v2, 0.0 }
 0x131   : > { %2188 = vmatpush1.bf16.msra.mxu0 %v1789_v58  ;;  %2381 = vmatpush1.bf16.msra.mxu1 %v1791_v59 }
 0x132   : > { %v569_v37 = vpop.f32.mrb[18].mxu0  ;;  %v826_v3 = vpop.f32.mrb[18].mxu1  ;;  %1207 = vmatprep.mubr.f32.mxu0 %v4193_v0  ;;  %1464 = vmatprep.mubr.f32.mxu1 %v4193_v0 }
 0x133   : > { %v1549_v6 = vmax.f32 %v569_v37, 0.0  ;;  %v1551_v7 = vmax.f32 %v826_v3, 0.0  ;;  %v571_v8 = vpop.f32.mrb[19].mxu0  ;;  %v828_v9 = vpop.f32.mrb[19].mxu1  ;;  %3858 = vmatmul.mubr.msk.f32.gmra.mrb[124].mxu0 %vm352_vm0, %v4681_v39  ;;  %3890 = vmatmul.mubr.msk.f32.gmra.mrb[124].mxu1 %vm352_vm0, %v4681_v39 }
 0x134   : > { %v1550_v11 = vmax.f32 %v571_v8, 0.0  ;;  %v1552_v12 = vmax.f32 %v828_v9, 0.0  ;;  %1213 = vmatprep.mubr.f32.mxu0 %v4193_v0  ;;  %1470 = vmatprep.mubr.f32.mxu1 %v4193_v0 }
 0x135   : > { %v1797_v13 = vpack.c.bf16 %v1549_v6, %v1541_v4  ;;  %v1799_v14 = vpack.c.bf16 %v1551_v7, %v1543_v5 }
 0x136   : > { %v1798_v15 = vpack.c.bf16 %v1550_v11, %v1542_v38  ;;  %v1800_v16 = vpack.c.bf16 %v1552_v12, %v1544_v10  ;;  %v575_v17 = vpop.f32.mrb[20].mxu0  ;;  %v832_v18 = vpop.f32.mrb[20].mxu1 }
 0x137   : > { %v577_v20 = vpop.f32.mrb[21].mxu0  ;;  %v834_v39 = vpop.f32.mrb[21].mxu1  ;;  %3859 = vmatmul.mubr.msk.f32.gmra.mrb[126].mxu0 %vm352_vm0, %v4692_v40  ;;  %3891 = vmatmul.mubr.msk.f32.gmra.mrb[126].mxu1 %vm352_vm0, %v4692_v40  ;;  %v1557_v22 = vmax.f32 %v575_v17, 0.0  ;;  %v1559_v23 = vmax.f32 %v832_v18, 0.0 }
 0x138   : > { %2189 = vmatprep.subr.bf16.mxu0 %v1798_v15  ;;  %2382 = vmatprep.subr.bf16.mxu1 %v1800_v16  ;;  %v1558_v28 = vmax.f32 %v577_v20, 0.0  ;;  %v1560_v29 = vmax.f32 %v834_v39, 0.0 }
 0x139   : > { %2190 = vmatpush1.bf16.msra.mxu0 %v1797_v13  ;;  %2383 = vmatpush1.bf16.msra.mxu1 %v1799_v14 }
 0x13a   : > { %v581_v0 = vpop.f32.mrb[22].mxu0  ;;  %v838_v21 = vpop.f32.mrb[22].mxu1  ;;  %2213 = vmatprep.mubr.bf16.mxu0 %v4004_v19  ;;  %2406 = vmatprep.mubr.bf16.mxu1 %v4004_v19 }
 0x13b   : > { %v1565_v24 = vmax.f32 %v581_v0, 0.0  ;;  %v1567_v25 = vmax.f32 %v838_v21, 0.0  ;;  %v583_v26 = vpop.f32.mrb[23].mxu0  ;;  %v840_v27 = vpop.f32.mrb[23].mxu1 }
 0x13c   : > { %v1566_v30 = vmax.f32 %v583_v26, 0.0  ;;  %v1568_v31 = vmax.f32 %v840_v27, 0.0 }
 0x13d   : > { %v1805_v32 = vpack.c.bf16 %v1565_v24, %v1557_v22  ;;  %v1807_v40 = vpack.c.bf16 %v1567_v25, %v1559_v23 }
 0x13e   : > { %v1806_v33 = vpack.c.bf16 %v1566_v30, %v1558_v28  ;;  %v1808_v34 = vpack.c.bf16 %v1568_v31, %v1560_v29  ;;  %v587_v41 = vpop.f32.mrb[24].mxu0  ;;  %v844_v42 = vpop.f32.mrb[24].mxu1 }
 0x13f   : > { %v589_v43 = vpop.f32.mrb[25].mxu0  ;;  %v846_v44 = vpop.f32.mrb[25].mxu1  ;;  %v1573_v47 = vmax.f32 %v587_v41, 0.0  ;;  %v1575_v35 = vmax.f32 %v844_v42, 0.0 }
 0x140   : > { %2191 = vmatprep.subr.bf16.mxu0 %v1806_v33  ;;  %2384 = vmatprep.subr.bf16.mxu1 %v1808_v34  ;;  %v1574_v52 = vmax.f32 %v589_v43, 0.0  ;;  %v1576_v53 = vmax.f32 %v846_v44, 0.0 }
 0x141   : > { %2192 = vmatpush1.bf16.msra.mxu0 %v1805_v32  ;;  %2385 = vmatpush1.bf16.msra.mxu1 %v1807_v40 }
 0x142   : > { %v593_v45 = vpop.f32.mrb[26].mxu0  ;;  %v850_v46 = vpop.f32.mrb[26].mxu1 }
 0x143   : > { %v1581_v48 = vmax.f32 %v593_v45, 0.0  ;;  %v1583_v49 = vmax.f32 %v850_v46, 0.0  ;;  %v595_v50 = vpop.f32.mrb[27].mxu0  ;;  %v852_v51 = vpop.f32.mrb[27].mxu1 }
 0x144   : > { %v1582_v54 = vmax.f32 %v595_v50, 0.0  ;;  %v1584_v36 = vmax.f32 %v852_v51, 0.0 }
 0x145   : > { %v1813_v55 = vpack.c.bf16 %v1581_v48, %v1573_v47  ;;  %v1815_v56 = vpack.c.bf16 %v1583_v49, %v1575_v35 }
 0x146   : > { %v1814_v57 = vpack.c.bf16 %v1582_v54, %v1574_v52  ;;  %v1816_v58 = vpack.c.bf16 %v1584_v36, %v1576_v53  ;;  %v599_v59 = vpop.f32.mrb[28].mxu0  ;;  %v856_v60 = vpop.f32.mrb[28].mxu1 }
 0x147   : > { %v601_v61 = vpop.f32.mrb[29].mxu0  ;;  %v858_v62 = vpop.f32.mrb[29].mxu1  ;;  %v1589_v2 = vmax.f32 %v599_v59, 0.0  ;;  %v1591_v37 = vmax.f32 %v856_v60, 0.0 }
 0x148   : > { %2193 = vmatprep.subr.bf16.mxu0 %v1814_v57  ;;  %2386 = vmatprep.subr.bf16.mxu1 %v1816_v58  ;;  %v1590_v7 = vmax.f32 %v601_v61, 0.0  ;;  %v1592_v8 = vmax.f32 %v858_v62, 0.0 }
 0x149   : > { %2194 = vmatpush1.bf16.msra.mxu0 %v1813_v55  ;;  %2387 = vmatpush1.bf16.msra.mxu1 %v1815_v56 }
 0x14a   : > { %v605_v63 = vpop.f32.mrb[30].mxu0  ;;  %v862_v1 = vpop.f32.mrb[30].mxu1 }
 0x14b   : > { %v1597_v3 = vmax.f32 %v605_v63, 0.0  ;;  %v1599_v4 = vmax.f32 %v862_v1, 0.0  ;;  %v607_v5 = vpop.f32.mrb[31].mxu0  ;;  %v864_v6 = vpop.f32.mrb[31].mxu1 }
 0x14c   : > { %v1598_v9 = vmax.f32 %v607_v5, 0.0  ;;  %v1600_v38 = vmax.f32 %v864_v6, 0.0 }
 0x14d   : > { %v1821_v10 = vpack.c.bf16 %v1597_v3, %v1589_v2  ;;  %v1823_v11 = vpack.c.bf16 %v1599_v4, %v1591_v37 }
 0x14e   : > { %v1822_v12 = vpack.c.bf16 %v1598_v9, %v1590_v7  ;;  %v1824_v13 = vpack.c.bf16 %v1600_v38, %v1592_v8  ;;  %v611_v14 = vpop.f32.mrb[32].mxu0  ;;  %v868_v15 = vpop.f32.mrb[32].mxu1  ;;  %v4194_v9 = vmov 4  }
 0x14f   : > { %v613_v16 = vpop.f32.mrb[33].mxu0  ;;  %v870_v17 = vpop.f32.mrb[33].mxu1  ;;  %v1605_v20 = vmax.f32 %v611_v14, 0.0  ;;  %v1607_v39 = vmax.f32 %v868_v15, 0.0  ;;  %3999 = vset.pattern.permute.xlu0 %v4194_v9  ;;  %4000 = vset.pattern.permute.xlu1 %v4194_v9  ;;  %v4053_v14 = vld [vmem:[%s5722_s1 + $0x10] sm:$0xff] }
 0x150   : > { %2195 = vmatprep.subr.bf16.mxu0 %v1822_v12  ;;  %2388 = vmatprep.subr.bf16.mxu1 %v1824_v13  ;;  %v1606_v24 = vmax.f32 %v613_v16, 0.0  ;;  %v1608_v25 = vmax.f32 %v870_v17, 0.0  ;;  %v4052_v13 = vld [vmem:[%s5722_s1] sm:$0xff] }
 0x151   : > { %2196 = vmatpush1.bf16.msra.mxu0 %v1821_v10  ;;  %2389 = vmatpush1.bf16.msra.mxu1 %v1823_v11 }
 0x152   : > { %v617_v18 = vpop.f32.mrb[34].mxu0  ;;  %v874_v19 = vpop.f32.mrb[34].mxu1  ;;  %1894 = vperm.xlu0 %3999, %v4052_v13   ;;  %1902 = vperm.xlu1 %4000, %v4053_v14  }
 0x153   : > { %v1613_v0 = vmax.f32 %v617_v18, 0.0  ;;  %v1615_v21 = vmax.f32 %v874_v19, 0.0  ;;  %v619_v22 = vpop.f32.mrb[35].mxu0  ;;  %v876_v23 = vpop.f32.mrb[35].mxu1  ;;  %v4054_v19 = vld [vmem:[%s5722_s1 + $0x8] sm:$0xff] }
 0x154   : > { %v1614_v26 = vmax.f32 %v619_v22, 0.0  ;;  %v1616_v27 = vmax.f32 %v876_v23, 0.0 }
 0x155   : > { %v1829_v28 = vpack.c.bf16 %v1613_v0, %v1605_v20  ;;  %v1831_v29 = vpack.c.bf16 %v1615_v21, %v1607_v39  ;;  %v4055_v20 = vld [vmem:[%s5722_s1 + $0x18] sm:$0xff] }
 0x156   : > { %v1830_v30 = vpack.c.bf16 %v1614_v26, %v1606_v24  ;;  %v1832_v31 = vpack.c.bf16 %v1616_v27, %v1608_v25  ;;  %v623_v32 = vpop.f32.mrb[36].mxu0  ;;  %v880_v40 = vpop.f32.mrb[36].mxu1  ;;  %1898 = vperm.xlu0 %3999, %v4054_v19   ;;  %1906 = vperm.xlu1 %4000, %v4055_v20  }
 0x157   : > { %v625_v33 = vpop.f32.mrb[37].mxu0  ;;  %v882_v34 = vpop.f32.mrb[37].mxu1  ;;  %v1621_v43 = vmax.f32 %v623_v32, 0.0  ;;  %v1623_v44 = vmax.f32 %v880_v40, 0.0 }
 0x158   : > { %2197 = vmatprep.subr.bf16.mxu0 %v1830_v30  ;;  %2390 = vmatprep.subr.bf16.mxu1 %v1832_v31  ;;  %v1622_v48 = vmax.f32 %v625_v33, 0.0  ;;  %v1624_v49 = vmax.f32 %v882_v34, 0.0  ;;  %v4056_v34 = vld [vmem:[%s5722_s1 + $0x20] sm:$0xff] }
 0x159   : > { %2198 = vmatpush1.bf16.msra.mxu0 %v1829_v28  ;;  %2391 = vmatpush1.bf16.msra.mxu1 %v1831_v29 }
 0x15a   : > { %v629_v41 = vpop.f32.mrb[38].mxu0  ;;  %v886_v42 = vpop.f32.mrb[38].mxu1  ;;  %1910 = vperm.xlu0 %3999, %v4056_v34  }
 0x15b   : > { %v1629_v45 = vmax.f32 %v629_v41, 0.0  ;;  %v1631_v46 = vmax.f32 %v886_v42, 0.0  ;;  %v631_v47 = vpop.f32.mrb[39].mxu0  ;;  %v888_v35 = vpop.f32.mrb[39].mxu1  ;;  %v4057_v41 = vld [vmem:[%s5722_s1 + $0x28] sm:$0xff] }
 0x15c   : > { %v1630_v50 = vmax.f32 %v631_v47, 0.0  ;;  %v1632_v51 = vmax.f32 %v888_v35, 0.0  ;;  %1914 = vperm.xlu1 %4000, %v4057_v41   ;;  %v4059_v47 = vld [vmem:[%s5722_s1 + $0x38] sm:$0xff] }
 0x15d   : > { %v1837_v52 = vpack.c.bf16 %v1629_v45, %v1621_v43  ;;  %v1839_v53 = vpack.c.bf16 %v1631_v46, %v1623_v44  ;;  %v4058_v46 = vld [vmem:[%s5722_s1 + $0x30] sm:$0xff] }
 0x15e   : > { %v1838_v54 = vpack.c.bf16 %v1630_v50, %v1622_v48  ;;  %v1840_v36 = vpack.c.bf16 %v1632_v51, %v1624_v49  ;;  %v635_v55 = vpop.f32.mrb[40].mxu0  ;;  %v892_v56 = vpop.f32.mrb[40].mxu1  ;;  %1918 = vperm.xlu0 %3999, %v4058_v46  }
 0x15f   : > { %v637_v57 = vpop.f32.mrb[41].mxu0  ;;  %v894_v58 = vpop.f32.mrb[41].mxu1  ;;  %v1637_v59 = vmax.f32 %v635_v55, 0.0  ;;  %v1639_v62 = vmax.f32 %v892_v56, 0.0 }
 0x160   : > { %2199 = vmatprep.subr.bf16.mxu0 %v1838_v54  ;;  %2392 = vmatprep.subr.bf16.mxu1 %v1840_v36  ;;  %v1638_v63 = vmax.f32 %v637_v57, 0.0  ;;  %v1640_v4 = vmax.f32 %v894_v58, 0.0 }
 0x161   : > { %2200 = vmatpush1.bf16.msra.mxu0 %v1837_v52  ;;  %2393 = vmatpush1.bf16.msra.mxu1 %v1839_v53 }
 0x162   : > { %v641_v60 = vpop.f32.mrb[42].mxu0  ;;  %v898_v61 = vpop.f32.mrb[42].mxu1  ;;  %1922 = vperm.xlu1 %4000, %v4059_v47  }
 0x163   : > { %v1645_v1 = vmax.f32 %v641_v60, 0.0  ;;  %v1647_v2 = vmax.f32 %v898_v61, 0.0  ;;  %v643_v37 = vpop.f32.mrb[43].mxu0  ;;  %v900_v3 = vpop.f32.mrb[43].mxu1 }
 0x164   : > { %v1646_v5 = vmax.f32 %v643_v37, 0.0  ;;  %v1648_v6 = vmax.f32 %v900_v3, 0.0 }
 0x165   : > { %v1845_v7 = vpack.c.bf16 %v1645_v1, %v1637_v59  ;;  %v1847_v8 = vpack.c.bf16 %v1647_v2, %v1639_v62  ;;  %v4060_v62 = vld [vmem:[%s5722_s1 + $0x40] sm:$0xff] }
 0x166   : > { %v1846_v38 = vpack.c.bf16 %v1646_v5, %v1638_v63  ;;  %v1848_v10 = vpack.c.bf16 %v1648_v6, %v1640_v4  ;;  %v647_v11 = vpop.f32.mrb[44].mxu0  ;;  %v904_v12 = vpop.f32.mrb[44].mxu1  ;;  %1926 = vperm.xlu0 %3999, %v4060_v62   ;;  %v4061_v63 = vld [vmem:[%s5722_s1 + $0x48] sm:$0xff]  ;;  %v4062_v4 = vld [vmem:[%s5722_s1 + $0x50] sm:$0xff]  ;;  %v4063_v5 = vld [vmem:[%s5722_s1 + $0x58] sm:$0xff] }
 0x167   : > { %v649_v15 = vpop.f32.mrb[45].mxu0  ;;  %v906_v16 = vpop.f32.mrb[45].mxu1  ;;  %v1653_v39 = vmax.f32 %v647_v11, 0.0  ;;  %v1655_v0 = vmax.f32 %v904_v12, 0.0  ;;  %1930 = vperm.xlu1 %4000, %v4061_v63  }
 0x168   : > { %2201 = vmatprep.subr.bf16.mxu0 %v1846_v38  ;;  %2394 = vmatprep.subr.bf16.mxu1 %v1848_v10  ;;  %v1654_v25 = vmax.f32 %v649_v15, 0.0  ;;  %v1656_v26 = vmax.f32 %v906_v16, 0.0 }
 0x169   : > { %2202 = vmatpush1.bf16.msra.mxu0 %v1845_v7  ;;  %2395 = vmatpush1.bf16.msra.mxu1 %v1847_v8 }
 0x16a   : > { %v653_v17 = vpop.f32.mrb[46].mxu0  ;;  %v910_v18 = vpop.f32.mrb[46].mxu1  ;;  %1934 = vperm.xlu0 %3999, %v4062_v4  }
 0x16b   : > { %v1661_v21 = vmax.f32 %v653_v17, 0.0  ;;  %v1663_v22 = vmax.f32 %v910_v18, 0.0  ;;  %v655_v23 = vpop.f32.mrb[47].mxu0  ;;  %v912_v24 = vpop.f32.mrb[47].mxu1  ;;  %1938 = vperm.xlu1 %4000, %v4063_v5  }
 0x16c   : > { %v1662_v27 = vmax.f32 %v655_v23, 0.0  ;;  %v1664_v28 = vmax.f32 %v912_v24, 0.0 }
 0x16d   : > { %v1853_v29 = vpack.c.bf16 %v1661_v21, %v1653_v39  ;;  %v1855_v30 = vpack.c.bf16 %v1663_v22, %v1655_v0  ;;  %v4064_v39 = vld [vmem:[%s5722_s1 + $0x60] sm:$0xff]  ;;  %v4065_v0 = vld [vmem:[%s5722_s1 + $0x68] sm:$0xff] }
 0x16e   : > { %v1854_v31 = vpack.c.bf16 %v1662_v27, %v1654_v25  ;;  %v1856_v32 = vpack.c.bf16 %v1664_v28, %v1656_v26  ;;  %v659_v40 = vpop.f32.mrb[48].mxu0  ;;  %v916_v33 = vpop.f32.mrb[48].mxu1  ;;  %1942 = vperm.xlu0 %3999, %v4064_v39   ;;  %v4066_v25 = vld [vmem:[%s5722_s1 + $0x70] sm:$0xff]  ;;  %v4067_v26 = vld [vmem:[%s5722_s1 + $0x78] sm:$0xff] }
 0x16f   : > { %v661_v42 = vpop.f32.mrb[49].mxu0  ;;  %v918_v43 = vpop.f32.mrb[49].mxu1  ;;  %v1669_v35 = vmax.f32 %v659_v40, 0.0  ;;  %v1671_v48 = vmax.f32 %v916_v33, 0.0  ;;  %1946 = vperm.xlu1 %4000, %v4065_v0  }
 0x170   : > { %2203 = vmatprep.subr.bf16.mxu0 %v1854_v31  ;;  %2396 = vmatprep.subr.bf16.mxu1 %v1856_v32  ;;  %v1670_v53 = vmax.f32 %v661_v42, 0.0  ;;  %v1672_v54 = vmax.f32 %v918_v43, 0.0 }
 0x171   : > { %2204 = vmatpush1.bf16.msra.mxu0 %v1853_v29  ;;  %2397 = vmatpush1.bf16.msra.mxu1 %v1855_v30 }
 0x172   : > { %v665_v44 = vpop.f32.mrb[50].mxu0  ;;  %v922_v45 = vpop.f32.mrb[50].mxu1  ;;  %1950 = vperm.xlu0 %3999, %v4066_v25  }
 0x173   : > { %v1677_v49 = vmax.f32 %v665_v44, 0.0  ;;  %v1679_v50 = vmax.f32 %v922_v45, 0.0  ;;  %v667_v51 = vpop.f32.mrb[51].mxu0  ;;  %v924_v52 = vpop.f32.mrb[51].mxu1  ;;  %1954 = vperm.xlu1 %4000, %v4067_v26  }
 0x174   : > { %v1678_v36 = vmax.f32 %v667_v51, 0.0  ;;  %v1680_v55 = vmax.f32 %v924_v52, 0.0 }
 0x175   : > { %v1861_v56 = vpack.c.bf16 %v1677_v49, %v1669_v35  ;;  %v1863_v57 = vpack.c.bf16 %v1679_v50, %v1671_v48  ;;  %v4068_v35 = vld [vmem:[%s5722_s1 + $0x80] sm:$0xff]  ;;  %v4069_v48 = vld [vmem:[%s5722_s1 + $0x88] sm:$0xff] }
 0x176   : > { %v1862_v58 = vpack.c.bf16 %v1678_v36, %v1670_v53  ;;  %v1864_v59 = vpack.c.bf16 %v1680_v55, %v1672_v54  ;;  %v671_v60 = vpop.f32.mrb[52].mxu0  ;;  %v928_v61 = vpop.f32.mrb[52].mxu1  ;;  %1958 = vperm.xlu0 %3999, %v4068_v35   ;;  %v4070_v53 = vld [vmem:[%s5722_s1 + $0x90] sm:$0xff]  ;;  %v4071_v54 = vld [vmem:[%s5722_s1 + $0x98] sm:$0xff] }
 0x177   : > { %v673_v1 = vpop.f32.mrb[53].mxu0  ;;  %v930_v2 = vpop.f32.mrb[53].mxu1  ;;  %v1685_v6 = vmax.f32 %v671_v60, 0.0  ;;  %v1687_v7 = vmax.f32 %v928_v61, 0.0  ;;  %1962 = vperm.xlu1 %4000, %v4069_v48  }
 0x178   : > { %2205 = vmatprep.subr.bf16.mxu0 %v1862_v58  ;;  %2398 = vmatprep.subr.bf16.mxu1 %v1864_v59  ;;  %v1686_v11 = vmax.f32 %v673_v1, 0.0  ;;  %v1688_v12 = vmax.f32 %v930_v2, 0.0 }
 0x179   : > { %2206 = vmatpush1.bf16.msra.mxu0 %v1861_v56  ;;  %2399 = vmatpush1.bf16.msra.mxu1 %v1863_v57 }
 0x17a   : > { %v677_v37 = vpop.f32.mrb[54].mxu0  ;;  %v934_v3 = vpop.f32.mrb[54].mxu1  ;;  %1966 = vperm.xlu0 %3999, %v4070_v53  }
 0x17b   : > { %v1693_v8 = vmax.f32 %v677_v37, 0.0  ;;  %v1695_v9 = vmax.f32 %v934_v3, 0.0  ;;  %v679_v38 = vpop.f32.mrb[55].mxu0  ;;  %v936_v10 = vpop.f32.mrb[55].mxu1  ;;  %1970 = vperm.xlu1 %4000, %v4071_v54  }
 0x17c   : > { %v1694_v13 = vmax.f32 %v679_v38, 0.0  ;;  %v1696_v14 = vmax.f32 %v936_v10, 0.0  ;;  %v4962_v38 = vld [vmem:[%s5723_s2] ss:$8 sps:$4 sm:$0xff]   ;;  %v4967_v10 = vld [vmem:[%s5723_s2 + $0x14] ss:$8 sps:$4 sm:$0xff]  }
 0x17d   : > { %v1869_v15 = vpack.c.bf16 %v1693_v8, %v1685_v6  ;;  %v1871_v16 = vpack.c.bf16 %v1695_v9, %v1687_v7  ;;  %v4072_v6 = vld [vmem:[%s5722_s1 + $0xa0] sm:$0xff]  ;;  %v4073_v7 = vld [vmem:[%s5722_s1 + $0xa8] sm:$0xff] }
 0x17e   : > { %v1870_v17 = vpack.c.bf16 %v1694_v13, %v1686_v11  ;;  %v1872_v18 = vpack.c.bf16 %v1696_v14, %v1688_v12  ;;  %v683_v19 = vpop.f32.mrb[56].mxu0  ;;  %v940_v20 = vpop.f32.mrb[56].mxu1  ;;  %1974 = vperm.xlu0 %3999, %v4072_v6   ;;  %v4074_v13 = vld [vmem:[%s5722_s1 + $0xb0] sm:$0xff]  ;;  %v4075_v14 = vld [vmem:[%s5722_s1 + $0xb8] sm:$0xff] }
 0x17f   : > { %v685_v21 = vpop.f32.mrb[57].mxu0  ;;  %v942_v22 = vpop.f32.mrb[57].mxu1  ;;  %v1701_v27 = vmax.f32 %v683_v19, 0.0  ;;  %v1703_v28 = vmax.f32 %v940_v20, 0.0  ;;  %1978 = vperm.xlu1 %4000, %v4073_v7  }
 0x180   : > { %2207 = vmatprep.subr.bf16.mxu0 %v1870_v17  ;;  %2400 = vmatprep.subr.bf16.mxu1 %v1872_v18  ;;  %v1702_v40 = vmax.f32 %v685_v21, 0.0  ;;  %v1704_v33 = vmax.f32 %v942_v22, 0.0 }
 0x181   : > { %2208 = vmatpush1.bf16.msra.mxu0 %v1869_v15  ;;  %2401 = vmatpush1.bf16.msra.mxu1 %v1871_v16 }
 0x182   : > { %v689_v23 = vpop.f32.mrb[58].mxu0  ;;  %v946_v24 = vpop.f32.mrb[58].mxu1  ;;  %1982 = vperm.xlu0 %3999, %v4074_v13  }
 0x183   : > { %v1709_v29 = vmax.f32 %v689_v23, 0.0  ;;  %v1711_v30 = vmax.f32 %v946_v24, 0.0  ;;  %v691_v31 = vpop.f32.mrb[59].mxu0  ;;  %v948_v32 = vpop.f32.mrb[59].mxu1  ;;  %1986 = vperm.xlu1 %4000, %v4075_v14  }
 0x184   : > { %v1710_v34 = vmax.f32 %v691_v31, 0.0  ;;  %v1712_v41 = vmax.f32 %v948_v32, 0.0 }
 0x185   : > { %v1877_v42 = vpack.c.bf16 %v1709_v29, %v1701_v27  ;;  %v1879_v43 = vpack.c.bf16 %v1711_v30, %v1703_v28  ;;  %v4076_v29 = vld [vmem:[%s5722_s1 + $0xc0] sm:$0xff]  ;;  %v4077_v30 = vld [vmem:[%s5722_s1 + $0xc8] sm:$0xff] }
 0x186   : > { %v1878_v44 = vpack.c.bf16 %v1710_v34, %v1702_v40  ;;  %v1880_v45 = vpack.c.bf16 %v1712_v41, %v1704_v33  ;;  %v695_v46 = vpop.f32.mrb[60].mxu0  ;;  %v952_v47 = vpop.f32.mrb[60].mxu1  ;;  %1990 = vperm.xlu0 %3999, %v4076_v29   ;;  %v4988_v40 = vld [vmem:[%s5723_s2 + $0x10] ss:$8 sps:$4 sm:$0xff]   ;;  %v4993_v33 = vld [vmem:[%s5723_s2 + $0x24] ss:$8 sps:$4 sm:$0xff]  }
 0x187   : > { %v697_v49 = vpop.f32.mrb[61].mxu0  ;;  %v954_v50 = vpop.f32.mrb[61].mxu1  ;;  %v1717_v36 = vmax.f32 %v695_v46, 0.0  ;;  %v1719_v55 = vmax.f32 %v952_v47, 0.0  ;;  %1994 = vperm.xlu1 %4000, %v4077_v30  }
 0x188   : > { %2209 = vmatprep.subr.bf16.mxu0 %v1878_v44  ;;  %2402 = vmatprep.subr.bf16.mxu1 %v1880_v45  ;;  %v1718_v60 = vmax.f32 %v697_v49, 0.0  ;;  %v1720_v61 = vmax.f32 %v954_v50, 0.0 }
 0x189   : > { %2210 = vmatpush1.bf16.msra.mxu0 %v1877_v42  ;;  %2403 = vmatpush1.bf16.msra.mxu1 %v1879_v43  ;;  %v4078_v42 = vld [vmem:[%s5722_s1 + $0xd0] sm:$0xff]  ;;  %v4079_v43 = vld [vmem:[%s5722_s1 + $0xd8] sm:$0xff] }
 0x18a   : > { %v701_v51 = vpop.f32.mrb[62].mxu0  ;;  %v958_v52 = vpop.f32.mrb[62].mxu1  ;;  %1998 = vperm.xlu0 %3999, %v4078_v42  }
 0x18b   : > { %v1725_v56 = vmax.f32 %v701_v51, 0.0  ;;  %v1727_v57 = vmax.f32 %v958_v52, 0.0  ;;  %v703_v58 = vpop.f32.mrb[63].mxu0  ;;  %v960_v59 = vpop.f32.mrb[63].mxu1  ;;  %2002 = vperm.xlu1 %4000, %v4079_v43  }
 0x18c   : > { %v1726_v62 = vmax.f32 %v703_v58, 0.0  ;;  %v1728_v63 = vmax.f32 %v960_v59, 0.0  ;;  %v4080_v58 = vld [vmem:[%s5722_s1 + $0xe0] sm:$0xff]  ;;  %v4081_v59 = vld [vmem:[%s5722_s1 + $0xe8] sm:$0xff] }
 0x18d   : > { %v1885_v1 = vpack.c.bf16 %v1725_v56, %v1717_v36  ;;  %v1887_v2 = vpack.c.bf16 %v1727_v57, %v1719_v55 }
 0x18e   : > { %v1886_v37 = vpack.c.bf16 %v1726_v62, %v1718_v60  ;;  %v1888_v3 = vpack.c.bf16 %v1728_v63, %v1720_v61  ;;  %v1029_v4 = vpop.f32.mrb[64].mxu0  ;;  %v1286_v5 = vpop.f32.mrb[64].mxu1  ;;  %2006 = vperm.xlu0 %3999, %v4080_v58   ;;  %v5014_v62 = vld [vmem:[%s5723_s2 + $0x20] ss:$8 sps:$4 sm:$0xff]   ;;  %v5019_v63 = vld [vmem:[%s5723_s2 + $0x34] ss:$8 sps:$4 sm:$0xff]  }
 0x18f   : > { %v1031_v8 = vpop.f32.mrb[65].mxu0  ;;  %v1288_v9 = vpop.f32.mrb[65].mxu1  ;;  %v1481_v15 = vmax.f32 %v1029_v4, 0.0  ;;  %v1483_v16 = vmax.f32 %v1286_v5, 0.0  ;;  %2010 = vperm.xlu1 %4000, %v4081_v59  }
 0x190   : > { %2211 = vmatprep.subr.bf16.mxu0 %v1886_v37  ;;  %2404 = vmatprep.subr.bf16.mxu1 %v1888_v3  ;;  %v1482_v39 = vmax.f32 %v1031_v8, 0.0  ;;  %v1484_v0 = vmax.f32 %v1288_v9, 0.0  ;;  %v4082_v37 = vld [vmem:[%s5722_s1 + $0xf0] sm:$0xff]  ;;  %v4083_v3 = vld [vmem:[%s5722_s1 + $0xf8] sm:$0xff] }
 0x191   : > { %2212 = vmatpush1.bf16.msra.mxu0 %v1885_v1  ;;  %2405 = vmatpush1.bf16.msra.mxu1 %v1887_v2 }
 0x192   : > { %v1035_v11 = vpop.f32.mrb[66].mxu0  ;;  %v1292_v12 = vpop.f32.mrb[66].mxu1  ;;  %2014 = vperm.xlu0 %3999, %v4082_v37  }
 0x193   : > { %v1489_v17 = vmax.f32 %v1035_v11, 0.0  ;;  %v1491_v18 = vmax.f32 %v1292_v12, 0.0  ;;  %v1037_v19 = vpop.f32.mrb[67].mxu0  ;;  %v1294_v20 = vpop.f32.mrb[67].mxu1  ;;  %2018 = vperm.xlu1 %4000, %v4083_v3  }
 0x194   : > { %v1490_v21 = vmax.f32 %v1037_v19, 0.0  ;;  %v1492_v22 = vmax.f32 %v1294_v20, 0.0  ;;  %2214 = vmatmul.mubr.bf16.vlgmr.msra.gmra.mrb[128].mxu0 %v4962_v38  ;;  %2407 = vmatmul.mubr.bf16.vlgmr.msra.gmra.mrb[128].mxu1 %v4962_v38 }
 0x195   : > { %v1769_v23 = vpack.c.bf16 %v1489_v17, %v1481_v15  ;;  %v1771_v24 = vpack.c.bf16 %v1491_v18, %v1483_v16  ;;  %2223 = vmatprep.mubr.bf16.mxu0 %v4967_v10  ;;  %2416 = vmatprep.mubr.bf16.mxu1 %v4967_v10 }
 0x196   : > { %v1770_v25 = vpack.c.bf16 %v1490_v21, %v1482_v39  ;;  %v1772_v26 = vpack.c.bf16 %v1492_v22, %v1484_v0  ;;  %v1041_v27 = vpop.f32.mrb[68].mxu0  ;;  %v1298_v28 = vpop.f32.mrb[68].mxu1  ;;  %v5034_v21 = vld [vmem:[%s5723_s2 + $0x30] ss:$8 sps:$4 sm:$0xff]   ;;  %v5039_v22 = vld [vmem:[%s5723_s2 + $0x44] ss:$8 sps:$4 sm:$0xff]  }
 0x197   : > { %v1043_v31 = vpop.f32.mrb[69].mxu0  ;;  %v1300_v32 = vpop.f32.mrb[69].mxu1  ;;  %v1497_v44 = vmax.f32 %v1041_v27, 0.0  ;;  %v1499_v45 = vmax.f32 %v1298_v28, 0.0 }
 0x198   : > { %2567 = vmatprep.subr.bf16.mxu0 %v1770_v25  ;;  %2760 = vmatprep.subr.bf16.mxu1 %v1772_v26  ;;  %v1498_v49 = vmax.f32 %v1043_v31, 0.0  ;;  %v1500_v50 = vmax.f32 %v1300_v32, 0.0 }
 0x199   : > { %2568 = vmatpush1.bf16.msra.mxu0 %v1769_v23  ;;  %2761 = vmatpush1.bf16.msra.mxu1 %v1771_v24 }
 0x19a   : > { %v1047_v34 = vpop.f32.mrb[70].mxu0  ;;  %v1304_v41 = vpop.f32.mrb[70].mxu1 }
 0x19b   : > { %v1505_v46 = vmax.f32 %v1047_v34, 0.0  ;;  %v1507_v47 = vmax.f32 %v1304_v41, 0.0  ;;  %v1049_v35 = vpop.f32.mrb[71].mxu0  ;;  %v1306_v48 = vpop.f32.mrb[71].mxu1 }
 0x19c   : > { %v1506_v51 = vmax.f32 %v1049_v35, 0.0  ;;  %v1508_v52 = vmax.f32 %v1306_v48, 0.0  ;;  %2224 = vmatmul.mubr.bf16.gmra.mrb[132].mxu0 %v4988_v40  ;;  %2417 = vmatmul.mubr.bf16.gmra.mrb[132].mxu1 %v4988_v40 }
 0x19d   : > { %v1777_v53 = vpack.c.bf16 %v1505_v46, %v1497_v44  ;;  %v1779_v54 = vpack.c.bf16 %v1507_v47, %v1499_v45  ;;  %2233 = vmatprep.mubr.bf16.mxu0 %v4993_v33  ;;  %2426 = vmatprep.mubr.bf16.mxu1 %v4993_v33 }
 0x19e   : > { %v1778_v36 = vpack.c.bf16 %v1506_v51, %v1498_v49  ;;  %v1780_v55 = vpack.c.bf16 %v1508_v52, %v1500_v50  ;;  %v1053_v56 = vpop.f32.mrb[72].mxu0  ;;  %v1310_v57 = vpop.f32.mrb[72].mxu1  ;;  %v5048_v49 = vld [vmem:[%s5723_s2 + $0x40] ss:$8 sps:$4 sm:$0xff]   ;;  %v5053_v50 = vld [vmem:[%s5723_s2 + $0x54] ss:$8 sps:$4 sm:$0xff]  }
 0x19f   : > { %v1055_v60 = vpop.f32.mrb[73].mxu0  ;;  %v1312_v61 = vpop.f32.mrb[73].mxu1  ;;  %v1513_v4 = vmax.f32 %v1053_v56, 0.0  ;;  %v1515_v5 = vmax.f32 %v1310_v57, 0.0 }
 0x1a0   : > { %2569 = vmatprep.subr.bf16.mxu0 %v1778_v36  ;;  %2762 = vmatprep.subr.bf16.mxu1 %v1780_v55  ;;  %v1514_v11 = vmax.f32 %v1055_v60, 0.0  ;;  %v1516_v12 = vmax.f32 %v1312_v61, 0.0 }
 0x1a1   : > { %2570 = vmatpush1.bf16.msra.mxu0 %v1777_v53  ;;  %2763 = vmatpush1.bf16.msra.mxu1 %v1779_v54 }
 0x1a2   : > { %v1059_v1 = vpop.f32.mrb[74].mxu0  ;;  %v1316_v2 = vpop.f32.mrb[74].mxu1 }
 0x1a3   : > { %v1521_v6 = vmax.f32 %v1059_v1, 0.0  ;;  %v1523_v7 = vmax.f32 %v1316_v2, 0.0  ;;  %v1061_v8 = vpop.f32.mrb[75].mxu0  ;;  %v1318_v9 = vpop.f32.mrb[75].mxu1 }
 0x1a4   : > { %v1522_v13 = vmax.f32 %v1061_v8, 0.0  ;;  %v1524_v14 = vmax.f32 %v1318_v9, 0.0  ;;  %2234 = vmatmul.mubr.bf16.gmra.mrb[136].mxu0 %v5014_v62  ;;  %2427 = vmatmul.mubr.bf16.gmra.mrb[136].mxu1 %v5014_v62  ;;  %v5062_v8 = vld [vmem:[%s5723_s2 + $0x50] ss:$8 sps:$4 sm:$0xff]   ;;  %v5067_v9 = vld [vmem:[%s5723_s2 + $0x64] ss:$8 sps:$4 sm:$0xff]  }
 0x1a5   : > { %v1785_v15 = vpack.c.bf16 %v1521_v6, %v1513_v4  ;;  %v1787_v16 = vpack.c.bf16 %v1523_v7, %v1515_v5  ;;  %2243 = vmatprep.mubr.bf16.mxu0 %v5019_v63  ;;  %2436 = vmatprep.mubr.bf16.mxu1 %v5019_v63 }
 0x1a6   : > { %v1786_v17 = vpack.c.bf16 %v1522_v13, %v1514_v11  ;;  %v1788_v18 = vpack.c.bf16 %v1524_v14, %v1516_v12  ;;  %v1065_v19 = vpop.f32.mrb[76].mxu0  ;;  %v1322_v20 = vpop.f32.mrb[76].mxu1 }
 0x1a7   : > { %v1067_v39 = vpop.f32.mrb[77].mxu0  ;;  %v1324_v0 = vpop.f32.mrb[77].mxu1  ;;  %v1529_v25 = vmax.f32 %v1065_v19, 0.0  ;;  %v1531_v26 = vmax.f32 %v1322_v20, 0.0 }
 0x1a8   : > { %2571 = vmatprep.subr.bf16.mxu0 %v1786_v17  ;;  %2764 = vmatprep.subr.bf16.mxu1 %v1788_v18  ;;  %v1530_v31 = vmax.f32 %v1067_v39, 0.0  ;;  %v1532_v32 = vmax.f32 %v1324_v0, 0.0 }
 0x1a9   : > { %2572 = vmatpush1.bf16.msra.mxu0 %v1785_v15  ;;  %2765 = vmatpush1.bf16.msra.mxu1 %v1787_v16 }
 0x1aa   : > { %v1071_v23 = vpop.f32.mrb[78].mxu0  ;;  %v1328_v24 = vpop.f32.mrb[78].mxu1 }
 0x1ab   : > { %v1537_v27 = vmax.f32 %v1071_v23, 0.0  ;;  %v1539_v28 = vmax.f32 %v1328_v24, 0.0  ;;  %v1073_v29 = vpop.f32.mrb[79].mxu0  ;;  %v1330_v30 = vpop.f32.mrb[79].mxu1 }
 0x1ac   : > { %v1538_v34 = vmax.f32 %v1073_v29, 0.0  ;;  %v1540_v41 = vmax.f32 %v1330_v30, 0.0  ;;  %2244 = vmatmul.mubr.bf16.gmra.mrb[140].mxu0 %v5034_v21  ;;  %2437 = vmatmul.mubr.bf16.gmra.mrb[140].mxu1 %v5034_v21 }
 0x1ad   : > { %v1793_v42 = vpack.c.bf16 %v1537_v27, %v1529_v25  ;;  %v1795_v43 = vpack.c.bf16 %v1539_v28, %v1531_v26  ;;  %2253 = vmatprep.mubr.bf16.mxu0 %v5039_v22  ;;  %2446 = vmatprep.mubr.bf16.mxu1 %v5039_v22 }
 0x1ae   : > { %v1794_v44 = vpack.c.bf16 %v1538_v34, %v1530_v31  ;;  %v1796_v45 = vpack.c.bf16 %v1540_v41, %v1532_v32  ;;  %v1077_v46 = vpop.f32.mrb[80].mxu0  ;;  %v1334_v47 = vpop.f32.mrb[80].mxu1  ;;  %v5076_v31 = vld [vmem:[%s5723_s2 + $0x60] ss:$8 sps:$4 sm:$0xff]   ;;  %v5081_v32 = vld [vmem:[%s5723_s2 + $0x74] ss:$8 sps:$4 sm:$0xff]  }
 0x1af   : > { %v1079_v35 = vpop.f32.mrb[81].mxu0  ;;  %v1336_v48 = vpop.f32.mrb[81].mxu1  ;;  %v1545_v53 = vmax.f32 %v1077_v46, 0.0  ;;  %v1547_v54 = vmax.f32 %v1334_v47, 0.0 }
 0x1b0   : > { %2573 = vmatprep.subr.bf16.mxu0 %v1794_v44  ;;  %2766 = vmatprep.subr.bf16.mxu1 %v1796_v45  ;;  %v1546_v58 = vmax.f32 %v1079_v35, 0.0  ;;  %v1548_v59 = vmax.f32 %v1336_v48, 0.0 }
 0x1b1   : > { %2574 = vmatpush1.bf16.msra.mxu0 %v1793_v42  ;;  %2767 = vmatpush1.bf16.msra.mxu1 %v1795_v43 }
 0x1b2   : > { %v1083_v51 = vpop.f32.mrb[82].mxu0  ;;  %v1340_v52 = vpop.f32.mrb[82].mxu1 }
 0x1b3   : > { %v1553_v36 = vmax.f32 %v1083_v51, 0.0  ;;  %v1555_v55 = vmax.f32 %v1340_v52, 0.0  ;;  %v1085_v56 = vpop.f32.mrb[83].mxu0  ;;  %v1342_v57 = vpop.f32.mrb[83].mxu1 }
 0x1b4   : > { %v1554_v60 = vmax.f32 %v1085_v56, 0.0  ;;  %v1556_v61 = vmax.f32 %v1342_v57, 0.0  ;;  %2254 = vmatmul.mubr.bf16.gmra.mrb[144].mxu0 %v5048_v49  ;;  %2447 = vmatmul.mubr.bf16.gmra.mrb[144].mxu1 %v5048_v49 }
 0x1b5   : > { %v1801_v1 = vpack.c.bf16 %v1553_v36, %v1545_v53  ;;  %v1803_v2 = vpack.c.bf16 %v1555_v55, %v1547_v54  ;;  %2263 = vmatprep.mubr.bf16.mxu0 %v5053_v50  ;;  %2456 = vmatprep.mubr.bf16.mxu1 %v5053_v50 }
 0x1b6   : > { %v1802_v37 = vpack.c.bf16 %v1554_v60, %v1546_v58  ;;  %v1804_v3 = vpack.c.bf16 %v1556_v61, %v1548_v59  ;;  %v1089_v4 = vpop.f32.mrb[84].mxu0  ;;  %v1346_v5 = vpop.f32.mrb[84].mxu1  ;;  %v5090_v60 = vld [vmem:[%s5723_s2 + $0x70] ss:$8 sps:$4 sm:$0xff]   ;;  %v5095_v61 = vld [vmem:[%s5723_s2 + $0x84] ss:$8 sps:$4 sm:$0xff]  }
 0x1b7   : > { %v1091_v6 = vpop.f32.mrb[85].mxu0  ;;  %v1348_v7 = vpop.f32.mrb[85].mxu1  ;;  %v1561_v13 = vmax.f32 %v1089_v4, 0.0  ;;  %v1563_v14 = vmax.f32 %v1346_v5, 0.0 }
 0x1b8   : > { %2575 = vmatprep.subr.bf16.mxu0 %v1802_v37  ;;  %2768 = vmatprep.subr.bf16.mxu1 %v1804_v3  ;;  %v1562_v19 = vmax.f32 %v1091_v6, 0.0  ;;  %v1564_v20 = vmax.f32 %v1348_v7, 0.0 }
 0x1b9   : > { %2576 = vmatpush1.bf16.msra.mxu0 %v1801_v1  ;;  %2769 = vmatpush1.bf16.msra.mxu1 %v1803_v2 }
 0x1ba   : > { %v1095_v11 = vpop.f32.mrb[86].mxu0  ;;  %v1352_v12 = vpop.f32.mrb[86].mxu1 }
 0x1bb   : > { %v1569_v15 = vmax.f32 %v1095_v11, 0.0  ;;  %v1571_v16 = vmax.f32 %v1352_v12, 0.0  ;;  %v1097_v17 = vpop.f32.mrb[87].mxu0  ;;  %v1354_v18 = vpop.f32.mrb[87].mxu1 }
 0x1bc   : > { %v1570_v39 = vmax.f32 %v1097_v17, 0.0  ;;  %v1572_v0 = vmax.f32 %v1354_v18, 0.0  ;;  %2264 = vmatmul.mubr.bf16.gmra.mrb[148].mxu0 %v5062_v8  ;;  %2457 = vmatmul.mubr.bf16.gmra.mrb[148].mxu1 %v5062_v8 }
 0x1bd   : > { %v1809_v23 = vpack.c.bf16 %v1569_v15, %v1561_v13  ;;  %v1811_v24 = vpack.c.bf16 %v1571_v16, %v1563_v14  ;;  %2273 = vmatprep.mubr.bf16.mxu0 %v5067_v9  ;;  %2466 = vmatprep.mubr.bf16.mxu1 %v5067_v9 }
 0x1be   : > { %v1810_v25 = vpack.c.bf16 %v1570_v39, %v1562_v19  ;;  %v1812_v26 = vpack.c.bf16 %v1572_v0, %v1564_v20  ;;  %v1101_v27 = vpop.f32.mrb[88].mxu0  ;;  %v1358_v28 = vpop.f32.mrb[88].mxu1 }
 0x1bf   : > { %v1103_v29 = vpop.f32.mrb[89].mxu0  ;;  %v1360_v30 = vpop.f32.mrb[89].mxu1  ;;  %v1577_v42 = vmax.f32 %v1101_v27, 0.0  ;;  %v1579_v43 = vmax.f32 %v1358_v28, 0.0 }
 0x1c0   : > { %2577 = vmatprep.subr.bf16.mxu0 %v1810_v25  ;;  %2770 = vmatprep.subr.bf16.mxu1 %v1812_v26  ;;  %v1578_v35 = vmax.f32 %v1103_v29, 0.0  ;;  %v1580_v48 = vmax.f32 %v1360_v30, 0.0 }
 0x1c1   : > { %2578 = vmatpush1.bf16.msra.mxu0 %v1809_v23  ;;  %2771 = vmatpush1.bf16.msra.mxu1 %v1811_v24  ;;  %v5104_v23 = vld [vmem:[%s5723_s2 + $0x80] ss:$8 sps:$4 sm:$0xff]   ;;  %v5109_v24 = vld [vmem:[%s5723_s2 + $0x94] ss:$8 sps:$4 sm:$0xff]  }
 0x1c2   : > { %v1107_v34 = vpop.f32.mrb[90].mxu0  ;;  %v1364_v41 = vpop.f32.mrb[90].mxu1 }
 0x1c3   : > { %v1585_v44 = vmax.f32 %v1107_v34, 0.0  ;;  %v1587_v45 = vmax.f32 %v1364_v41, 0.0  ;;  %v1109_v46 = vpop.f32.mrb[91].mxu0  ;;  %v1366_v47 = vpop.f32.mrb[91].mxu1 }
 0x1c4   : > { %v1586_v51 = vmax.f32 %v1109_v46, 0.0  ;;  %v1588_v52 = vmax.f32 %v1366_v47, 0.0  ;;  %2274 = vmatmul.mubr.bf16.gmra.mrb[152].mxu0 %v5076_v31  ;;  %2467 = vmatmul.mubr.bf16.gmra.mrb[152].mxu1 %v5076_v31 }
 0x1c5   : > { %v1817_v53 = vpack.c.bf16 %v1585_v44, %v1577_v42  ;;  %v1819_v54 = vpack.c.bf16 %v1587_v45, %v1579_v43  ;;  %2283 = vmatprep.mubr.bf16.mxu0 %v5081_v32  ;;  %2476 = vmatprep.mubr.bf16.mxu1 %v5081_v32 }
 0x1c6   : > { %v1818_v36 = vpack.c.bf16 %v1586_v51, %v1578_v35  ;;  %v1820_v55 = vpack.c.bf16 %v1588_v52, %v1580_v48  ;;  %v1113_v56 = vpop.f32.mrb[92].mxu0  ;;  %v1370_v57 = vpop.f32.mrb[92].mxu1 }
 0x1c7   : > { %v1115_v58 = vpop.f32.mrb[93].mxu0  ;;  %v1372_v59 = vpop.f32.mrb[93].mxu1  ;;  %v1593_v37 = vmax.f32 %v1113_v56, 0.0  ;;  %v1595_v3 = vmax.f32 %v1370_v57, 0.0 }
 0x1c8   : > { %2579 = vmatprep.subr.bf16.mxu0 %v1818_v36  ;;  %2772 = vmatprep.subr.bf16.mxu1 %v1820_v55  ;;  %v1594_v11 = vmax.f32 %v1115_v58, 0.0  ;;  %v1596_v12 = vmax.f32 %v1372_v59, 0.0  ;;  %v5118_v36 = vld [vmem:[%s5723_s2 + $0x90] ss:$8 sps:$4 sm:$0xff]   ;;  %v5123_v55 = vld [vmem:[%s5723_s2 + $0xa4] ss:$8 sps:$4 sm:$0xff]  }
 0x1c9   : > { %2580 = vmatpush1.bf16.msra.mxu0 %v1817_v53  ;;  %2773 = vmatpush1.bf16.msra.mxu1 %v1819_v54 }
 0x1ca   : > { %v1119_v1 = vpop.f32.mrb[94].mxu0  ;;  %v1376_v2 = vpop.f32.mrb[94].mxu1 }
 0x1cb   : > { %v1601_v4 = vmax.f32 %v1119_v1, 0.0  ;;  %v1603_v5 = vmax.f32 %v1376_v2, 0.0  ;;  %v1121_v6 = vpop.f32.mrb[95].mxu0  ;;  %v1378_v7 = vpop.f32.mrb[95].mxu1 }
 0x1cc   : > { %v1602_v13 = vmax.f32 %v1121_v6, 0.0  ;;  %v1604_v14 = vmax.f32 %v1378_v7, 0.0  ;;  %2284 = vmatmul.mubr.bf16.gmra.mrb[156].mxu0 %v5090_v60  ;;  %2477 = vmatmul.mubr.bf16.gmra.mrb[156].mxu1 %v5090_v60 }
 0x1cd   : > { %v1825_v15 = vpack.c.bf16 %v1601_v4, %v1593_v37  ;;  %v1827_v16 = vpack.c.bf16 %v1603_v5, %v1595_v3  ;;  %2293 = vmatprep.mubr.bf16.mxu0 %v5095_v61  ;;  %2486 = vmatprep.mubr.bf16.mxu1 %v5095_v61 }
 0x1ce   : > { %v1826_v17 = vpack.c.bf16 %v1602_v13, %v1594_v11  ;;  %v1828_v18 = vpack.c.bf16 %v1604_v14, %v1596_v12  ;;  %v1125_v19 = vpop.f32.mrb[96].mxu0  ;;  %v1382_v20 = vpop.f32.mrb[96].mxu1 }
 0x1cf   : > { %v1127_v39 = vpop.f32.mrb[97].mxu0  ;;  %v1384_v0 = vpop.f32.mrb[97].mxu1  ;;  %v1609_v27 = vmax.f32 %v1125_v19, 0.0  ;;  %v1611_v28 = vmax.f32 %v1382_v20, 0.0  ;;  %v5132_v19 = vld [vmem:[%s5723_s2 + $0xa0] ss:$8 sps:$4 sm:$0xff]  }
 0x1d0   : > { %2581 = vmatprep.subr.bf16.mxu0 %v1826_v17  ;;  %2774 = vmatprep.subr.bf16.mxu1 %v1828_v18  ;;  %v1610_v42 = vmax.f32 %v1127_v39, 0.0  ;;  %v1612_v43 = vmax.f32 %v1384_v0, 0.0  ;;  %v5137_v20 = vld [vmem:[%s5723_s2 + $0xb4] ss:$8 sps:$4 sm:$0xff]  }
 0x1d1   : > { %2582 = vmatpush1.bf16.msra.mxu0 %v1825_v15  ;;  %2775 = vmatpush1.bf16.msra.mxu1 %v1827_v16 }
 0x1d2   : > { %v1131_v25 = vpop.f32.mrb[98].mxu0  ;;  %v1388_v26 = vpop.f32.mrb[98].mxu1 }
 0x1d3   : > { %v1617_v29 = vmax.f32 %v1131_v25, 0.0  ;;  %v1619_v30 = vmax.f32 %v1388_v26, 0.0  ;;  %v1133_v34 = vpop.f32.mrb[99].mxu0  ;;  %v1390_v41 = vpop.f32.mrb[99].mxu1 }
 0x1d4   : > { %v1618_v44 = vmax.f32 %v1133_v34, 0.0  ;;  %v1620_v45 = vmax.f32 %v1390_v41, 0.0  ;;  %2294 = vmatmul.mubr.bf16.gmra.mrb[160].mxu0 %v5104_v23  ;;  %2487 = vmatmul.mubr.bf16.gmra.mrb[160].mxu1 %v5104_v23 }
 0x1d5   : > { %v1833_v46 = vpack.c.bf16 %v1617_v29, %v1609_v27  ;;  %v1835_v47 = vpack.c.bf16 %v1619_v30, %v1611_v28  ;;  %2303 = vmatprep.mubr.bf16.mxu0 %v5109_v24  ;;  %2496 = vmatprep.mubr.bf16.mxu1 %v5109_v24 }
 0x1d6   : > { %v1834_v35 = vpack.c.bf16 %v1618_v44, %v1610_v42  ;;  %v1836_v48 = vpack.c.bf16 %v1620_v45, %v1612_v43  ;;  %v1137_v51 = vpop.f32.mrb[100].mxu0  ;;  %v1394_v52 = vpop.f32.mrb[100].mxu1 }
 0x1d7   : > { %v1139_v53 = vpop.f32.mrb[101].mxu0  ;;  %v1396_v54 = vpop.f32.mrb[101].mxu1  ;;  %v1625_v58 = vmax.f32 %v1137_v51, 0.0  ;;  %v1627_v59 = vmax.f32 %v1394_v52, 0.0 }
 0x1d8   : > { %2583 = vmatprep.subr.bf16.mxu0 %v1834_v35  ;;  %2776 = vmatprep.subr.bf16.mxu1 %v1836_v48  ;;  %v1626_v4 = vmax.f32 %v1139_v53, 0.0  ;;  %v1628_v5 = vmax.f32 %v1396_v54, 0.0  ;;  %v5146_v53 = vld [vmem:[%s5723_s2 + $0xb0] ss:$8 sps:$4 sm:$0xff]   ;;  %v5151_v54 = vld [vmem:[%s5723_s2 + $0xc4] ss:$8 sps:$4 sm:$0xff]  }
 0x1d9   : > { %2584 = vmatpush1.bf16.msra.mxu0 %v1833_v46  ;;  %2777 = vmatpush1.bf16.msra.mxu1 %v1835_v47 }
 0x1da   : > { %v1143_v56 = vpop.f32.mrb[102].mxu0  ;;  %v1400_v57 = vpop.f32.mrb[102].mxu1 }
 0x1db   : > { %v1633_v1 = vmax.f32 %v1143_v56, 0.0  ;;  %v1635_v2 = vmax.f32 %v1400_v57, 0.0  ;;  %v1145_v37 = vpop.f32.mrb[103].mxu0  ;;  %v1402_v3 = vpop.f32.mrb[103].mxu1 }
 0x1dc   : > { %v1634_v6 = vmax.f32 %v1145_v37, 0.0  ;;  %v1636_v7 = vmax.f32 %v1402_v3, 0.0  ;;  %2304 = vmatmul.mubr.bf16.gmra.mrb[164].mxu0 %v5118_v36  ;;  %2497 = vmatmul.mubr.bf16.gmra.mrb[164].mxu1 %v5118_v36 }
 0x1dd   : > { %v1841_v11 = vpack.c.bf16 %v1633_v1, %v1625_v58  ;;  %v1843_v12 = vpack.c.bf16 %v1635_v2, %v1627_v59  ;;  %2313 = vmatprep.mubr.bf16.mxu0 %v5123_v55  ;;  %2506 = vmatprep.mubr.bf16.mxu1 %v5123_v55 }
 0x1de   : > { %v1842_v13 = vpack.c.bf16 %v1634_v6, %v1626_v4  ;;  %v1844_v14 = vpack.c.bf16 %v1636_v7, %v1628_v5  ;;  %v1149_v15 = vpop.f32.mrb[104].mxu0  ;;  %v1406_v16 = vpop.f32.mrb[104].mxu1 }
 0x1df   : > { %v1151_v17 = vpop.f32.mrb[105].mxu0  ;;  %v1408_v18 = vpop.f32.mrb[105].mxu1  ;;  %v1641_v25 = vmax.f32 %v1149_v15, 0.0  ;;  %v1643_v26 = vmax.f32 %v1406_v16, 0.0 }
 0x1e0   : > { %2585 = vmatprep.subr.bf16.mxu0 %v1842_v13  ;;  %2778 = vmatprep.subr.bf16.mxu1 %v1844_v14  ;;  %v1642_v34 = vmax.f32 %v1151_v17, 0.0  ;;  %v1644_v41 = vmax.f32 %v1408_v18, 0.0 }
 0x1e1   : > { %2586 = vmatpush1.bf16.msra.mxu0 %v1841_v11  ;;  %2779 = vmatpush1.bf16.msra.mxu1 %v1843_v12 }
 0x1e2   : > { %v1155_v39 = vpop.f32.mrb[106].mxu0  ;;  %v1412_v0 = vpop.f32.mrb[106].mxu1 }
 0x1e3   : > { %v1649_v27 = vmax.f32 %v1155_v39, 0.0  ;;  %v1651_v28 = vmax.f32 %v1412_v0, 0.0  ;;  %v1157_v29 = vpop.f32.mrb[107].mxu0  ;;  %v1414_v30 = vpop.f32.mrb[107].mxu1  ;;  %v5160_v39 = vld [vmem:[%s5723_s2 + $0xc0] ss:$8 sps:$4 sm:$0xff]  }
 0x1e4   : > { %v1650_v42 = vmax.f32 %v1157_v29, 0.0  ;;  %v1652_v43 = vmax.f32 %v1414_v30, 0.0  ;;  %2314 = vmatmul.mubr.bf16.gmra.mrb[168].mxu0 %v5132_v19  ;;  %2507 = vmatmul.mubr.bf16.gmra.mrb[168].mxu1 %v5132_v19  ;;  %v5165_v0 = vld [vmem:[%s5723_s2 + $0xd4] ss:$8 sps:$4 sm:$0xff]  }
 0x1e5   : > { %v1849_v44 = vpack.c.bf16 %v1649_v27, %v1641_v25  ;;  %v1851_v45 = vpack.c.bf16 %v1651_v28, %v1643_v26  ;;  %2323 = vmatprep.mubr.bf16.mxu0 %v5137_v20  ;;  %2516 = vmatprep.mubr.bf16.mxu1 %v5137_v20 }
 0x1e6   : > { %v1850_v46 = vpack.c.bf16 %v1650_v42, %v1642_v34  ;;  %v1852_v47 = vpack.c.bf16 %v1652_v43, %v1644_v41  ;;  %v1161_v35 = vpop.f32.mrb[108].mxu0  ;;  %v1418_v48 = vpop.f32.mrb[108].mxu1 }
 0x1e7   : > { %v1163_v51 = vpop.f32.mrb[109].mxu0  ;;  %v1420_v52 = vpop.f32.mrb[109].mxu1  ;;  %v1657_v58 = vmax.f32 %v1161_v35, 0.0  ;;  %v1659_v59 = vmax.f32 %v1418_v48, 0.0 }
 0x1e8   : > { %2587 = vmatprep.subr.bf16.mxu0 %v1850_v46  ;;  %2780 = vmatprep.subr.bf16.mxu1 %v1852_v47  ;;  %v1658_v4 = vmax.f32 %v1163_v51, 0.0  ;;  %v1660_v5 = vmax.f32 %v1420_v52, 0.0 }
 0x1e9   : > { %2588 = vmatpush1.bf16.msra.mxu0 %v1849_v44  ;;  %2781 = vmatpush1.bf16.msra.mxu1 %v1851_v45 }
 0x1ea   : > { %v1167_v56 = vpop.f32.mrb[110].mxu0  ;;  %v1424_v57 = vpop.f32.mrb[110].mxu1 }
 0x1eb   : > { %v1665_v1 = vmax.f32 %v1167_v56, 0.0  ;;  %v1667_v2 = vmax.f32 %v1424_v57, 0.0  ;;  %v1169_v37 = vpop.f32.mrb[111].mxu0  ;;  %v1426_v3 = vpop.f32.mrb[111].mxu1 }
 0x1ec   : > { %v1666_v6 = vmax.f32 %v1169_v37, 0.0  ;;  %v1668_v7 = vmax.f32 %v1426_v3, 0.0  ;;  %2324 = vmatmul.mubr.bf16.gmra.mrb[172].mxu0 %v5146_v53  ;;  %2517 = vmatmul.mubr.bf16.gmra.mrb[172].mxu1 %v5146_v53 }
 0x1ed   : > { %v1857_v11 = vpack.c.bf16 %v1665_v1, %v1657_v58  ;;  %v1859_v12 = vpack.c.bf16 %v1667_v2, %v1659_v59  ;;  %2333 = vmatprep.mubr.bf16.mxu0 %v5151_v54  ;;  %2526 = vmatprep.mubr.bf16.mxu1 %v5151_v54  ;;  %v5174_v58 = vld [vmem:[%s5723_s2 + $0xd0] ss:$8 sps:$4 sm:$0xff]   ;;  %v5179_v59 = vld [vmem:[%s5723_s2 + $0xe4] ss:$8 sps:$4 sm:$0xff]  }
 0x1ee   : > { %v1858_v13 = vpack.c.bf16 %v1666_v6, %v1658_v4  ;;  %v1860_v14 = vpack.c.bf16 %v1668_v7, %v1660_v5  ;;  %v1173_v15 = vpop.f32.mrb[112].mxu0  ;;  %v1430_v16 = vpop.f32.mrb[112].mxu1 }
 0x1ef   : > { %v1175_v17 = vpop.f32.mrb[113].mxu0  ;;  %v1432_v18 = vpop.f32.mrb[113].mxu1  ;;  %v1673_v27 = vmax.f32 %v1173_v15, 0.0  ;;  %v1675_v28 = vmax.f32 %v1430_v16, 0.0 }
 0x1f0   : > { %2589 = vmatprep.subr.bf16.mxu0 %v1858_v13  ;;  %2782 = vmatprep.subr.bf16.mxu1 %v1860_v14  ;;  %v1674_v42 = vmax.f32 %v1175_v17, 0.0  ;;  %v1676_v43 = vmax.f32 %v1432_v18, 0.0 }
 0x1f1   : > { %2590 = vmatpush1.bf16.msra.mxu0 %v1857_v11  ;;  %2783 = vmatpush1.bf16.msra.mxu1 %v1859_v12 }
 0x1f2   : > { %v1179_v25 = vpop.f32.mrb[114].mxu0  ;;  %v1436_v26 = vpop.f32.mrb[114].mxu1 }
 0x1f3   : > { %v1681_v29 = vmax.f32 %v1179_v25, 0.0  ;;  %v1683_v30 = vmax.f32 %v1436_v26, 0.0  ;;  %v1181_v34 = vpop.f32.mrb[115].mxu0  ;;  %v1438_v41 = vpop.f32.mrb[115].mxu1 }
 0x1f4   : > { %v1682_v44 = vmax.f32 %v1181_v34, 0.0  ;;  %v1684_v45 = vmax.f32 %v1438_v41, 0.0  ;;  %2334 = vmatmul.mubr.bf16.gmra.mrb[176].mxu0 %v5160_v39  ;;  %2527 = vmatmul.mubr.bf16.gmra.mrb[176].mxu1 %v5160_v39 }
 0x1f5   : > { %v1865_v46 = vpack.c.bf16 %v1681_v29, %v1673_v27  ;;  %v1867_v47 = vpack.c.bf16 %v1683_v30, %v1675_v28  ;;  %2343 = vmatprep.mubr.bf16.mxu0 %v5165_v0  ;;  %2536 = vmatprep.mubr.bf16.mxu1 %v5165_v0  ;;  %v5188_v29 = vld [vmem:[%s5723_s2 + $0xe0] ss:$8 sps:$4 sm:$0xff]   ;;  %v5193_v30 = vld [vmem:[%s5723_s2 + $0xf4] ss:$8 sps:$4 sm:$0xff]  }
 0x1f6   : > { %v1866_v35 = vpack.c.bf16 %v1682_v44, %v1674_v42  ;;  %v1868_v48 = vpack.c.bf16 %v1684_v45, %v1676_v43  ;;  %v1185_v51 = vpop.f32.mrb[116].mxu0  ;;  %v1442_v52 = vpop.f32.mrb[116].mxu1 }
 0x1f7   : > { %v1187_v56 = vpop.f32.mrb[117].mxu0  ;;  %v1444_v57 = vpop.f32.mrb[117].mxu1  ;;  %v1689_v37 = vmax.f32 %v1185_v51, 0.0  ;;  %v1691_v3 = vmax.f32 %v1442_v52, 0.0 }
 0x1f8   : > { %2591 = vmatprep.subr.bf16.mxu0 %v1866_v35  ;;  %2784 = vmatprep.subr.bf16.mxu1 %v1868_v48  ;;  %v1690_v11 = vmax.f32 %v1187_v56, 0.0  ;;  %v1692_v12 = vmax.f32 %v1444_v57, 0.0 }
 0x1f9   : > { %2592 = vmatpush1.bf16.msra.mxu0 %v1865_v46  ;;  %2785 = vmatpush1.bf16.msra.mxu1 %v1867_v47 }
 0x1fa   : > { %v1191_v1 = vpop.f32.mrb[118].mxu0  ;;  %v1448_v2 = vpop.f32.mrb[118].mxu1 }
 0x1fb   : > { %v1697_v4 = vmax.f32 %v1191_v1, 0.0  ;;  %v1699_v5 = vmax.f32 %v1448_v2, 0.0  ;;  %v1193_v6 = vpop.f32.mrb[119].mxu0  ;;  %v1450_v7 = vpop.f32.mrb[119].mxu1 }
 0x1fc   : > { %v1698_v13 = vmax.f32 %v1193_v6, 0.0  ;;  %v1700_v14 = vmax.f32 %v1450_v7, 0.0  ;;  %2344 = vmatmul.mubr.bf16.gmra.mrb[180].mxu0 %v5174_v58  ;;  %2537 = vmatmul.mubr.bf16.gmra.mrb[180].mxu1 %v5174_v58  ;;  %v5202_v6 = vld [vmem:[%s5723_s2 + $0xf0] ss:$8 sps:$4 sm:$0xff]  }
 0x1fd   : > { %v1873_v15 = vpack.c.bf16 %v1697_v4, %v1689_v37  ;;  %v1875_v16 = vpack.c.bf16 %v1699_v5, %v1691_v3  ;;  %2353 = vmatprep.mubr.bf16.mxu0 %v5179_v59  ;;  %2546 = vmatprep.mubr.bf16.mxu1 %v5179_v59 }
 0x1fe   : > { %v1874_v17 = vpack.c.bf16 %v1698_v13, %v1690_v11  ;;  %v1876_v18 = vpack.c.bf16 %v1700_v14, %v1692_v12  ;;  %v1197_v25 = vpop.f32.mrb[120].mxu0  ;;  %v1454_v26 = vpop.f32.mrb[120].mxu1 }
 0x1ff   : > { %v1199_v27 = vpop.f32.mrb[121].mxu0  ;;  %v1456_v28 = vpop.f32.mrb[121].mxu1  ;;  %v1705_v42 = vmax.f32 %v1197_v25, 0.0  ;;  %v1707_v43 = vmax.f32 %v1454_v26, 0.0 }
 0x200   : > { %2593 = vmatprep.subr.bf16.mxu0 %v1874_v17  ;;  %2786 = vmatprep.subr.bf16.mxu1 %v1876_v18  ;;  %v1706_v35 = vmax.f32 %v1199_v27, 0.0  ;;  %v1708_v48 = vmax.f32 %v1456_v28, 0.0 }
 0x201   : > { %2594 = vmatpush1.bf16.msra.mxu0 %v1873_v15  ;;  %2787 = vmatpush1.bf16.msra.mxu1 %v1875_v16 }
 0x202   : > { %v1203_v34 = vpop.f32.mrb[122].mxu0  ;;  %v1460_v41 = vpop.f32.mrb[122].mxu1 }
 0x203   : > { %v1713_v44 = vmax.f32 %v1203_v34, 0.0  ;;  %v1715_v45 = vmax.f32 %v1460_v41, 0.0  ;;  %v1205_v46 = vpop.f32.mrb[123].mxu0  ;;  %v1462_v47 = vpop.f32.mrb[123].mxu1  ;;  %v4084_v41 = vld [vmem:[%s5723_s2 + $0x4] ss:$8 sps:$4 sm:$0xff]  }
 0x204   : > { %v1714_v51 = vmax.f32 %v1205_v46, 0.0  ;;  %v1716_v52 = vmax.f32 %v1462_v47, 0.0  ;;  %2354 = vmatmul.mubr.bf16.gmra.mrb[184].mxu0 %v5188_v29  ;;  %2547 = vmatmul.mubr.bf16.gmra.mrb[184].mxu1 %v5188_v29 }
 0x205   : > { %v1881_v56 = vpack.c.bf16 %v1713_v44, %v1705_v42  ;;  %v1883_v57 = vpack.c.bf16 %v1715_v45, %v1707_v43  ;;  %2363 = vmatprep.mubr.bf16.mxu0 %v5193_v30  ;;  %2556 = vmatprep.mubr.bf16.mxu1 %v5193_v30 }
 0x206   : > { %v1882_v1 = vpack.c.bf16 %v1714_v51, %v1706_v35  ;;  %v1884_v2 = vpack.c.bf16 %v1716_v52, %v1708_v48  ;;  %v1209_v37 = vpop.f32.mrb[124].mxu0  ;;  %v1466_v3 = vpop.f32.mrb[124].mxu1 }
 0x207   : > { %v1211_v4 = vpop.f32.mrb[125].mxu0  ;;  %v1468_v5 = vpop.f32.mrb[125].mxu1  ;;  %v1721_v12 = vmax.f32 %v1209_v37, 0.0  ;;  %v1723_v13 = vmax.f32 %v1466_v3, 0.0 }
 0x208   : > { %2595 = vmatprep.subr.bf16.mxu0 %v1882_v1  ;;  %2788 = vmatprep.subr.bf16.mxu1 %v1884_v2  ;;  %v1722_v18 = vmax.f32 %v1211_v4, 0.0  ;;  %v1724_v25 = vmax.f32 %v1468_v5, 0.0 }
 0x209   : > { %2596 = vmatpush1.bf16.msra.mxu0 %v1881_v56  ;;  %2789 = vmatpush1.bf16.msra.mxu1 %v1883_v57 }
 0x20a   : > { %v1215_v7 = vpop.f32.mrb[126].mxu0  ;;  %v1472_v11 = vpop.f32.mrb[126].mxu1 }
 0x20b   : > { %v1729_v14 = vmax.f32 %v1215_v7, 0.0  ;;  %v1731_v15 = vmax.f32 %v1472_v11, 0.0  ;;  %v1217_v16 = vpop.f32.mrb[127].mxu0  ;;  %v1474_v17 = vpop.f32.mrb[127].mxu1 }
 0x20c   : > { %v1730_v26 = vmax.f32 %v1217_v16, 0.0  ;;  %v1732_v27 = vmax.f32 %v1474_v17, 0.0  ;;  %2364 = vmatmul.mubr.bf16.gmra.mrb[188].mxu0 %v5202_v6  ;;  %2557 = vmatmul.mubr.bf16.gmra.mrb[188].mxu1 %v5202_v6 }
 0x20d   : > { %v1889_v28 = vpack.c.bf16 %v1729_v14, %v1721_v12  ;;  %v1891_v34 = vpack.c.bf16 %v1731_v15, %v1723_v13  ;;  %2599 = vmatprep.mubr.bf16.mxu0 %v4084_v41  ;;  %2792 = vmatprep.mubr.bf16.mxu1 %v4084_v41 }
 0x20e   : > { %v1890_v42 = vpack.c.bf16 %v1730_v26, %v1722_v18  ;;  %v1892_v43 = vpack.c.bf16 %v1732_v27, %v1724_v25 }
 0x210   : > { %2597 = vmatprep.subr.bf16.mxu0 %v1890_v42  ;;  %2790 = vmatprep.subr.bf16.mxu1 %v1892_v43 }
 0x211   : > { %2598 = vmatpush1.bf16.msra.mxu0 %v1889_v28  ;;  %2791 = vmatpush1.bf16.msra.mxu1 %v1891_v34 }
 0x214   : > { %2600 = vmatmul.mubr.bf16.vlgmr.msra.gmra.mrb[192].mxu0 %v4962_v38  ;;  %2793 = vmatmul.mubr.bf16.vlgmr.msra.gmra.mrb[192].mxu1 %v4962_v38  ;;  %v5249_v38 = vpop.permute.xlu0 %1894 }
 0x215   : > { %2609 = vmatprep.mubr.bf16.mxu0 %v4967_v10  ;;  %2802 = vmatprep.mubr.bf16.mxu1 %v4967_v10 }
 0x218   : > { %v5255_v10 = vpop.permute.xlu0 %1898 }
 0x21c   : > { %2610 = vmatmul.mubr.bf16.gmra.mrb[196].mxu0 %v4988_v40  ;;  %2803 = vmatmul.mubr.bf16.gmra.mrb[196].mxu1 %v4988_v40  ;;  %v5257_v40 = vpop.permute.xlu1 %1902  ;;  %v5283_v41 = vpop.permute.xlu0 %1910 }
 0x21d   : > { %2619 = vmatprep.mubr.bf16.mxu0 %v4993_v33  ;;  %2812 = vmatprep.mubr.bf16.mxu1 %v4993_v33 }
 0x220   : > { %v5271_v48 = vpop.permute.xlu1 %1906 }
 0x224   : > { %2620 = vmatmul.mubr.bf16.gmra.mrb[200].mxu0 %v5014_v62  ;;  %2813 = vmatmul.mubr.bf16.gmra.mrb[200].mxu1 %v5014_v62 }
 0x225   : > { %2629 = vmatprep.mubr.bf16.mxu0 %v5019_v63  ;;  %2822 = vmatprep.mubr.bf16.mxu1 %v5019_v63 }
 0x22c   : > { %2630 = vmatmul.mubr.bf16.gmra.mrb[204].mxu0 %v5034_v21  ;;  %2823 = vmatmul.mubr.bf16.gmra.mrb[204].mxu1 %v5034_v21 }
 0x22d   : > { %2639 = vmatprep.mubr.bf16.mxu0 %v5039_v22  ;;  %2832 = vmatprep.mubr.bf16.mxu1 %v5039_v22 }
 0x234   : > { %2640 = vmatmul.mubr.bf16.gmra.mrb[208].mxu0 %v5048_v49  ;;  %2833 = vmatmul.mubr.bf16.gmra.mrb[208].mxu1 %v5048_v49 }
 0x235   : > { %2649 = vmatprep.mubr.bf16.mxu0 %v5053_v50  ;;  %2842 = vmatprep.mubr.bf16.mxu1 %v5053_v50 }
 0x23c   : > { %2650 = vmatmul.mubr.bf16.gmra.mrb[212].mxu0 %v5062_v8  ;;  %2843 = vmatmul.mubr.bf16.gmra.mrb[212].mxu1 %v5062_v8 }
 0x23d   : > { %2659 = vmatprep.mubr.bf16.mxu0 %v5067_v9  ;;  %2852 = vmatprep.mubr.bf16.mxu1 %v5067_v9 }
 0x244   : > { %2660 = vmatmul.mubr.bf16.gmra.mrb[216].mxu0 %v5076_v31  ;;  %2853 = vmatmul.mubr.bf16.gmra.mrb[216].mxu1 %v5076_v31 }
 0x245   : > { %2669 = vmatprep.mubr.bf16.mxu0 %v5081_v32  ;;  %2862 = vmatprep.mubr.bf16.mxu1 %v5081_v32 }
 0x24c   : > { %2670 = vmatmul.mubr.bf16.gmra.mrb[220].mxu0 %v5090_v60  ;;  %2863 = vmatmul.mubr.bf16.gmra.mrb[220].mxu1 %v5090_v60 }
 0x24d   : > { %2679 = vmatprep.mubr.bf16.mxu0 %v5095_v61  ;;  %2872 = vmatprep.mubr.bf16.mxu1 %v5095_v61 }
 0x254   : > { %2680 = vmatmul.mubr.bf16.gmra.mrb[224].mxu0 %v5104_v23  ;;  %2873 = vmatmul.mubr.bf16.gmra.mrb[224].mxu1 %v5104_v23 }
 0x255   : > { %2689 = vmatprep.mubr.bf16.mxu0 %v5109_v24  ;;  %2882 = vmatprep.mubr.bf16.mxu1 %v5109_v24 }
 0x25c   : > { %2690 = vmatmul.mubr.bf16.gmra.mrb[228].mxu0 %v5118_v36  ;;  %2883 = vmatmul.mubr.bf16.gmra.mrb[228].mxu1 %v5118_v36 }
 0x25d   : > { %2699 = vmatprep.mubr.bf16.mxu0 %v5123_v55  ;;  %2892 = vmatprep.mubr.bf16.mxu1 %v5123_v55 }
 0x264   : > { %2700 = vmatmul.mubr.bf16.gmra.mrb[232].mxu0 %v5132_v19  ;;  %2893 = vmatmul.mubr.bf16.gmra.mrb[232].mxu1 %v5132_v19 }
 0x265   : > { %2709 = vmatprep.mubr.bf16.mxu0 %v5137_v20  ;;  %2902 = vmatprep.mubr.bf16.mxu1 %v5137_v20 }
 0x267   : > { %v2215_v33 = vpop.f32.mrb[128].mxu0  ;;  %v2408_v62 = vpop.f32.mrb[128].mxu1 }
 0x268   : > { %v2216_v63 = vadd.f32 %v2215_v33, %v5249_v38  ;;  %v2409_v21 = vadd.f32 %v2408_v62, %v5249_v38  ;;  %v2217_v22 = vpop.f32.mrb[129].mxu0  ;;  %v2410_v49 = vpop.f32.mrb[129].mxu1 }
 0x269   : > { %v2218_v50 = vadd.f32 %v2217_v22, %v5249_v38  ;;  %v2411_v8 = vadd.f32 %v2410_v49, %v5249_v38  ;;  %v2219_v9 = vpop.f32.mrb[130].mxu0  ;;  %v2412_v31 = vpop.f32.mrb[130].mxu1 }
 0x26a   : > { %v2221_v32 = vpop.f32.mrb[131].mxu0  ;;  %v2414_v60 = vpop.f32.mrb[131].mxu1  ;;  %v2220_v61 = vadd.f32 %v2219_v9, %v5255_v10  ;;  %v2413_v23 = vadd.f32 %v2412_v31, %v5255_v10  ;;  %v2953_v55 = vmax.f32 %v2216_v63, 0.0  ;;  %v2955_v19 = vmax.f32 %v2409_v21, 0.0 }
 0x26b   : > { %v2222_v24 = vadd.f32 %v2221_v32, %v5255_v10  ;;  %v2415_v36 = vadd.f32 %v2414_v60, %v5255_v10  ;;  %v2954_v45 = vmax.f32 %v2218_v50, 0.0  ;;  %v2956_v46 = vmax.f32 %v2411_v8, 0.0  ;;  %v5287_v33 = vpop.permute.xlu1 %1914 }
 0x26c   : > { %2710 = vmatmul.mubr.bf16.gmra.mrb[236].mxu0 %v5146_v53  ;;  %2903 = vmatmul.mubr.bf16.gmra.mrb[236].mxu1 %v5146_v53  ;;  %v2961_v20 = vmax.f32 %v2220_v61, 0.0  ;;  %v2963_v44 = vmax.f32 %v2413_v23, 0.0 }
 0x26d   : > { %v2962_v47 = vmax.f32 %v2222_v24, 0.0  ;;  %v2964_v35 = vmax.f32 %v2415_v36, 0.0  ;;  %2719 = vmatprep.mubr.bf16.mxu0 %v5151_v54  ;;  %2912 = vmatprep.mubr.bf16.mxu1 %v5151_v54 }
 0x26e   : > { %v3210_v51 = vpack.c.bf16 %v2961_v20, %v2953_v55  ;;  %v3212_v52 = vpack.c.bf16 %v2963_v44, %v2955_v19 }
 0x26f   : > { %v3211_v56 = vpack.c.bf16 %v2962_v47, %v2954_v45  ;;  %v3213_v57 = vpack.c.bf16 %v2964_v35, %v2956_v46  ;;  %v2225_v1 = vpop.f32.mrb[132].mxu0  ;;  %v2418_v2 = vpop.f32.mrb[132].mxu1 }
 0x270   : > { %v2226_v53 = vadd.f32 %v2225_v1, %v5257_v40  ;;  %v2419_v37 = vadd.f32 %v2418_v2, %v5257_v40  ;;  %v2227_v3 = vpop.f32.mrb[133].mxu0  ;;  %v2420_v4 = vpop.f32.mrb[133].mxu1 }
 0x271   : > { %v2228_v5 = vadd.f32 %v2227_v3, %v5257_v40  ;;  %v2421_v7 = vadd.f32 %v2420_v4, %v5257_v40  ;;  %v2229_v11 = vpop.f32.mrb[134].mxu0  ;;  %v2422_v54 = vpop.f32.mrb[134].mxu1  ;;  %3349 = vmatprep.subr.bf16.mxu0 %v3211_v56  ;;  %3390 = vmatprep.subr.bf16.mxu1 %v3213_v57 }
 0x272   : > { %v2231_v12 = vpop.f32.mrb[135].mxu0  ;;  %v2424_v13 = vpop.f32.mrb[135].mxu1  ;;  %3350 = vmatpush1.bf16.msra.mxu0 %v3210_v51  ;;  %3391 = vmatpush1.bf16.msra.mxu1 %v3212_v52  ;;  %v2230_v14 = vadd.f32 %v2229_v11, %v5271_v48  ;;  %v2423_v15 = vadd.f32 %v2422_v54, %v5271_v48  ;;  %v2969_v18 = vmax.f32 %v2226_v53, 0.0  ;;  %v2971_v25 = vmax.f32 %v2419_v37, 0.0 }
 0x273   : > { %v2232_v16 = vadd.f32 %v2231_v12, %v5271_v48  ;;  %v2425_v17 = vadd.f32 %v2424_v13, %v5271_v48  ;;  %v2970_v28 = vmax.f32 %v2228_v5, 0.0  ;;  %v2972_v34 = vmax.f32 %v2421_v7, 0.0  ;;  %v5299_v35 = vpop.permute.xlu0 %1918  ;;  %v5303_v1 = vpop.permute.xlu1 %1922 }
 0x274   : > { %2720 = vmatmul.mubr.bf16.gmra.mrb[240].mxu0 %v5160_v39  ;;  %2913 = vmatmul.mubr.bf16.gmra.mrb[240].mxu1 %v5160_v39  ;;  %v2977_v26 = vmax.f32 %v2230_v14, 0.0  ;;  %v2979_v27 = vmax.f32 %v2423_v15, 0.0 }
 0x275   : > { %v2978_v42 = vmax.f32 %v2232_v16, 0.0  ;;  %v2980_v43 = vmax.f32 %v2425_v17, 0.0  ;;  %2729 = vmatprep.mubr.bf16.mxu0 %v5165_v0  ;;  %2922 = vmatprep.mubr.bf16.mxu1 %v5165_v0 }
 0x276   : > { %v3218_v62 = vpack.c.bf16 %v2977_v26, %v2969_v18  ;;  %v3220_v63 = vpack.c.bf16 %v2979_v27, %v2971_v25 }
 0x277   : > { %v3219_v21 = vpack.c.bf16 %v2978_v42, %v2970_v28  ;;  %v3221_v22 = vpack.c.bf16 %v2980_v43, %v2972_v34  ;;  %v2235_v49 = vpop.f32.mrb[136].mxu0  ;;  %v2428_v39 = vpop.f32.mrb[136].mxu1 }
 0x278   : > { %v2236_v50 = vadd.f32 %v2235_v49, %v5283_v41  ;;  %v2429_v8 = vadd.f32 %v2428_v39, %v5283_v41  ;;  %v2237_v9 = vpop.f32.mrb[137].mxu0  ;;  %v2430_v31 = vpop.f32.mrb[137].mxu1 }
 0x279   : > { %v2238_v32 = vadd.f32 %v2237_v9, %v5283_v41  ;;  %v2431_v60 = vadd.f32 %v2430_v31, %v5283_v41  ;;  %v2239_v61 = vpop.f32.mrb[138].mxu0  ;;  %v2432_v0 = vpop.f32.mrb[138].mxu1  ;;  %3351 = vmatprep.subr.bf16.mxu0 %v3219_v21  ;;  %3392 = vmatprep.subr.bf16.mxu1 %v3221_v22 }
 0x27a   : > { %v2241_v23 = vpop.f32.mrb[139].mxu0  ;;  %v2434_v24 = vpop.f32.mrb[139].mxu1  ;;  %3352 = vmatpush1.bf16.msra.mxu0 %v3218_v62  ;;  %3393 = vmatpush1.bf16.msra.mxu1 %v3220_v63  ;;  %v2240_v36 = vadd.f32 %v2239_v61, %v5287_v33  ;;  %v2433_v55 = vadd.f32 %v2432_v0, %v5287_v33  ;;  %v2985_v44 = vmax.f32 %v2236_v50, 0.0  ;;  %v2987_v45 = vmax.f32 %v2429_v8, 0.0  ;;  %v5324_v8 = vld [vmem:[%s5724_s3] sm:$0xff] }
 0x27b   : > { %v2242_v19 = vadd.f32 %v2241_v23, %v5287_v33  ;;  %v2435_v20 = vadd.f32 %v2434_v24, %v5287_v33  ;;  %v2986_v51 = vmax.f32 %v2238_v32, 0.0  ;;  %v2988_v52 = vmax.f32 %v2431_v60, 0.0  ;;  %v5315_v43 = vpop.permute.xlu0 %1926  ;;  %v5319_v50 = vpop.permute.xlu1 %1930 }
 0x27c   : > { %2730 = vmatmul.mubr.bf16.gmra.mrb[244].mxu0 %v5174_v58  ;;  %2923 = vmatmul.mubr.bf16.gmra.mrb[244].mxu1 %v5174_v58  ;;  %v2993_v46 = vmax.f32 %v2240_v36, 0.0  ;;  %v2995_v47 = vmax.f32 %v2433_v55, 0.0 }
 0x27d   : > { %v2994_v56 = vmax.f32 %v2242_v19, 0.0  ;;  %v2996_v57 = vmax.f32 %v2435_v20, 0.0  ;;  %2739 = vmatprep.mubr.bf16.mxu0 %v5179_v59  ;;  %2932 = vmatprep.mubr.bf16.mxu1 %v5179_v59  ;;  %v5332_v19 = vcombine.high %v5324_v8, %v5324_v8 }
 0x27e   : > { %v3226_v2 = vpack.c.bf16 %v2993_v46, %v2985_v44  ;;  %v3228_v53 = vpack.c.bf16 %v2995_v47, %v2987_v45 }
 0x27f   : > { %v3227_v37 = vpack.c.bf16 %v2994_v56, %v2986_v51  ;;  %v3229_v3 = vpack.c.bf16 %v2996_v57, %v2988_v52  ;;  %v2245_v4 = vpop.f32.mrb[140].mxu0  ;;  %v2438_v58 = vpop.f32.mrb[140].mxu1 }
 0x280   : > { %v2246_v5 = vadd.f32 %v2245_v4, %v5299_v35  ;;  %v2439_v7 = vadd.f32 %v2438_v58, %v5299_v35  ;;  %v2247_v11 = vpop.f32.mrb[141].mxu0  ;;  %v2440_v54 = vpop.f32.mrb[141].mxu1 }
 0x281   : > { %v2248_v12 = vadd.f32 %v2247_v11, %v5299_v35  ;;  %v2441_v13 = vadd.f32 %v2440_v54, %v5299_v35  ;;  %v2249_v14 = vpop.f32.mrb[142].mxu0  ;;  %v2442_v59 = vpop.f32.mrb[142].mxu1  ;;  %3353 = vmatprep.subr.bf16.mxu0 %v3227_v37  ;;  %3394 = vmatprep.subr.bf16.mxu1 %v3229_v3 }
 0x282   : > { %v2250_v15 = vadd.f32 %v2249_v14, %v5303_v1  ;;  %v2443_v16 = vadd.f32 %v2442_v59, %v5303_v1  ;;  %v2251_v17 = vpop.f32.mrb[143].mxu0  ;;  %v2444_v18 = vpop.f32.mrb[143].mxu1  ;;  %3354 = vmatpush1.bf16.msra.mxu0 %v3226_v2  ;;  %3395 = vmatpush1.bf16.msra.mxu1 %v3228_v53  ;;  %v3001_v27 = vmax.f32 %v2246_v5, 0.0  ;;  %v3003_v28 = vmax.f32 %v2439_v7, 0.0 }
 0x283   : > { %v2252_v25 = vadd.f32 %v2251_v17, %v5303_v1  ;;  %v2445_v26 = vadd.f32 %v2444_v18, %v5303_v1  ;;  %v3002_v62 = vmax.f32 %v2248_v12, 0.0  ;;  %v3004_v63 = vmax.f32 %v2441_v13, 0.0  ;;  %v5340_v53 = vpop.permute.xlu0 %1934  ;;  %v5344_v5 = vpop.permute.xlu1 %1938 }
 0x284   : > { %v3009_v34 = vmax.f32 %v2250_v15, 0.0  ;;  %v3011_v42 = vmax.f32 %v2443_v16, 0.0  ;;  %2740 = vmatmul.mubr.bf16.gmra.mrb[248].mxu0 %v5188_v29  ;;  %2933 = vmatmul.mubr.bf16.gmra.mrb[248].mxu1 %v5188_v29 }
 0x285   : > { %v3010_v21 = vmax.f32 %v2252_v25, 0.0  ;;  %v3012_v22 = vmax.f32 %v2445_v26, 0.0  ;;  %2749 = vmatprep.mubr.bf16.mxu0 %v5193_v30  ;;  %2942 = vmatprep.mubr.bf16.mxu1 %v5193_v30 }
 0x286   : > { %v3234_v49 = vpack.c.bf16 %v3009_v34, %v3001_v27  ;;  %v3236_v39 = vpack.c.bf16 %v3011_v42, %v3003_v28 }
 0x287   : > { %v3235_v29 = vpack.c.bf16 %v3010_v21, %v3002_v62  ;;  %v3237_v9 = vpack.c.bf16 %v3012_v22, %v3004_v63  ;;  %v2255_v31 = vpop.f32.mrb[144].mxu0  ;;  %v2448_v32 = vpop.f32.mrb[144].mxu1 }
 0x288   : > { %v2256_v60 = vadd.f32 %v2255_v31, %v5315_v43  ;;  %v2449_v61 = vadd.f32 %v2448_v32, %v5315_v43  ;;  %v2257_v0 = vpop.f32.mrb[145].mxu0  ;;  %v2450_v23 = vpop.f32.mrb[145].mxu1 }
 0x289   : > { %v2258_v30 = vadd.f32 %v2257_v0, %v5315_v43  ;;  %v2451_v24 = vadd.f32 %v2450_v23, %v5315_v43  ;;  %v2259_v36 = vpop.f32.mrb[146].mxu0  ;;  %v2452_v55 = vpop.f32.mrb[146].mxu1  ;;  %3355 = vmatprep.subr.bf16.mxu0 %v3235_v29  ;;  %3396 = vmatprep.subr.bf16.mxu1 %v3237_v9 }
 0x28a   : > { %v2260_v20 = vadd.f32 %v2259_v36, %v5319_v50  ;;  %v2453_v44 = vadd.f32 %v2452_v55, %v5319_v50  ;;  %v2261_v45 = vpop.f32.mrb[147].mxu0  ;;  %v2454_v46 = vpop.f32.mrb[147].mxu1  ;;  %3356 = vmatpush1.bf16.msra.mxu0 %v3234_v49  ;;  %3397 = vmatpush1.bf16.msra.mxu1 %v3236_v39  ;;  %v3017_v52 = vmax.f32 %v2256_v60, 0.0  ;;  %v3019_v56 = vmax.f32 %v2449_v61, 0.0 }
 0x28b   : > { %v2262_v47 = vadd.f32 %v2261_v45, %v5319_v50  ;;  %v2455_v51 = vadd.f32 %v2454_v46, %v5319_v50  ;;  %v3018_v37 = vmax.f32 %v2258_v30, 0.0  ;;  %v3020_v3 = vmax.f32 %v2451_v24, 0.0  ;;  %v5354_v29 = vpop.permute.xlu0 %1942  ;;  %v5356_v61 = vpop.permute.xlu1 %1946 }
 0x28c   : > { %v3025_v57 = vmax.f32 %v2260_v20, 0.0  ;;  %v3027_v2 = vmax.f32 %v2453_v44, 0.0  ;;  %2750 = vmatmul.mubr.bf16.gmra.mrb[252].mxu0 %v5202_v6  ;;  %2943 = vmatmul.mubr.bf16.gmra.mrb[252].mxu1 %v5202_v6 }
 0x28d   : > { %v3026_v4 = vmax.f32 %v2262_v47, 0.0  ;;  %v3028_v58 = vmax.f32 %v2455_v51, 0.0  ;;  %3381 = vmatprep.mubr.bf16.mxu0 %v5332_v19  ;;  %3422 = vmatprep.mubr.bf16.mxu1 %v5332_v19 }
 0x28e   : > { %v3242_v7 = vpack.c.bf16 %v3025_v57, %v3017_v52  ;;  %v3244_v11 = vpack.c.bf16 %v3027_v2, %v3019_v56 }
 0x28f   : > { %v3243_v54 = vpack.c.bf16 %v3026_v4, %v3018_v37  ;;  %v3245_v12 = vpack.c.bf16 %v3028_v58, %v3020_v3  ;;  %v2265_v13 = vpop.f32.mrb[148].mxu0  ;;  %v2458_v14 = vpop.f32.mrb[148].mxu1 }
 0x290   : > { %v2266_v6 = vadd.f32 %v2265_v13, %v5340_v53  ;;  %v2459_v59 = vadd.f32 %v2458_v14, %v5340_v53  ;;  %v2267_v15 = vpop.f32.mrb[149].mxu0  ;;  %v2460_v16 = vpop.f32.mrb[149].mxu1 }
 0x291   : > { %v2268_v17 = vadd.f32 %v2267_v15, %v5340_v53  ;;  %v2461_v18 = vadd.f32 %v2460_v16, %v5340_v53  ;;  %v2269_v25 = vpop.f32.mrb[150].mxu0  ;;  %v2462_v26 = vpop.f32.mrb[150].mxu1  ;;  %3357 = vmatprep.subr.bf16.mxu0 %v3243_v54  ;;  %3398 = vmatprep.subr.bf16.mxu1 %v3245_v12 }
 0x292   : > { %v2270_v27 = vadd.f32 %v2269_v25, %v5344_v5  ;;  %v2463_v28 = vadd.f32 %v2462_v26, %v5344_v5  ;;  %v2271_v34 = vpop.f32.mrb[151].mxu0  ;;  %v2464_v42 = vpop.f32.mrb[151].mxu1  ;;  %3358 = vmatpush1.bf16.msra.mxu0 %v3242_v7  ;;  %3399 = vmatpush1.bf16.msra.mxu1 %v3244_v11  ;;  %v3033_v21 = vmax.f32 %v2266_v6, 0.0  ;;  %v3035_v22 = vmax.f32 %v2459_v59, 0.0 }
 0x293   : > { %v2272_v62 = vadd.f32 %v2271_v34, %v5344_v5  ;;  %v2465_v63 = vadd.f32 %v2464_v42, %v5344_v5  ;;  %v3034_v9 = vmax.f32 %v2268_v17, 0.0  ;;  %v3036_v31 = vmax.f32 %v2461_v18, 0.0  ;;  %v5366_v13 = vpop.permute.xlu0 %1950  ;;  %v5368_v16 = vpop.permute.xlu1 %1954 }
 0x294   : > { %v3041_v49 = vmax.f32 %v2270_v27, 0.0  ;;  %v3043_v39 = vmax.f32 %v2463_v28, 0.0 }
 0x295   : > { %v3042_v32 = vmax.f32 %v2272_v62, 0.0  ;;  %v3044_v60 = vmax.f32 %v2465_v63, 0.0 }
 0x296   : > { %v3250_v0 = vpack.c.bf16 %v3041_v49, %v3033_v21  ;;  %v3252_v23 = vpack.c.bf16 %v3043_v39, %v3035_v22 }
 0x297   : > { %v3251_v30 = vpack.c.bf16 %v3042_v32, %v3034_v9  ;;  %v3253_v24 = vpack.c.bf16 %v3044_v60, %v3036_v31  ;;  %v2275_v36 = vpop.f32.mrb[152].mxu0  ;;  %v2468_v55 = vpop.f32.mrb[152].mxu1 }
 0x298   : > { %v2276_v20 = vadd.f32 %v2275_v36, %v5354_v29  ;;  %v2469_v44 = vadd.f32 %v2468_v55, %v5354_v29  ;;  %v2277_v45 = vpop.f32.mrb[153].mxu0  ;;  %v2470_v46 = vpop.f32.mrb[153].mxu1 }
 0x299   : > { %v2278_v47 = vadd.f32 %v2277_v45, %v5354_v29  ;;  %v2471_v51 = vadd.f32 %v2470_v46, %v5354_v29  ;;  %v2279_v52 = vpop.f32.mrb[154].mxu0  ;;  %v2472_v56 = vpop.f32.mrb[154].mxu1  ;;  %3359 = vmatprep.subr.bf16.mxu0 %v3251_v30  ;;  %3400 = vmatprep.subr.bf16.mxu1 %v3253_v24 }
 0x29a   : > { %v2280_v57 = vadd.f32 %v2279_v52, %v5356_v61  ;;  %v2473_v2 = vadd.f32 %v2472_v56, %v5356_v61  ;;  %v2281_v37 = vpop.f32.mrb[155].mxu0  ;;  %v2474_v3 = vpop.f32.mrb[155].mxu1  ;;  %3360 = vmatpush1.bf16.msra.mxu0 %v3250_v0  ;;  %3401 = vmatpush1.bf16.msra.mxu1 %v3252_v23  ;;  %v3049_v7 = vmax.f32 %v2276_v20, 0.0  ;;  %v3051_v11 = vmax.f32 %v2469_v44, 0.0 }
 0x29b   : > { %v2282_v4 = vadd.f32 %v2281_v37, %v5356_v61  ;;  %v2475_v58 = vadd.f32 %v2474_v3, %v5356_v61  ;;  %v3050_v14 = vmax.f32 %v2278_v47, 0.0  ;;  %v3052_v6 = vmax.f32 %v2471_v51, 0.0  ;;  %v5378_v20 = vpop.permute.xlu0 %1958  ;;  %v5380_v51 = vpop.permute.xlu1 %1962 }
 0x29c   : > { %v3057_v54 = vmax.f32 %v2280_v57, 0.0  ;;  %v3059_v12 = vmax.f32 %v2473_v2, 0.0 }
 0x29d   : > { %v3058_v59 = vmax.f32 %v2282_v4, 0.0  ;;  %v3060_v15 = vmax.f32 %v2475_v58, 0.0 }
 0x29e   : > { %v3258_v17 = vpack.c.bf16 %v3057_v54, %v3049_v7  ;;  %v3260_v18 = vpack.c.bf16 %v3059_v12, %v3051_v11 }
 0x29f   : > { %v3259_v25 = vpack.c.bf16 %v3058_v59, %v3050_v14  ;;  %v3261_v26 = vpack.c.bf16 %v3060_v15, %v3052_v6  ;;  %v2285_v27 = vpop.f32.mrb[156].mxu0  ;;  %v2478_v28 = vpop.f32.mrb[156].mxu1 }
 0x2a0   : > { %v2286_v34 = vadd.f32 %v2285_v27, %v5366_v13  ;;  %v2479_v42 = vadd.f32 %v2478_v28, %v5366_v13  ;;  %v2287_v62 = vpop.f32.mrb[157].mxu0  ;;  %v2480_v63 = vpop.f32.mrb[157].mxu1 }
 0x2a1   : > { %v2288_v21 = vadd.f32 %v2287_v62, %v5366_v13  ;;  %v2481_v22 = vadd.f32 %v2480_v63, %v5366_v13  ;;  %v2289_v49 = vpop.f32.mrb[158].mxu0  ;;  %v2482_v39 = vpop.f32.mrb[158].mxu1  ;;  %3361 = vmatprep.subr.bf16.mxu0 %v3259_v25  ;;  %3402 = vmatprep.subr.bf16.mxu1 %v3261_v26 }
 0x2a2   : > { %v2290_v9 = vadd.f32 %v2289_v49, %v5368_v16  ;;  %v2483_v31 = vadd.f32 %v2482_v39, %v5368_v16  ;;  %v2291_v32 = vpop.f32.mrb[159].mxu0  ;;  %v2484_v60 = vpop.f32.mrb[159].mxu1  ;;  %3362 = vmatpush1.bf16.msra.mxu0 %v3258_v17  ;;  %3403 = vmatpush1.bf16.msra.mxu1 %v3260_v18  ;;  %v3065_v30 = vmax.f32 %v2286_v34, 0.0  ;;  %v3067_v24 = vmax.f32 %v2479_v42, 0.0 }
 0x2a3   : > { %v2292_v0 = vadd.f32 %v2291_v32, %v5368_v16  ;;  %v2485_v23 = vadd.f32 %v2484_v60, %v5368_v16  ;;  %v3066_v44 = vmax.f32 %v2288_v21, 0.0  ;;  %v3068_v45 = vmax.f32 %v2481_v22, 0.0  ;;  %v5390_v62 = vpop.permute.xlu0 %1966  ;;  %v5392_v39 = vpop.permute.xlu1 %1970 }
 0x2a4   : > { %v3073_v36 = vmax.f32 %v2290_v9, 0.0  ;;  %v3075_v55 = vmax.f32 %v2483_v31, 0.0 }
 0x2a5   : > { %v3074_v46 = vmax.f32 %v2292_v0, 0.0  ;;  %v3076_v47 = vmax.f32 %v2485_v23, 0.0 }
 0x2a6   : > { %v3266_v52 = vpack.c.bf16 %v3073_v36, %v3065_v30  ;;  %v3268_v56 = vpack.c.bf16 %v3075_v55, %v3067_v24 }
 0x2a7   : > { %v3267_v57 = vpack.c.bf16 %v3074_v46, %v3066_v44  ;;  %v3269_v2 = vpack.c.bf16 %v3076_v47, %v3068_v45  ;;  %v2295_v37 = vpop.f32.mrb[160].mxu0  ;;  %v2488_v3 = vpop.f32.mrb[160].mxu1 }
 0x2a8   : > { %v2296_v4 = vadd.f32 %v2295_v37, %v5378_v20  ;;  %v2489_v58 = vadd.f32 %v2488_v3, %v5378_v20  ;;  %v2297_v7 = vpop.f32.mrb[161].mxu0  ;;  %v2490_v11 = vpop.f32.mrb[161].mxu1 }
 0x2a9   : > { %v2298_v54 = vadd.f32 %v2297_v7, %v5378_v20  ;;  %v2491_v12 = vadd.f32 %v2490_v11, %v5378_v20  ;;  %v2299_v14 = vpop.f32.mrb[162].mxu0  ;;  %v2492_v6 = vpop.f32.mrb[162].mxu1  ;;  %3363 = vmatprep.subr.bf16.mxu0 %v3267_v57  ;;  %3404 = vmatprep.subr.bf16.mxu1 %v3269_v2 }
 0x2aa   : > { %v2300_v59 = vadd.f32 %v2299_v14, %v5380_v51  ;;  %v2493_v15 = vadd.f32 %v2492_v6, %v5380_v51  ;;  %v2301_v17 = vpop.f32.mrb[163].mxu0  ;;  %v2494_v18 = vpop.f32.mrb[163].mxu1  ;;  %3364 = vmatpush1.bf16.msra.mxu0 %v3266_v52  ;;  %3405 = vmatpush1.bf16.msra.mxu1 %v3268_v56  ;;  %v3081_v27 = vmax.f32 %v2296_v4, 0.0  ;;  %v3083_v28 = vmax.f32 %v2489_v58, 0.0 }
 0x2ab   : > { %v2302_v25 = vadd.f32 %v2301_v17, %v5380_v51  ;;  %v2495_v26 = vadd.f32 %v2494_v18, %v5380_v51  ;;  %v3082_v63 = vmax.f32 %v2298_v54, 0.0  ;;  %v3084_v21 = vmax.f32 %v2491_v12, 0.0  ;;  %v5402_v54 = vpop.permute.xlu0 %1974 }
 0x2ac   : > { %v3089_v34 = vmax.f32 %v2300_v59, 0.0  ;;  %v3091_v42 = vmax.f32 %v2493_v15, 0.0  ;;  %v5404_v15 = vpop.permute.xlu1 %1978 }
 0x2ad   : > { %v3090_v22 = vmax.f32 %v2302_v25, 0.0  ;;  %v3092_v49 = vmax.f32 %v2495_v26, 0.0 }
 0x2ae   : > { %v3274_v9 = vpack.c.bf16 %v3089_v34, %v3081_v27  ;;  %v3276_v31 = vpack.c.bf16 %v3091_v42, %v3083_v28 }
 0x2af   : > { %v3275_v32 = vpack.c.bf16 %v3090_v22, %v3082_v63  ;;  %v3277_v60 = vpack.c.bf16 %v3092_v49, %v3084_v21  ;;  %v2305_v0 = vpop.f32.mrb[164].mxu0  ;;  %v2498_v23 = vpop.f32.mrb[164].mxu1 }
 0x2b0   : > { %v2306_v30 = vadd.f32 %v2305_v0, %v5390_v62  ;;  %v2499_v24 = vadd.f32 %v2498_v23, %v5390_v62  ;;  %v2307_v36 = vpop.f32.mrb[165].mxu0  ;;  %v2500_v55 = vpop.f32.mrb[165].mxu1 }
 0x2b1   : > { %v2308_v44 = vadd.f32 %v2307_v36, %v5390_v62  ;;  %v2501_v45 = vadd.f32 %v2500_v55, %v5390_v62  ;;  %v2309_v46 = vpop.f32.mrb[166].mxu0  ;;  %v2502_v47 = vpop.f32.mrb[166].mxu1  ;;  %3365 = vmatprep.subr.bf16.mxu0 %v3275_v32  ;;  %3406 = vmatprep.subr.bf16.mxu1 %v3277_v60 }
 0x2b2   : > { %v2310_v52 = vadd.f32 %v2309_v46, %v5392_v39  ;;  %v2503_v56 = vadd.f32 %v2502_v47, %v5392_v39  ;;  %v2311_v57 = vpop.f32.mrb[167].mxu0  ;;  %v2504_v2 = vpop.f32.mrb[167].mxu1  ;;  %3366 = vmatpush1.bf16.msra.mxu0 %v3274_v9  ;;  %3407 = vmatpush1.bf16.msra.mxu1 %v3276_v31  ;;  %v3097_v4 = vmax.f32 %v2306_v30, 0.0  ;;  %v3099_v58 = vmax.f32 %v2499_v24, 0.0 }
 0x2b3   : > { %v2312_v37 = vadd.f32 %v2311_v57, %v5392_v39  ;;  %v2505_v3 = vadd.f32 %v2504_v2, %v5392_v39  ;;  %v3098_v12 = vmax.f32 %v2308_v44, 0.0  ;;  %v3100_v14 = vmax.f32 %v2501_v45, 0.0  ;;  %v5414_v46 = vpop.permute.xlu0 %1982  ;;  %v5416_v2 = vpop.permute.xlu1 %1986 }
 0x2b4   : > { %v3105_v7 = vmax.f32 %v2310_v52, 0.0  ;;  %v3107_v11 = vmax.f32 %v2503_v56, 0.0 }
 0x2b5   : > { %v3106_v6 = vmax.f32 %v2312_v37, 0.0  ;;  %v3108_v59 = vmax.f32 %v2505_v3, 0.0 }
 0x2b6   : > { %v3282_v17 = vpack.c.bf16 %v3105_v7, %v3097_v4  ;;  %v3284_v18 = vpack.c.bf16 %v3107_v11, %v3099_v58 }
 0x2b7   : > { %v3283_v25 = vpack.c.bf16 %v3106_v6, %v3098_v12  ;;  %v3285_v26 = vpack.c.bf16 %v3108_v59, %v3100_v14  ;;  %v2315_v27 = vpop.f32.mrb[168].mxu0  ;;  %v2508_v28 = vpop.f32.mrb[168].mxu1 }
 0x2b8   : > { %v2316_v34 = vadd.f32 %v2315_v27, %v5402_v54  ;;  %v2509_v42 = vadd.f32 %v2508_v28, %v5402_v54  ;;  %v2317_v63 = vpop.f32.mrb[169].mxu0  ;;  %v2510_v21 = vpop.f32.mrb[169].mxu1 }
 0x2b9   : > { %v2318_v22 = vadd.f32 %v2317_v63, %v5402_v54  ;;  %v2511_v49 = vadd.f32 %v2510_v21, %v5402_v54  ;;  %v2319_v9 = vpop.f32.mrb[170].mxu0  ;;  %v2512_v31 = vpop.f32.mrb[170].mxu1  ;;  %3367 = vmatprep.subr.bf16.mxu0 %v3283_v25  ;;  %3408 = vmatprep.subr.bf16.mxu1 %v3285_v26 }
 0x2ba   : > { %v2320_v32 = vadd.f32 %v2319_v9, %v5404_v15  ;;  %v2513_v60 = vadd.f32 %v2512_v31, %v5404_v15  ;;  %v2321_v0 = vpop.f32.mrb[171].mxu0  ;;  %v2514_v23 = vpop.f32.mrb[171].mxu1  ;;  %3368 = vmatpush1.bf16.msra.mxu0 %v3282_v17  ;;  %3409 = vmatpush1.bf16.msra.mxu1 %v3284_v18  ;;  %v3113_v36 = vmax.f32 %v2316_v34, 0.0  ;;  %v3115_v55 = vmax.f32 %v2509_v42, 0.0 }
 0x2bb   : > { %v2322_v30 = vadd.f32 %v2321_v0, %v5404_v15  ;;  %v2515_v24 = vadd.f32 %v2514_v23, %v5404_v15  ;;  %v3114_v47 = vmax.f32 %v2318_v22, 0.0  ;;  %v3116_v52 = vmax.f32 %v2511_v49, 0.0 }
 0x2bc   : > { %v3121_v44 = vmax.f32 %v2320_v32, 0.0  ;;  %v3123_v45 = vmax.f32 %v2513_v60, 0.0  ;;  %v5426_v32 = vpop.permute.xlu0 %1990 }
 0x2bd   : > { %v3122_v56 = vmax.f32 %v2322_v30, 0.0  ;;  %v3124_v57 = vmax.f32 %v2515_v24, 0.0  ;;  %v5428_v24 = vpop.permute.xlu1 %1994 }
 0x2be   : > { %v3290_v37 = vpack.c.bf16 %v3121_v44, %v3113_v36  ;;  %v3292_v3 = vpack.c.bf16 %v3123_v45, %v3115_v55 }
 0x2bf   : > { %v3291_v4 = vpack.c.bf16 %v3122_v56, %v3114_v47  ;;  %v3293_v58 = vpack.c.bf16 %v3124_v57, %v3116_v52  ;;  %v2325_v7 = vpop.f32.mrb[172].mxu0  ;;  %v2518_v11 = vpop.f32.mrb[172].mxu1 }
 0x2c0   : > { %v2326_v12 = vadd.f32 %v2325_v7, %v5414_v46  ;;  %v2519_v14 = vadd.f32 %v2518_v11, %v5414_v46  ;;  %v2327_v6 = vpop.f32.mrb[173].mxu0  ;;  %v2520_v59 = vpop.f32.mrb[173].mxu1 }
 0x2c1   : > { %v2328_v17 = vadd.f32 %v2327_v6, %v5414_v46  ;;  %v2521_v18 = vadd.f32 %v2520_v59, %v5414_v46  ;;  %v2329_v25 = vpop.f32.mrb[174].mxu0  ;;  %v2522_v26 = vpop.f32.mrb[174].mxu1  ;;  %3369 = vmatprep.subr.bf16.mxu0 %v3291_v4  ;;  %3410 = vmatprep.subr.bf16.mxu1 %v3293_v58 }
 0x2c2   : > { %v2330_v27 = vadd.f32 %v2329_v25, %v5416_v2  ;;  %v2523_v28 = vadd.f32 %v2522_v26, %v5416_v2  ;;  %v2331_v34 = vpop.f32.mrb[175].mxu0  ;;  %v2524_v42 = vpop.f32.mrb[175].mxu1  ;;  %3370 = vmatpush1.bf16.msra.mxu0 %v3290_v37  ;;  %3411 = vmatpush1.bf16.msra.mxu1 %v3292_v3  ;;  %v3129_v22 = vmax.f32 %v2326_v12, 0.0  ;;  %v3131_v49 = vmax.f32 %v2519_v14, 0.0 }
 0x2c3   : > { %v2332_v63 = vadd.f32 %v2331_v34, %v5416_v2  ;;  %v2525_v21 = vadd.f32 %v2524_v42, %v5416_v2  ;;  %v3130_v60 = vmax.f32 %v2328_v17, 0.0  ;;  %v3132_v0 = vmax.f32 %v2521_v18, 0.0  ;;  %v5438_v34 = vpop.permute.xlu0 %1998 }
 0x2c4   : > { %v3137_v9 = vmax.f32 %v2330_v27, 0.0  ;;  %v3139_v31 = vmax.f32 %v2523_v28, 0.0 }
 0x2c5   : > { %v3138_v23 = vmax.f32 %v2332_v63, 0.0  ;;  %v3140_v30 = vmax.f32 %v2525_v21, 0.0 }
 0x2c6   : > { %v3298_v36 = vpack.c.bf16 %v3137_v9, %v3129_v22  ;;  %v3300_v55 = vpack.c.bf16 %v3139_v31, %v3131_v49  ;;  %v5440_v49 = vpop.permute.xlu1 %2002 }
 0x2c7   : > { %v3299_v44 = vpack.c.bf16 %v3138_v23, %v3130_v60  ;;  %v3301_v45 = vpack.c.bf16 %v3140_v30, %v3132_v0  ;;  %v2335_v47 = vpop.f32.mrb[176].mxu0  ;;  %v2528_v52 = vpop.f32.mrb[176].mxu1 }
 0x2c8   : > { %v2336_v56 = vadd.f32 %v2335_v47, %v5426_v32  ;;  %v2529_v57 = vadd.f32 %v2528_v52, %v5426_v32  ;;  %v2337_v37 = vpop.f32.mrb[177].mxu0  ;;  %v2530_v3 = vpop.f32.mrb[177].mxu1 }
 0x2c9   : > { %v2338_v4 = vadd.f32 %v2337_v37, %v5426_v32  ;;  %v2531_v58 = vadd.f32 %v2530_v3, %v5426_v32  ;;  %v2339_v7 = vpop.f32.mrb[178].mxu0  ;;  %v2532_v11 = vpop.f32.mrb[178].mxu1  ;;  %3371 = vmatprep.subr.bf16.mxu0 %v3299_v44  ;;  %3412 = vmatprep.subr.bf16.mxu1 %v3301_v45 }
 0x2ca   : > { %v2340_v12 = vadd.f32 %v2339_v7, %v5428_v24  ;;  %v2533_v14 = vadd.f32 %v2532_v11, %v5428_v24  ;;  %v2341_v6 = vpop.f32.mrb[179].mxu0  ;;  %v2534_v59 = vpop.f32.mrb[179].mxu1  ;;  %3372 = vmatpush1.bf16.msra.mxu0 %v3298_v36  ;;  %3413 = vmatpush1.bf16.msra.mxu1 %v3300_v55  ;;  %v3145_v25 = vmax.f32 %v2336_v56, 0.0  ;;  %v3147_v26 = vmax.f32 %v2529_v57, 0.0 }
 0x2cb   : > { %v2342_v17 = vadd.f32 %v2341_v6, %v5428_v24  ;;  %v2535_v18 = vadd.f32 %v2534_v59, %v5428_v24  ;;  %v3146_v42 = vmax.f32 %v2338_v4, 0.0  ;;  %v3148_v63 = vmax.f32 %v2531_v58, 0.0 }
 0x2cc   : > { %v3153_v27 = vmax.f32 %v2340_v12, 0.0  ;;  %v3155_v28 = vmax.f32 %v2533_v14, 0.0 }
 0x2cd   : > { %v3154_v21 = vmax.f32 %v2342_v17, 0.0  ;;  %v3156_v22 = vmax.f32 %v2535_v18, 0.0  ;;  %v5450_v17 = vpop.permute.xlu0 %2006 }
 0x2ce   : > { %v3306_v9 = vpack.c.bf16 %v3153_v27, %v3145_v25  ;;  %v3308_v31 = vpack.c.bf16 %v3155_v28, %v3147_v26  ;;  %v5452_v28 = vpop.permute.xlu1 %2010 }
 0x2cf   : > { %v3307_v60 = vpack.c.bf16 %v3154_v21, %v3146_v42  ;;  %v3309_v0 = vpack.c.bf16 %v3156_v22, %v3148_v63  ;;  %v2345_v23 = vpop.f32.mrb[180].mxu0  ;;  %v2538_v30 = vpop.f32.mrb[180].mxu1 }
 0x2d0   : > { %v2346_v36 = vadd.f32 %v2345_v23, %v5438_v34  ;;  %v2539_v55 = vadd.f32 %v2538_v30, %v5438_v34  ;;  %v2347_v44 = vpop.f32.mrb[181].mxu0  ;;  %v2540_v45 = vpop.f32.mrb[181].mxu1 }
 0x2d1   : > { %v2348_v47 = vadd.f32 %v2347_v44, %v5438_v34  ;;  %v2541_v52 = vadd.f32 %v2540_v45, %v5438_v34  ;;  %v2349_v56 = vpop.f32.mrb[182].mxu0  ;;  %v2542_v57 = vpop.f32.mrb[182].mxu1  ;;  %3373 = vmatprep.subr.bf16.mxu0 %v3307_v60  ;;  %3414 = vmatprep.subr.bf16.mxu1 %v3309_v0 }
 0x2d2   : > { %v2350_v37 = vadd.f32 %v2349_v56, %v5440_v49  ;;  %v2543_v3 = vadd.f32 %v2542_v57, %v5440_v49  ;;  %v2351_v4 = vpop.f32.mrb[183].mxu0  ;;  %v2544_v58 = vpop.f32.mrb[183].mxu1  ;;  %3374 = vmatpush1.bf16.msra.mxu0 %v3306_v9  ;;  %3415 = vmatpush1.bf16.msra.mxu1 %v3308_v31  ;;  %v3161_v12 = vmax.f32 %v2346_v36, 0.0  ;;  %v3163_v14 = vmax.f32 %v2539_v55, 0.0 }
 0x2d3   : > { %v2352_v7 = vadd.f32 %v2351_v4, %v5440_v49  ;;  %v2545_v11 = vadd.f32 %v2544_v58, %v5440_v49  ;;  %v3162_v18 = vmax.f32 %v2348_v47, 0.0  ;;  %v3164_v25 = vmax.f32 %v2541_v52, 0.0 }
 0x2d4   : > { %v3169_v6 = vmax.f32 %v2350_v37, 0.0  ;;  %v3171_v59 = vmax.f32 %v2543_v3, 0.0 }
 0x2d5   : > { %v3170_v26 = vmax.f32 %v2352_v7, 0.0  ;;  %v3172_v27 = vmax.f32 %v2545_v11, 0.0 }
 0x2d6   : > { %v3314_v42 = vpack.c.bf16 %v3169_v6, %v3161_v12  ;;  %v3316_v63 = vpack.c.bf16 %v3171_v59, %v3163_v14  ;;  %v5462_v12 = vpop.permute.xlu0 %2014 }
 0x2d7   : > { %v3315_v21 = vpack.c.bf16 %v3170_v26, %v3162_v18  ;;  %v3317_v22 = vpack.c.bf16 %v3172_v27, %v3164_v25  ;;  %v2355_v9 = vpop.f32.mrb[184].mxu0  ;;  %v2548_v31 = vpop.f32.mrb[184].mxu1 }
 0x2d8   : > { %v2356_v60 = vadd.f32 %v2355_v9, %v5450_v17  ;;  %v2549_v0 = vadd.f32 %v2548_v31, %v5450_v17  ;;  %v2357_v23 = vpop.f32.mrb[185].mxu0  ;;  %v2550_v30 = vpop.f32.mrb[185].mxu1 }
 0x2d9   : > { %v2358_v36 = vadd.f32 %v2357_v23, %v5450_v17  ;;  %v2551_v55 = vadd.f32 %v2550_v30, %v5450_v17  ;;  %v2359_v44 = vpop.f32.mrb[186].mxu0  ;;  %v2552_v45 = vpop.f32.mrb[186].mxu1  ;;  %3375 = vmatprep.subr.bf16.mxu0 %v3315_v21  ;;  %3416 = vmatprep.subr.bf16.mxu1 %v3317_v22 }
 0x2da   : > { %v2360_v47 = vadd.f32 %v2359_v44, %v5452_v28  ;;  %v2553_v52 = vadd.f32 %v2552_v45, %v5452_v28  ;;  %v2361_v56 = vpop.f32.mrb[187].mxu0  ;;  %v2554_v57 = vpop.f32.mrb[187].mxu1  ;;  %3376 = vmatpush1.bf16.msra.mxu0 %v3314_v42  ;;  %3417 = vmatpush1.bf16.msra.mxu1 %v3316_v63  ;;  %v3177_v4 = vmax.f32 %v2356_v60, 0.0  ;;  %v3179_v58 = vmax.f32 %v2549_v0, 0.0 }
 0x2db   : > { %v2362_v37 = vadd.f32 %v2361_v56, %v5452_v28  ;;  %v2555_v3 = vadd.f32 %v2554_v57, %v5452_v28  ;;  %v3178_v14 = vmax.f32 %v2358_v36, 0.0  ;;  %v3180_v6 = vmax.f32 %v2551_v55, 0.0  ;;  %v5464_v25 = vpop.permute.xlu1 %2018 }
 0x2dc   : > { %v3185_v7 = vmax.f32 %v2360_v47, 0.0  ;;  %v3187_v11 = vmax.f32 %v2553_v52, 0.0 }
 0x2dd   : > { %v3186_v59 = vmax.f32 %v2362_v37, 0.0  ;;  %v3188_v18 = vmax.f32 %v2555_v3, 0.0 }
 0x2de   : > { %v3322_v26 = vpack.c.bf16 %v3185_v7, %v3177_v4  ;;  %v3324_v27 = vpack.c.bf16 %v3187_v11, %v3179_v58 }
 0x2df   : > { %v3323_v42 = vpack.c.bf16 %v3186_v59, %v3178_v14  ;;  %v3325_v63 = vpack.c.bf16 %v3188_v18, %v3180_v6  ;;  %v2365_v21 = vpop.f32.mrb[188].mxu0  ;;  %v2558_v22 = vpop.f32.mrb[188].mxu1 }
 0x2e0   : > { %v2366_v9 = vadd.f32 %v2365_v21, %v5462_v12  ;;  %v2559_v31 = vadd.f32 %v2558_v22, %v5462_v12  ;;  %v2367_v60 = vpop.f32.mrb[189].mxu0  ;;  %v2560_v0 = vpop.f32.mrb[189].mxu1 }
 0x2e1   : > { %v2368_v23 = vadd.f32 %v2367_v60, %v5462_v12  ;;  %v2561_v30 = vadd.f32 %v2560_v0, %v5462_v12  ;;  %v2369_v36 = vpop.f32.mrb[190].mxu0  ;;  %v2562_v55 = vpop.f32.mrb[190].mxu1  ;;  %3377 = vmatprep.subr.bf16.mxu0 %v3323_v42  ;;  %3418 = vmatprep.subr.bf16.mxu1 %v3325_v63 }
 0x2e2   : > { %v2370_v44 = vadd.f32 %v2369_v36, %v5464_v25  ;;  %v2563_v45 = vadd.f32 %v2562_v55, %v5464_v25  ;;  %v2371_v47 = vpop.f32.mrb[191].mxu0  ;;  %v2564_v52 = vpop.f32.mrb[191].mxu1  ;;  %3378 = vmatpush1.bf16.msra.mxu0 %v3322_v26  ;;  %3419 = vmatpush1.bf16.msra.mxu1 %v3324_v27  ;;  %v3193_v37 = vmax.f32 %v2366_v9, 0.0  ;;  %v3195_v3 = vmax.f32 %v2559_v31, 0.0 }
 0x2e3   : > { %v2372_v56 = vadd.f32 %v2371_v47, %v5464_v25  ;;  %v2565_v57 = vadd.f32 %v2564_v52, %v5464_v25  ;;  %v3194_v7 = vmax.f32 %v2368_v23, 0.0  ;;  %v3196_v11 = vmax.f32 %v2561_v30, 0.0 }
 0x2e4   : > { %v3201_v4 = vmax.f32 %v2370_v44, 0.0  ;;  %v3203_v58 = vmax.f32 %v2563_v45, 0.0  ;;  %v5480_v36 = vcombine.low %v5324_v8, %v5324_v8 }
 0x2e5   : > { %v3202_v14 = vmax.f32 %v2372_v56, 0.0  ;;  %v3204_v6 = vmax.f32 %v2565_v57, 0.0 }
 0x2e6   : > { %v3330_v59 = vpack.c.bf16 %v3201_v4, %v3193_v37  ;;  %v3332_v18 = vpack.c.bf16 %v3203_v58, %v3195_v3 }
 0x2e7   : > { %v3331_v42 = vpack.c.bf16 %v3202_v14, %v3194_v7  ;;  %v3333_v63 = vpack.c.bf16 %v3204_v6, %v3196_v11  ;;  %v2601_v21 = vpop.f32.mrb[192].mxu0  ;;  %v2794_v22 = vpop.f32.mrb[192].mxu1 }
 0x2e8   : > { %v2602_v26 = vadd.f32 %v2601_v21, %v5249_v38  ;;  %v2795_v27 = vadd.f32 %v2794_v22, %v5249_v38  ;;  %v2603_v60 = vpop.f32.mrb[193].mxu0  ;;  %v2796_v0 = vpop.f32.mrb[193].mxu1 }
 0x2e9   : > { %v2604_v9 = vadd.f32 %v2603_v60, %v5249_v38  ;;  %v2797_v31 = vadd.f32 %v2796_v0, %v5249_v38  ;;  %v2605_v23 = vpop.f32.mrb[194].mxu0  ;;  %v2798_v30 = vpop.f32.mrb[194].mxu1  ;;  %3379 = vmatprep.subr.bf16.mxu0 %v3331_v42  ;;  %3420 = vmatprep.subr.bf16.mxu1 %v3333_v63  ;;  %v4195_v42 = vmov 5  }
 0x2ea   : > { %v2606_v55 = vadd.f32 %v2605_v23, %v5255_v10  ;;  %v2799_v44 = vadd.f32 %v2798_v30, %v5255_v10  ;;  %v2607_v45 = vpop.f32.mrb[195].mxu0  ;;  %v2800_v47 = vpop.f32.mrb[195].mxu1  ;;  %3380 = vmatpush1.bf16.msra.mxu0 %v3330_v59  ;;  %3421 = vmatpush1.bf16.msra.mxu1 %v3332_v18  ;;  %v2957_v52 = vmax.f32 %v2602_v26, 0.0  ;;  %v2959_v57 = vmax.f32 %v2795_v27, 0.0  ;;  %v4085_v27 = vld [vmem:[%s5722_s1] sm:$0xff] }
 0x2eb   : > { %v2608_v56 = vadd.f32 %v2607_v45, %v5255_v10  ;;  %v2801_v38 = vadd.f32 %v2800_v47, %v5255_v10  ;;  %v2958_v37 = vmax.f32 %v2604_v9, 0.0  ;;  %v2960_v58 = vmax.f32 %v2797_v31, 0.0  ;;  %4001 = vset.pattern.permute.xlu0 %v4195_v42 }
 0x2ec   : > { %v2965_v3 = vmax.f32 %v2606_v55, 0.0  ;;  %v2967_v4 = vmax.f32 %v2799_v44, 0.0  ;;  %3339 = vperm.xlu0 %4001, %v4085_v27  }
 0x2ed   : > { %v2966_v8 = vmax.f32 %v2608_v56, 0.0  ;;  %v2968_v7 = vmax.f32 %v2801_v38, 0.0  ;;  %3382 = vmatmul.mubr.bf16.vlgmr.msra.gmra.mrb[0].mxu0 %v5480_v36  ;;  %3423 = vmatmul.mubr.bf16.vlgmr.msra.gmra.mrb[0].mxu1 %v5480_v36 }
 0x2ee   : > { %v3214_v11 = vpack.c.bf16 %v2965_v3, %v2957_v52  ;;  %v3216_v14 = vpack.c.bf16 %v2967_v4, %v2959_v57  ;;  %3463 = vmatprep.mubr.bf16.mxu0 %v5332_v19  ;;  %3504 = vmatprep.mubr.bf16.mxu1 %v5332_v19 }
 0x2ef   : > { %v3215_v6 = vpack.c.bf16 %v2966_v8, %v2958_v37  ;;  %v3217_v59 = vpack.c.bf16 %v2968_v7, %v2960_v58  ;;  %v2611_v10 = vpop.f32.mrb[196].mxu0  ;;  %v2804_v18 = vpop.f32.mrb[196].mxu1 }
 0x2f0   : > { %v2612_v63 = vadd.f32 %v2611_v10, %v5257_v40  ;;  %v2805_v21 = vadd.f32 %v2804_v18, %v5257_v40  ;;  %v2613_v22 = vpop.f32.mrb[197].mxu0  ;;  %v2806_v26 = vpop.f32.mrb[197].mxu1 }
 0x2f1   : > { %v2614_v60 = vadd.f32 %v2613_v22, %v5257_v40  ;;  %v2807_v19 = vadd.f32 %v2806_v26, %v5257_v40  ;;  %v2615_v0 = vpop.f32.mrb[198].mxu0  ;;  %v2808_v9 = vpop.f32.mrb[198].mxu1  ;;  %3431 = vmatprep.subr.bf16.mxu0 %v3215_v6  ;;  %3472 = vmatprep.subr.bf16.mxu1 %v3217_v59 }
 0x2f2   : > { %v2616_v31 = vadd.f32 %v2615_v0, %v5271_v48  ;;  %v2809_v23 = vadd.f32 %v2808_v9, %v5271_v48  ;;  %v2617_v30 = vpop.f32.mrb[199].mxu0  ;;  %v2810_v55 = vpop.f32.mrb[199].mxu1  ;;  %3432 = vmatpush1.bf16.msra.mxu0 %v3214_v11  ;;  %3473 = vmatpush1.bf16.msra.mxu1 %v3216_v14  ;;  %v2973_v47 = vmax.f32 %v2612_v63, 0.0  ;;  %v2975_v52 = vmax.f32 %v2805_v21, 0.0 }
 0x2f3   : > { %v2618_v44 = vadd.f32 %v2617_v30, %v5271_v48  ;;  %v2811_v45 = vadd.f32 %v2810_v55, %v5271_v48  ;;  %v2974_v38 = vmax.f32 %v2614_v60, 0.0  ;;  %v2976_v57 = vmax.f32 %v2807_v19, 0.0 }
 0x2f4   : > { %v2981_v56 = vmax.f32 %v2616_v31, 0.0  ;;  %v2983_v40 = vmax.f32 %v2809_v23, 0.0 }
 0x2f5   : > { %v2982_v37 = vmax.f32 %v2618_v44, 0.0  ;;  %v2984_v3 = vmax.f32 %v2811_v45, 0.0 }
 0x2f6   : > { %v3222_v4 = vpack.c.bf16 %v2981_v56, %v2973_v47  ;;  %v3224_v58 = vpack.c.bf16 %v2983_v40, %v2975_v52 }
 0x2f7   : > { %v3223_v8 = vpack.c.bf16 %v2982_v37, %v2974_v38  ;;  %v3225_v7 = vpack.c.bf16 %v2984_v3, %v2976_v57  ;;  %v2621_v6 = vpop.f32.mrb[200].mxu0  ;;  %v2814_v59 = vpop.f32.mrb[200].mxu1 }
 0x2f8   : > { %v2622_v11 = vadd.f32 %v2621_v6, %v5283_v41  ;;  %v2815_v14 = vadd.f32 %v2814_v59, %v5283_v41  ;;  %v2623_v10 = vpop.f32.mrb[201].mxu0  ;;  %v2816_v48 = vpop.f32.mrb[201].mxu1 }
 0x2f9   : > { %v2624_v18 = vadd.f32 %v2623_v10, %v5283_v41  ;;  %v2817_v42 = vadd.f32 %v2816_v48, %v5283_v41  ;;  %v2625_v63 = vpop.f32.mrb[202].mxu0  ;;  %v2818_v21 = vpop.f32.mrb[202].mxu1  ;;  %3433 = vmatprep.subr.bf16.mxu0 %v3223_v8  ;;  %3474 = vmatprep.subr.bf16.mxu1 %v3225_v7 }
 0x2fa   : > { %v2626_v22 = vadd.f32 %v2625_v63, %v5287_v33  ;;  %v2819_v26 = vadd.f32 %v2818_v21, %v5287_v33  ;;  %v2627_v27 = vpop.f32.mrb[203].mxu0  ;;  %v2820_v60 = vpop.f32.mrb[203].mxu1  ;;  %3434 = vmatpush1.bf16.msra.mxu0 %v3222_v4  ;;  %3475 = vmatpush1.bf16.msra.mxu1 %v3224_v58  ;;  %v2989_v9 = vmax.f32 %v2622_v11, 0.0  ;;  %v2991_v31 = vmax.f32 %v2815_v14, 0.0 }
 0x2fb   : > { %v2628_v19 = vadd.f32 %v2627_v27, %v5287_v33  ;;  %v2821_v0 = vadd.f32 %v2820_v60, %v5287_v33  ;;  %v2990_v30 = vmax.f32 %v2624_v18, 0.0  ;;  %v2992_v55 = vmax.f32 %v2817_v42, 0.0 }
 0x2fc   : > { %v2997_v23 = vmax.f32 %v2626_v22, 0.0  ;;  %v2999_v41 = vmax.f32 %v2819_v26, 0.0 }
 0x2fd   : > { %v2998_v44 = vmax.f32 %v2628_v19, 0.0  ;;  %v3000_v45 = vmax.f32 %v2821_v0, 0.0 }
 0x2fe   : > { %v3230_v47 = vpack.c.bf16 %v2997_v23, %v2989_v9  ;;  %v3232_v52 = vpack.c.bf16 %v2999_v41, %v2991_v31 }
 0x2ff   : > { %v3231_v56 = vpack.c.bf16 %v2998_v44, %v2990_v30  ;;  %v3233_v40 = vpack.c.bf16 %v3000_v45, %v2992_v55  ;;  %v2631_v38 = vpop.f32.mrb[204].mxu0  ;;  %v2824_v57 = vpop.f32.mrb[204].mxu1 }
 0x300   : > { %v2632_v37 = vadd.f32 %v2631_v38, %v5299_v35  ;;  %v2825_v3 = vadd.f32 %v2824_v57, %v5299_v35  ;;  %v2633_v4 = vpop.f32.mrb[205].mxu0  ;;  %v2826_v33 = vpop.f32.mrb[205].mxu1 }
 0x301   : > { %v2634_v58 = vadd.f32 %v2633_v4, %v5299_v35  ;;  %v2827_v8 = vadd.f32 %v2826_v33, %v5299_v35  ;;  %v2635_v7 = vpop.f32.mrb[206].mxu0  ;;  %v2828_v6 = vpop.f32.mrb[206].mxu1  ;;  %3435 = vmatprep.subr.bf16.mxu0 %v3231_v56  ;;  %3476 = vmatprep.subr.bf16.mxu1 %v3233_v40 }
 0x302   : > { %v2636_v59 = vadd.f32 %v2635_v7, %v5303_v1  ;;  %v2829_v11 = vadd.f32 %v2828_v6, %v5303_v1  ;;  %v2637_v14 = vpop.f32.mrb[207].mxu0  ;;  %v2830_v10 = vpop.f32.mrb[207].mxu1  ;;  %3436 = vmatpush1.bf16.msra.mxu0 %v3230_v47  ;;  %3477 = vmatpush1.bf16.msra.mxu1 %v3232_v52  ;;  %v3005_v42 = vmax.f32 %v2632_v37, 0.0  ;;  %v3007_v63 = vmax.f32 %v2825_v3, 0.0 }
 0x303   : > { %v2638_v48 = vadd.f32 %v2637_v14, %v5303_v1  ;;  %v2831_v18 = vadd.f32 %v2830_v10, %v5303_v1  ;;  %v3006_v22 = vmax.f32 %v2634_v58, 0.0  ;;  %v3008_v26 = vmax.f32 %v2827_v8, 0.0 }
 0x304   : > { %v3013_v21 = vmax.f32 %v2636_v59, 0.0  ;;  %v3015_v35 = vmax.f32 %v2829_v11, 0.0 }
 0x305   : > { %v3014_v27 = vmax.f32 %v2638_v48, 0.0  ;;  %v3016_v60 = vmax.f32 %v2831_v18, 0.0 }
 0x306   : > { %v3238_v19 = vpack.c.bf16 %v3013_v21, %v3005_v42  ;;  %v3240_v0 = vpack.c.bf16 %v3015_v35, %v3007_v63 }
 0x307   : > { %v3239_v9 = vpack.c.bf16 %v3014_v27, %v3006_v22  ;;  %v3241_v31 = vpack.c.bf16 %v3016_v60, %v3008_v26  ;;  %v2641_v23 = vpop.f32.mrb[208].mxu0  ;;  %v2834_v41 = vpop.f32.mrb[208].mxu1 }
 0x308   : > { %v2642_v30 = vadd.f32 %v2641_v23, %v5315_v43  ;;  %v2835_v55 = vadd.f32 %v2834_v41, %v5315_v43  ;;  %v2643_v44 = vpop.f32.mrb[209].mxu0  ;;  %v2836_v1 = vpop.f32.mrb[209].mxu1 }
 0x309   : > { %v2644_v45 = vadd.f32 %v2643_v44, %v5315_v43  ;;  %v2837_v47 = vadd.f32 %v2836_v1, %v5315_v43  ;;  %v2645_v52 = vpop.f32.mrb[210].mxu0  ;;  %v2838_v56 = vpop.f32.mrb[210].mxu1  ;;  %3437 = vmatprep.subr.bf16.mxu0 %v3239_v9  ;;  %3478 = vmatprep.subr.bf16.mxu1 %v3241_v31 }
 0x30a   : > { %v2646_v40 = vadd.f32 %v2645_v52, %v5319_v50  ;;  %v2839_v38 = vadd.f32 %v2838_v56, %v5319_v50  ;;  %v2647_v57 = vpop.f32.mrb[211].mxu0  ;;  %v2840_v37 = vpop.f32.mrb[211].mxu1  ;;  %3438 = vmatpush1.bf16.msra.mxu0 %v3238_v19  ;;  %3479 = vmatpush1.bf16.msra.mxu1 %v3240_v0  ;;  %v3021_v33 = vmax.f32 %v2642_v30, 0.0  ;;  %v3023_v58 = vmax.f32 %v2835_v55, 0.0 }
 0x30b   : > { %v2648_v3 = vadd.f32 %v2647_v57, %v5319_v50  ;;  %v2841_v4 = vadd.f32 %v2840_v37, %v5319_v50  ;;  %v3022_v7 = vmax.f32 %v2644_v45, 0.0  ;;  %v3024_v6 = vmax.f32 %v2837_v47, 0.0 }
 0x30c   : > { %v3029_v8 = vmax.f32 %v2646_v40, 0.0  ;;  %v3031_v43 = vmax.f32 %v2839_v38, 0.0 }
 0x30d   : > { %v3030_v59 = vmax.f32 %v2648_v3, 0.0  ;;  %v3032_v11 = vmax.f32 %v2841_v4, 0.0 }
 0x30e   : > { %v3246_v14 = vpack.c.bf16 %v3029_v8, %v3021_v33  ;;  %v3248_v10 = vpack.c.bf16 %v3031_v43, %v3023_v58 }
 0x30f   : > { %v3247_v48 = vpack.c.bf16 %v3030_v59, %v3022_v7  ;;  %v3249_v18 = vpack.c.bf16 %v3032_v11, %v3024_v6  ;;  %v2651_v42 = vpop.f32.mrb[212].mxu0  ;;  %v2844_v63 = vpop.f32.mrb[212].mxu1 }
 0x310   : > { %v2652_v21 = vadd.f32 %v2651_v42, %v5340_v53  ;;  %v2845_v35 = vadd.f32 %v2844_v63, %v5340_v53  ;;  %v2653_v22 = vpop.f32.mrb[213].mxu0  ;;  %v2846_v50 = vpop.f32.mrb[213].mxu1 }
 0x311   : > { %v2654_v26 = vadd.f32 %v2653_v22, %v5340_v53  ;;  %v2847_v27 = vadd.f32 %v2846_v50, %v5340_v53  ;;  %v2655_v60 = vpop.f32.mrb[214].mxu0  ;;  %v2848_v19 = vpop.f32.mrb[214].mxu1  ;;  %3439 = vmatprep.subr.bf16.mxu0 %v3247_v48  ;;  %3480 = vmatprep.subr.bf16.mxu1 %v3249_v18 }
 0x312   : > { %v2656_v0 = vadd.f32 %v2655_v60, %v5344_v5  ;;  %v2849_v9 = vadd.f32 %v2848_v19, %v5344_v5  ;;  %v2657_v31 = vpop.f32.mrb[215].mxu0  ;;  %v2850_v23 = vpop.f32.mrb[215].mxu1  ;;  %3440 = vmatpush1.bf16.msra.mxu0 %v3246_v14  ;;  %3481 = vmatpush1.bf16.msra.mxu1 %v3248_v10  ;;  %v3037_v55 = vmax.f32 %v2652_v21, 0.0  ;;  %v3039_v44 = vmax.f32 %v2845_v35, 0.0 }
 0x313   : > { %v2658_v41 = vadd.f32 %v2657_v31, %v5344_v5  ;;  %v2851_v30 = vadd.f32 %v2850_v23, %v5344_v5  ;;  %v3038_v45 = vmax.f32 %v2654_v26, 0.0  ;;  %v3040_v47 = vmax.f32 %v2847_v27, 0.0 }
 0x314   : > { %v3045_v1 = vmax.f32 %v2656_v0, 0.0  ;;  %v3047_v53 = vmax.f32 %v2849_v9, 0.0 }
 0x315   : > { %v3046_v52 = vmax.f32 %v2658_v41, 0.0  ;;  %v3048_v56 = vmax.f32 %v2851_v30, 0.0 }
 0x316   : > { %v3254_v40 = vpack.c.bf16 %v3045_v1, %v3037_v55  ;;  %v3256_v38 = vpack.c.bf16 %v3047_v53, %v3039_v44 }
 0x317   : > { %v3255_v57 = vpack.c.bf16 %v3046_v52, %v3038_v45  ;;  %v3257_v37 = vpack.c.bf16 %v3048_v56, %v3040_v47  ;;  %v2661_v3 = vpop.f32.mrb[216].mxu0  ;;  %v2854_v4 = vpop.f32.mrb[216].mxu1 }
 0x318   : > { %v2662_v33 = vadd.f32 %v2661_v3, %v5354_v29  ;;  %v2855_v58 = vadd.f32 %v2854_v4, %v5354_v29  ;;  %v2663_v8 = vpop.f32.mrb[217].mxu0  ;;  %v2856_v5 = vpop.f32.mrb[217].mxu1 }
 0x319   : > { %v2664_v43 = vadd.f32 %v2663_v8, %v5354_v29  ;;  %v2857_v7 = vadd.f32 %v2856_v5, %v5354_v29  ;;  %v2665_v6 = vpop.f32.mrb[218].mxu0  ;;  %v2858_v59 = vpop.f32.mrb[218].mxu1  ;;  %3441 = vmatprep.subr.bf16.mxu0 %v3255_v57  ;;  %3482 = vmatprep.subr.bf16.mxu1 %v3257_v37 }
 0x31a   : > { %v2666_v11 = vadd.f32 %v2665_v6, %v5356_v61  ;;  %v2859_v14 = vadd.f32 %v2858_v59, %v5356_v61  ;;  %v2667_v10 = vpop.f32.mrb[219].mxu0  ;;  %v2860_v48 = vpop.f32.mrb[219].mxu1  ;;  %3442 = vmatpush1.bf16.msra.mxu0 %v3254_v40  ;;  %3483 = vmatpush1.bf16.msra.mxu1 %v3256_v38  ;;  %v3053_v63 = vmax.f32 %v2662_v33, 0.0  ;;  %v3055_v21 = vmax.f32 %v2855_v58, 0.0 }
 0x31b   : > { %v2668_v18 = vadd.f32 %v2667_v10, %v5356_v61  ;;  %v2861_v42 = vadd.f32 %v2860_v48, %v5356_v61  ;;  %v3054_v22 = vmax.f32 %v2664_v43, 0.0  ;;  %v3056_v50 = vmax.f32 %v2857_v7, 0.0 }
 0x31c   : > { %v3061_v35 = vmax.f32 %v2666_v11, 0.0  ;;  %v3063_v29 = vmax.f32 %v2859_v14, 0.0 }
 0x31d   : > { %v3062_v26 = vmax.f32 %v2668_v18, 0.0  ;;  %v3064_v27 = vmax.f32 %v2861_v42, 0.0 }
 0x31e   : > { %v3262_v60 = vpack.c.bf16 %v3061_v35, %v3053_v63  ;;  %v3264_v19 = vpack.c.bf16 %v3063_v29, %v3055_v21 }
 0x31f   : > { %v3263_v0 = vpack.c.bf16 %v3062_v26, %v3054_v22  ;;  %v3265_v9 = vpack.c.bf16 %v3064_v27, %v3056_v50  ;;  %v2671_v31 = vpop.f32.mrb[220].mxu0  ;;  %v2864_v23 = vpop.f32.mrb[220].mxu1 }
 0x320   : > { %v2672_v41 = vadd.f32 %v2671_v31, %v5366_v13  ;;  %v2865_v30 = vadd.f32 %v2864_v23, %v5366_v13  ;;  %v2673_v55 = vpop.f32.mrb[221].mxu0  ;;  %v2866_v61 = vpop.f32.mrb[221].mxu1 }
 0x321   : > { %v2674_v44 = vadd.f32 %v2673_v55, %v5366_v13  ;;  %v2867_v1 = vadd.f32 %v2866_v61, %v5366_v13  ;;  %v2675_v53 = vpop.f32.mrb[222].mxu0  ;;  %v2868_v45 = vpop.f32.mrb[222].mxu1  ;;  %3443 = vmatprep.subr.bf16.mxu0 %v3263_v0  ;;  %3484 = vmatprep.subr.bf16.mxu1 %v3265_v9 }
 0x322   : > { %v2676_v47 = vadd.f32 %v2675_v53, %v5368_v16  ;;  %v2869_v52 = vadd.f32 %v2868_v45, %v5368_v16  ;;  %v2677_v56 = vpop.f32.mrb[223].mxu0  ;;  %v2870_v40 = vpop.f32.mrb[223].mxu1  ;;  %3444 = vmatpush1.bf16.msra.mxu0 %v3262_v60  ;;  %3485 = vmatpush1.bf16.msra.mxu1 %v3264_v19  ;;  %v3069_v37 = vmax.f32 %v2672_v41, 0.0  ;;  %v3071_v3 = vmax.f32 %v2865_v30, 0.0 }
 0x323   : > { %v2678_v38 = vadd.f32 %v2677_v56, %v5368_v16  ;;  %v2871_v57 = vadd.f32 %v2870_v40, %v5368_v16  ;;  %v3070_v33 = vmax.f32 %v2674_v44, 0.0  ;;  %v3072_v58 = vmax.f32 %v2867_v1, 0.0 }
 0x324   : > { %v3077_v4 = vmax.f32 %v2676_v47, 0.0  ;;  %v3079_v13 = vmax.f32 %v2869_v52, 0.0 }
 0x325   : > { %v3078_v8 = vmax.f32 %v2678_v38, 0.0  ;;  %v3080_v5 = vmax.f32 %v2871_v57, 0.0 }
 0x326   : > { %v3270_v43 = vpack.c.bf16 %v3077_v4, %v3069_v37  ;;  %v3272_v7 = vpack.c.bf16 %v3079_v13, %v3071_v3 }
 0x327   : > { %v3271_v6 = vpack.c.bf16 %v3078_v8, %v3070_v33  ;;  %v3273_v59 = vpack.c.bf16 %v3080_v5, %v3072_v58  ;;  %v2681_v11 = vpop.f32.mrb[224].mxu0  ;;  %v2874_v14 = vpop.f32.mrb[224].mxu1 }
 0x328   : > { %v2682_v10 = vadd.f32 %v2681_v11, %v5378_v20  ;;  %v2875_v48 = vadd.f32 %v2874_v14, %v5378_v20  ;;  %v2683_v18 = vpop.f32.mrb[225].mxu0  ;;  %v2876_v16 = vpop.f32.mrb[225].mxu1 }
 0x329   : > { %v2684_v42 = vadd.f32 %v2683_v18, %v5378_v20  ;;  %v2877_v63 = vadd.f32 %v2876_v16, %v5378_v20  ;;  %v2685_v21 = vpop.f32.mrb[226].mxu0  ;;  %v2878_v35 = vpop.f32.mrb[226].mxu1  ;;  %3445 = vmatprep.subr.bf16.mxu0 %v3271_v6  ;;  %3486 = vmatprep.subr.bf16.mxu1 %v3273_v59 }
 0x32a   : > { %v2686_v29 = vadd.f32 %v2685_v21, %v5380_v51  ;;  %v2879_v22 = vadd.f32 %v2878_v35, %v5380_v51  ;;  %v2687_v50 = vpop.f32.mrb[227].mxu0  ;;  %v2880_v26 = vpop.f32.mrb[227].mxu1  ;;  %3446 = vmatpush1.bf16.msra.mxu0 %v3270_v43  ;;  %3487 = vmatpush1.bf16.msra.mxu1 %v3272_v7  ;;  %v3085_v19 = vmax.f32 %v2682_v10, 0.0  ;;  %v3087_v0 = vmax.f32 %v2875_v48, 0.0 }
 0x32b   : > { %v2688_v27 = vadd.f32 %v2687_v50, %v5380_v51  ;;  %v2881_v60 = vadd.f32 %v2880_v26, %v5380_v51  ;;  %v3086_v31 = vmax.f32 %v2684_v42, 0.0  ;;  %v3088_v23 = vmax.f32 %v2877_v63, 0.0 }
 0x32c   : > { %v3093_v9 = vmax.f32 %v2686_v29, 0.0  ;;  %v3095_v20 = vmax.f32 %v2879_v22, 0.0 }
 0x32d   : > { %v3094_v41 = vmax.f32 %v2688_v27, 0.0  ;;  %v3096_v30 = vmax.f32 %v2881_v60, 0.0 }
 0x32e   : > { %v3278_v55 = vpack.c.bf16 %v3093_v9, %v3085_v19  ;;  %v3280_v61 = vpack.c.bf16 %v3095_v20, %v3087_v0 }
 0x32f   : > { %v3279_v44 = vpack.c.bf16 %v3094_v41, %v3086_v31  ;;  %v3281_v1 = vpack.c.bf16 %v3096_v30, %v3088_v23  ;;  %v2691_v53 = vpop.f32.mrb[228].mxu0  ;;  %v2884_v45 = vpop.f32.mrb[228].mxu1 }
 0x330   : > { %v2692_v47 = vadd.f32 %v2691_v53, %v5390_v62  ;;  %v2885_v52 = vadd.f32 %v2884_v45, %v5390_v62  ;;  %v2693_v56 = vpop.f32.mrb[229].mxu0  ;;  %v2886_v51 = vpop.f32.mrb[229].mxu1 }
 0x331   : > { %v2694_v40 = vadd.f32 %v2693_v56, %v5390_v62  ;;  %v2887_v38 = vadd.f32 %v2886_v51, %v5390_v62  ;;  %v2695_v57 = vpop.f32.mrb[230].mxu0  ;;  %v2888_v37 = vpop.f32.mrb[230].mxu1  ;;  %3447 = vmatprep.subr.bf16.mxu0 %v3279_v44  ;;  %3488 = vmatprep.subr.bf16.mxu1 %v3281_v1 }
 0x332   : > { %v2696_v3 = vadd.f32 %v2695_v57, %v5392_v39  ;;  %v2889_v4 = vadd.f32 %v2888_v37, %v5392_v39  ;;  %v2697_v13 = vpop.f32.mrb[231].mxu0  ;;  %v2890_v33 = vpop.f32.mrb[231].mxu1  ;;  %3448 = vmatpush1.bf16.msra.mxu0 %v3278_v55  ;;  %3489 = vmatpush1.bf16.msra.mxu1 %v3280_v61  ;;  %v3101_v5 = vmax.f32 %v2692_v47, 0.0  ;;  %v3103_v43 = vmax.f32 %v2885_v52, 0.0 }
 0x333   : > { %v2698_v58 = vadd.f32 %v2697_v13, %v5392_v39  ;;  %v2891_v8 = vadd.f32 %v2890_v33, %v5392_v39  ;;  %v3102_v6 = vmax.f32 %v2694_v40, 0.0  ;;  %v3104_v59 = vmax.f32 %v2887_v38, 0.0 }
 0x334   : > { %v3109_v7 = vmax.f32 %v2696_v3, 0.0  ;;  %v3111_v62 = vmax.f32 %v2889_v4, 0.0 }
 0x335   : > { %v3110_v11 = vmax.f32 %v2698_v58, 0.0  ;;  %v3112_v14 = vmax.f32 %v2891_v8, 0.0 }
 0x336   : > { %v3286_v10 = vpack.c.bf16 %v3109_v7, %v3101_v5  ;;  %v3288_v48 = vpack.c.bf16 %v3111_v62, %v3103_v43 }
 0x337   : > { %v3287_v18 = vpack.c.bf16 %v3110_v11, %v3102_v6  ;;  %v3289_v16 = vpack.c.bf16 %v3112_v14, %v3104_v59  ;;  %v2701_v42 = vpop.f32.mrb[232].mxu0  ;;  %v2894_v63 = vpop.f32.mrb[232].mxu1 }
 0x338   : > { %v2702_v21 = vadd.f32 %v2701_v42, %v5402_v54  ;;  %v2895_v35 = vadd.f32 %v2894_v63, %v5402_v54  ;;  %v2703_v29 = vpop.f32.mrb[233].mxu0  ;;  %v2896_v39 = vpop.f32.mrb[233].mxu1 }
 0x339   : > { %v2704_v22 = vadd.f32 %v2703_v29, %v5402_v54  ;;  %v2897_v50 = vadd.f32 %v2896_v39, %v5402_v54  ;;  %v2705_v26 = vpop.f32.mrb[234].mxu0  ;;  %v2898_v27 = vpop.f32.mrb[234].mxu1  ;;  %3449 = vmatprep.subr.bf16.mxu0 %v3287_v18  ;;  %3490 = vmatprep.subr.bf16.mxu1 %v3289_v16 }
 0x33a   : > { %v2706_v60 = vadd.f32 %v2705_v26, %v5404_v15  ;;  %v2899_v19 = vadd.f32 %v2898_v27, %v5404_v15  ;;  %v2707_v0 = vpop.f32.mrb[235].mxu0  ;;  %v2900_v9 = vpop.f32.mrb[235].mxu1  ;;  %3450 = vmatpush1.bf16.msra.mxu0 %v3286_v10  ;;  %3491 = vmatpush1.bf16.msra.mxu1 %v3288_v48  ;;  %v3117_v23 = vmax.f32 %v2702_v21, 0.0  ;;  %v3119_v41 = vmax.f32 %v2895_v35, 0.0 }
 0x33b   : > { %v2708_v20 = vadd.f32 %v2707_v0, %v5404_v15  ;;  %v2901_v31 = vadd.f32 %v2900_v9, %v5404_v15  ;;  %v3118_v55 = vmax.f32 %v2704_v22, 0.0  ;;  %v3120_v61 = vmax.f32 %v2897_v50, 0.0 }
 0x33c   : > { %v3125_v30 = vmax.f32 %v2706_v60, 0.0  ;;  %v3127_v54 = vmax.f32 %v2899_v19, 0.0 }
 0x33d   : > { %v3126_v44 = vmax.f32 %v2708_v20, 0.0  ;;  %v3128_v1 = vmax.f32 %v2901_v31, 0.0 }
 0x33e   : > { %v3294_v53 = vpack.c.bf16 %v3125_v30, %v3117_v23  ;;  %v3296_v45 = vpack.c.bf16 %v3127_v54, %v3119_v41 }
 0x33f   : > { %v3295_v47 = vpack.c.bf16 %v3126_v44, %v3118_v55  ;;  %v3297_v52 = vpack.c.bf16 %v3128_v1, %v3120_v61  ;;  %v2711_v56 = vpop.f32.mrb[236].mxu0  ;;  %v2904_v51 = vpop.f32.mrb[236].mxu1 }
 0x340   : > { %v2712_v40 = vadd.f32 %v2711_v56, %v5414_v46  ;;  %v2905_v38 = vadd.f32 %v2904_v51, %v5414_v46  ;;  %v2713_v57 = vpop.f32.mrb[237].mxu0  ;;  %v2906_v15 = vpop.f32.mrb[237].mxu1 }
 0x341   : > { %v2714_v37 = vadd.f32 %v2713_v57, %v5414_v46  ;;  %v2907_v3 = vadd.f32 %v2906_v15, %v5414_v46  ;;  %v2715_v4 = vpop.f32.mrb[238].mxu0  ;;  %v2908_v13 = vpop.f32.mrb[238].mxu1  ;;  %3451 = vmatprep.subr.bf16.mxu0 %v3295_v47  ;;  %3492 = vmatprep.subr.bf16.mxu1 %v3297_v52 }
 0x342   : > { %v2716_v33 = vadd.f32 %v2715_v4, %v5416_v2  ;;  %v2909_v58 = vadd.f32 %v2908_v13, %v5416_v2  ;;  %v2717_v8 = vpop.f32.mrb[239].mxu0  ;;  %v2910_v5 = vpop.f32.mrb[239].mxu1  ;;  %3452 = vmatpush1.bf16.msra.mxu0 %v3294_v53  ;;  %3493 = vmatpush1.bf16.msra.mxu1 %v3296_v45  ;;  %v3133_v62 = vmax.f32 %v2712_v40, 0.0  ;;  %v3135_v6 = vmax.f32 %v2905_v38, 0.0 }
 0x343   : > { %v2718_v43 = vadd.f32 %v2717_v8, %v5416_v2  ;;  %v2911_v7 = vadd.f32 %v2910_v5, %v5416_v2  ;;  %v3134_v11 = vmax.f32 %v2714_v37, 0.0  ;;  %v3136_v14 = vmax.f32 %v2907_v3, 0.0 }
 0x344   : > { %v3141_v59 = vmax.f32 %v2716_v33, 0.0  ;;  %v3143_v46 = vmax.f32 %v2909_v58, 0.0 }
 0x345   : > { %v3142_v10 = vmax.f32 %v2718_v43, 0.0  ;;  %v3144_v48 = vmax.f32 %v2911_v7, 0.0 }
 0x346   : > { %v3302_v18 = vpack.c.bf16 %v3141_v59, %v3133_v62  ;;  %v3304_v16 = vpack.c.bf16 %v3143_v46, %v3135_v6 }
 0x347   : > { %v3303_v42 = vpack.c.bf16 %v3142_v10, %v3134_v11  ;;  %v3305_v63 = vpack.c.bf16 %v3144_v48, %v3136_v14  ;;  %v2721_v21 = vpop.f32.mrb[240].mxu0  ;;  %v2914_v35 = vpop.f32.mrb[240].mxu1 }
 0x348   : > { %v2722_v29 = vadd.f32 %v2721_v21, %v5426_v32  ;;  %v2915_v39 = vadd.f32 %v2914_v35, %v5426_v32  ;;  %v2723_v22 = vpop.f32.mrb[241].mxu0  ;;  %v2916_v2 = vpop.f32.mrb[241].mxu1 }
 0x349   : > { %v2724_v50 = vadd.f32 %v2723_v22, %v5426_v32  ;;  %v2917_v26 = vadd.f32 %v2916_v2, %v5426_v32  ;;  %v2725_v27 = vpop.f32.mrb[242].mxu0  ;;  %v2918_v60 = vpop.f32.mrb[242].mxu1  ;;  %3453 = vmatprep.subr.bf16.mxu0 %v3303_v42  ;;  %3494 = vmatprep.subr.bf16.mxu1 %v3305_v63 }
 0x34a   : > { %v2726_v19 = vadd.f32 %v2725_v27, %v5428_v24  ;;  %v2919_v0 = vadd.f32 %v2918_v60, %v5428_v24  ;;  %v2727_v9 = vpop.f32.mrb[243].mxu0  ;;  %v2920_v20 = vpop.f32.mrb[243].mxu1  ;;  %3454 = vmatpush1.bf16.msra.mxu0 %v3302_v18  ;;  %3495 = vmatpush1.bf16.msra.mxu1 %v3304_v16  ;;  %v3149_v41 = vmax.f32 %v2722_v29, 0.0  ;;  %v3151_v30 = vmax.f32 %v2915_v39, 0.0 }
 0x34b   : > { %v2728_v31 = vadd.f32 %v2727_v9, %v5428_v24  ;;  %v2921_v23 = vadd.f32 %v2920_v20, %v5428_v24  ;;  %v3150_v55 = vmax.f32 %v2724_v50, 0.0  ;;  %v3152_v61 = vmax.f32 %v2917_v26, 0.0 }
 0x34c   : > { %v3157_v54 = vmax.f32 %v2726_v19, 0.0  ;;  %v3159_v32 = vmax.f32 %v2919_v0, 0.0 }
 0x34d   : > { %v3158_v44 = vmax.f32 %v2728_v31, 0.0  ;;  %v3160_v1 = vmax.f32 %v2921_v23, 0.0 }
 0x34e   : > { %v3310_v53 = vpack.c.bf16 %v3157_v54, %v3149_v41  ;;  %v3312_v45 = vpack.c.bf16 %v3159_v32, %v3151_v30 }
 0x34f   : > { %v3311_v47 = vpack.c.bf16 %v3158_v44, %v3150_v55  ;;  %v3313_v52 = vpack.c.bf16 %v3160_v1, %v3152_v61  ;;  %v2731_v56 = vpop.f32.mrb[244].mxu0  ;;  %v2924_v51 = vpop.f32.mrb[244].mxu1 }
 0x350   : > { %v2732_v40 = vadd.f32 %v2731_v56, %v5438_v34  ;;  %v2925_v38 = vadd.f32 %v2924_v51, %v5438_v34  ;;  %v2733_v57 = vpop.f32.mrb[245].mxu0  ;;  %v2926_v24 = vpop.f32.mrb[245].mxu1 }
 0x351   : > { %v2734_v15 = vadd.f32 %v2733_v57, %v5438_v34  ;;  %v2927_v37 = vadd.f32 %v2926_v24, %v5438_v34  ;;  %v2735_v3 = vpop.f32.mrb[246].mxu0  ;;  %v2928_v4 = vpop.f32.mrb[246].mxu1  ;;  %3455 = vmatprep.subr.bf16.mxu0 %v3311_v47  ;;  %3496 = vmatprep.subr.bf16.mxu1 %v3313_v52 }
 0x352   : > { %v2736_v13 = vadd.f32 %v2735_v3, %v5440_v49  ;;  %v2929_v33 = vadd.f32 %v2928_v4, %v5440_v49  ;;  %v2737_v58 = vpop.f32.mrb[247].mxu0  ;;  %v2930_v8 = vpop.f32.mrb[247].mxu1  ;;  %3456 = vmatpush1.bf16.msra.mxu0 %v3310_v53  ;;  %3497 = vmatpush1.bf16.msra.mxu1 %v3312_v45  ;;  %v3165_v7 = vmax.f32 %v2732_v40, 0.0  ;;  %v3167_v62 = vmax.f32 %v2925_v38, 0.0 }
 0x353   : > { %v2738_v5 = vadd.f32 %v2737_v58, %v5440_v49  ;;  %v2931_v43 = vadd.f32 %v2930_v8, %v5440_v49  ;;  %v3166_v59 = vmax.f32 %v2734_v15, 0.0  ;;  %v3168_v46 = vmax.f32 %v2927_v37, 0.0 }
 0x354   : > { %v3173_v6 = vmax.f32 %v2736_v13, 0.0  ;;  %v3175_v34 = vmax.f32 %v2929_v33, 0.0 }
 0x355   : > { %v3174_v11 = vmax.f32 %v2738_v5, 0.0  ;;  %v3176_v14 = vmax.f32 %v2931_v43, 0.0 }
 0x356   : > { %v3318_v10 = vpack.c.bf16 %v3173_v6, %v3165_v7  ;;  %v3320_v48 = vpack.c.bf16 %v3175_v34, %v3167_v62 }
 0x357   : > { %v3319_v18 = vpack.c.bf16 %v3174_v11, %v3166_v59  ;;  %v3321_v16 = vpack.c.bf16 %v3176_v14, %v3168_v46  ;;  %v2741_v42 = vpop.f32.mrb[248].mxu0  ;;  %v2934_v63 = vpop.f32.mrb[248].mxu1  ;;  %v4087_v14 = vld [vmem:[%s4332_s14 + $0x10] sm:$0xff] }
 0x358   : > { %v2742_v21 = vadd.f32 %v2741_v42, %v5450_v17  ;;  %v2935_v35 = vadd.f32 %v2934_v63, %v5450_v17  ;;  %v2743_v29 = vpop.f32.mrb[249].mxu0  ;;  %v2936_v49 = vpop.f32.mrb[249].mxu1 }
 0x359   : > { %v2744_v39 = vadd.f32 %v2743_v29, %v5450_v17  ;;  %v2937_v22 = vadd.f32 %v2936_v49, %v5450_v17  ;;  %v2745_v2 = vpop.f32.mrb[250].mxu0  ;;  %v2938_v50 = vpop.f32.mrb[250].mxu1  ;;  %3457 = vmatprep.subr.bf16.mxu0 %v3319_v18  ;;  %3498 = vmatprep.subr.bf16.mxu1 %v3321_v16  ;;  %v4089_v16 = vld [vmem:[%s4332_s14 + $0x18] sm:$0xff] }
 0x35a   : > { %v2746_v26 = vadd.f32 %v2745_v2, %v5452_v28  ;;  %v2939_v27 = vadd.f32 %v2938_v50, %v5452_v28  ;;  %v2747_v60 = vpop.f32.mrb[251].mxu0  ;;  %v2940_v19 = vpop.f32.mrb[251].mxu1  ;;  %3458 = vmatpush1.bf16.msra.mxu0 %v3318_v10  ;;  %3499 = vmatpush1.bf16.msra.mxu1 %v3320_v48  ;;  %v3181_v20 = vmax.f32 %v2742_v21, 0.0  ;;  %v3183_v31 = vmax.f32 %v2935_v35, 0.0  ;;  %v4088_v48 = vld [vmem:[%s4332_s14 + $0x8] sm:$0xff] }
 0x35b   : > { %v2748_v0 = vadd.f32 %v2747_v60, %v5452_v28  ;;  %v2941_v9 = vadd.f32 %v2940_v19, %v5452_v28  ;;  %v3182_v41 = vmax.f32 %v2744_v39, 0.0  ;;  %v3184_v30 = vmax.f32 %v2937_v22, 0.0 }
 0x35c   : > { %v3189_v23 = vmax.f32 %v2746_v26, 0.0  ;;  %v3191_v17 = vmax.f32 %v2939_v27, 0.0  ;;  %v226_v10 = vadd.f32 1.0, %v4087_v14  ;;  %v225_v18 = vadd.f32 1.0, %v4088_v48 }
 0x35d   : > { %v3190_v54 = vmax.f32 %v2748_v0, 0.0  ;;  %v3192_v32 = vmax.f32 %v2941_v9, 0.0  ;;  %v227_v42 = vadd.f32 1.0, %v4089_v16 }
 0x35e   : > { %v3326_v55 = vpack.c.bf16 %v3189_v23, %v3181_v20  ;;  %v3328_v61 = vpack.c.bf16 %v3191_v17, %v3183_v31  ;;  %v234_v21 = vmul.f32 0.5, %v226_v10  ;;  %v233_v35 = vmul.f32 0.5, %v225_v18 }
 0x35f   : > { %v3327_v44 = vpack.c.bf16 %v3190_v54, %v3182_v41  ;;  %v3329_v1 = vpack.c.bf16 %v3192_v32, %v3184_v30  ;;  %v2751_v53 = vpop.f32.mrb[252].mxu0  ;;  %v2944_v45 = vpop.f32.mrb[252].mxu1  ;;  %v235_v29 = vmul.f32 0.5, %v227_v42 }
 0x360   : > { %v2752_v47 = vadd.f32 %v2751_v53, %v5462_v12  ;;  %v2945_v52 = vadd.f32 %v2944_v45, %v5462_v12  ;;  %v2753_v56 = vpop.f32.mrb[253].mxu0  ;;  %v2946_v28 = vpop.f32.mrb[253].mxu1  ;;  %v242_v39 = vmax.f32 %v234_v21, 0.0  ;;  %v241_v22 = vmax.f32 %v233_v35, 0.0 }
 0x361   : > { %v2754_v51 = vadd.f32 %v2753_v56, %v5462_v12  ;;  %v2947_v40 = vadd.f32 %v2946_v28, %v5462_v12  ;;  %v2755_v38 = vpop.f32.mrb[254].mxu0  ;;  %v2948_v57 = vpop.f32.mrb[254].mxu1  ;;  %3459 = vmatprep.subr.bf16.mxu0 %v3327_v44  ;;  %3500 = vmatprep.subr.bf16.mxu1 %v3329_v1  ;;  %v243_v2 = vmax.f32 %v235_v29, 0.0  ;;  %v3513_v53 = vlaneseq }
 0x362   : > { %v2756_v24 = vadd.f32 %v2755_v38, %v5464_v25  ;;  %v2949_v15 = vadd.f32 %v2948_v57, %v5464_v25  ;;  %v2757_v37 = vpop.f32.mrb[255].mxu0  ;;  %v2950_v3 = vpop.f32.mrb[255].mxu1  ;;  %3460 = vmatpush1.bf16.msra.mxu0 %v3326_v55  ;;  %3501 = vmatpush1.bf16.msra.mxu1 %v3328_v61  ;;  %v3197_v33 = vmax.f32 %v2752_v47, 0.0  ;;  %v3199_v58 = vmax.f32 %v2945_v52, 0.0 }
 0x363   : > { %v2758_v4 = vadd.f32 %v2757_v37, %v5464_v25  ;;  %v2951_v13 = vadd.f32 %v2950_v3, %v5464_v25  ;;  %v3198_v5 = vmax.f32 %v2754_v51, 0.0  ;;  %v3200_v43 = vmax.f32 %v2947_v40, 0.0  ;;  %v4086_v25 = vld [vmem:[%s4332_s14] sm:$0xff] }
 0x364   : > { %v3205_v8 = vmax.f32 %v2756_v24, 0.0  ;;  %v3207_v12 = vmax.f32 %v2949_v15, 0.0  ;;  %v224_v11 = vadd.f32 1.0, %v4086_v25  ;;  %v250_v26 = vmin.f32 %v242_v39, 0.99 }
 0x365   : > { %v3206_v7 = vmax.f32 %v2758_v4, 0.0  ;;  %v3208_v62 = vmax.f32 %v2951_v13, 0.0  ;;  %v249_v27 = vmin.f32 %v241_v22, 0.99  ;;  %v5619_v57 = vshrl.u32 %v3513_v53, 7 }
 0x366   : > { %v3334_v6 = vpack.c.bf16 %v3205_v8, %v3197_v33  ;;  %v3336_v34 = vpack.c.bf16 %v3207_v12, %v3199_v58  ;;  %v232_v63 = vmul.f32 0.5, %v224_v11  ;;  %v258_v19 = vmul.f32 2.0, %v250_v26 }
 0x367   : > { %v3335_v59 = vpack.c.bf16 %v3206_v7, %v3198_v5  ;;  %v3337_v46 = vpack.c.bf16 %v3208_v62, %v3200_v43  ;;  %v257_v0 = vmul.f32 2.0, %v249_v27  ;;  %v5622_v12 = vsub.s32 0, %v5619_v57 }
 0x368   : > { %v240_v49 = vmax.f32 %v232_v63, 0.0  ;;  %v3937_v31 = vtrunc.f32 %v258_v19 }
 0x369   : > { %3461 = vmatprep.subr.bf16.mxu0 %v3335_v59  ;;  %3502 = vmatprep.subr.bf16.mxu1 %v3337_v46  ;;  %v3935_v23 = vtrunc.f32 %v257_v0 }
 0x36a   : > { %3462 = vmatpush1.bf16.msra.mxu0 %v3334_v6  ;;  %3503 = vmatpush1.bf16.msra.mxu1 %v3336_v34  ;;  %v248_v50 = vmin.f32 %v240_v49, 0.99  ;;  %v3938_v30 = vcvt.f32.s32 %v3937_v31 }
 0x36b   : > { %v3936_v54 = vcvt.f32.s32 %v3935_v23  ;;  %v5628_v46 = vpop.permute.xlu0 %3339 }
 0x36c   : > { %v256_v60 = vmul.f32 2.0, %v248_v50  ;;  %v274_v61 = vmul.u32 2, %v3938_v30  ;;  %v298_v56 = vmul.u32 4, %v3938_v30 }
 0x36d   : > { %3464 = vmatmul.mubr.bf16.vlgmr.msra.gmra.mrb[4].mxu0 %v5480_v36  ;;  %3505 = vmatmul.mubr.bf16.vlgmr.msra.gmra.mrb[4].mxu1 %v5480_v36  ;;  %v251_v36 = vmin.f32 %v243_v2, 0.99  ;;  %v273_v44 = vmul.u32 2, %v3936_v54  ;;  %v297_v51 = vmul.u32 4, %v3936_v54 }
 0x36e   : > { %v3933_v20 = vtrunc.f32 %v256_v60  ;;  %v282_v52 = vrot.slane %v274_v61, 1  ;;  %v306_v3 = vrot.slane %v298_v56, 2 }
 0x36f   : > { %v259_v9 = vmul.f32 2.0, %v251_v36  ;;  %v281_v28 = vrot.slane %v273_v44, 1  ;;  %v305_v33 = vrot.slane %v297_v51, 2 }
 0x370   : > { %v3934_v41 = vcvt.f32.s32 %v3933_v20  ;;  %v290_v37 = vadd.s32 %v3938_v30, %v282_v52 }
 0x371   : > { %v3939_v17 = vtrunc.f32 %v259_v9  ;;  %v289_v4 = vadd.s32 %v3936_v54, %v281_v28  ;;  %v4196_v9 = vmov 1966171168  }
 0x372   : > { %v272_v55 = vmul.u32 2, %v3934_v41  ;;  %v296_v47 = vmul.u32 4, %v3934_v41  ;;  %v314_v5 = vadd.s32 %v306_v3, %v290_v37  ;;  %v3624_v20 = vunpack.c.l.s4 %v4196_v9 }
 0x373   : > { %v3940_v32 = vcvt.f32.s32 %v3939_v17  ;;  %v313_v43 = vadd.s32 %v305_v33, %v289_v4  ;;  %v4090_v4 = vld [vmem:[%s4332_s14 + $0x20] sm:$0xff]  ;;  %v4091_v33 = vld [vmem:[%s4332_s14 + $0x30] sm:$0xff] }
 0x374   : > { %v280_v45 = vrot.slane %v272_v55, 1  ;;  %v304_v15 = vrot.slane %v296_v47, 2  ;;  %v3526_v6 = vrot.slane %v314_v5, %v5622_v12  ;;  %v3625_v61 = vunpack.c.0.s8 %v3624_v20 }
 0x375   : > { %v275_v1 = vmul.u32 2, %v3940_v32  ;;  %v299_v38 = vmul.u32 4, %v3940_v32  ;;  %v3522_v34 = vrot.slane %v313_v43, %v5622_v12  ;;  %v4093_v43 = vld [vmem:[%s4332_s14 + $0x38] sm:$0xff] }
 0x376   : > { %v288_v24 = vadd.s32 %v3934_v41, %v280_v45  ;;  %vm3549_vm2 = vcmp.eq.s32.totalorder %v5619_v57, %v3526_v6  ;;  %v5639_v51 = vsub.s32 %v3625_v61, %v5619_v57 }
 0x377   : > { %v283_v40 = vrot.slane %v275_v1, 1  ;;  %v307_v58 = vrot.slane %v299_v38, 2  ;;  %vm3548_vm3 = vcmp.eq.s32.totalorder %v5619_v57, %v3522_v34 }
 0x378   : > { %v312_v8 = vadd.s32 %v304_v15, %v288_v24 }
 0x379   : > { %v291_v13 = vadd.s32 %v3940_v32, %v283_v40 }
 0x37a   : > { %v3518_v62 = vrot.slane %v312_v8, %v5622_v12  ;;  %v4092_v8 = vld [vmem:[%s4332_s14 + $0x28] sm:$0xff]  ;;  %s3763_s14 = sshll.u32 %s4328_s7, 3 }
 0x37b   : > { %v315_v7 = vadd.s32 %v307_v58, %v291_v13  ;;  %v228_v13 = vadd.f32 1.0, %v4090_v4  ;;  %v230_v58 = vadd.f32 1.0, %v4091_v33  ;;  %v229_v5 = vadd.f32 1.0, %v4092_v8  ;;  %s213_s12 = scalar_lea.vmem [#allocation5], %s3763_s14 }
 0x37c   : > { %vm3547_vm1 = vcmp.eq.s32.totalorder %v5619_v57, %v3518_v62  ;;  %s3685_s20 = sshll.u32 %s213_s12, 4  ;;  %s5679_s20 = int_to_ptr.vmem [resolvable:$true] %s3685_s20 }
 0x37d   : > { %v3530_v59 = vrot.slane %v315_v7, %v5622_v12  ;;  %v231_v7 = vadd.f32 1.0, %v4093_v43  ;;  %v236_v62 = vmul.f32 0.5, %v228_v13  ;;  %v238_v6 = vmul.f32 0.5, %v230_v58  ;;  %s4124_s29 = scalar_lea.vmem %s5679_s20, 128  ;;  %p4131_p7 = scmp.lt.s32.totalorder %s5679_s20, %s4129_s5 }
 0x37e   : > { %v237_v34 = vmul.f32 0.5, %v229_v5  ;;  %p4125_p6 = scmp.ne.s32.totalorder %s5679_s20, %s4124_s29  ;;  %p4132_p10 = scmp.lt.s32.totalorder %s4130_s6, %s4124_s29 }
 0x37f   : > { %vm3550_vm4 = vcmp.eq.s32.totalorder %v5619_v57, %v3530_v59  ;;  %v239_v59 = vmul.f32 0.5, %v231_v7 }
 0x380   : > { %p4126_p12 = pnand %p4125_p6, %p5734_p11  ;;  %p4133_p2 = por %p4132_p10, %p4131_p7 }
 0x382   : > { %p4127_p13 = pneg %p4126_p12 }
 0x384   : > { %p4134_p4 = pnand %p4133_p2, %p4127_p13 }
 0x3c0   : > { %v3383_v25 = vpop.f32.mrb[0].mxu0  ;;  %v3424_v11 = vpop.f32.mrb[0].mxu1 }
 0x3c1   : > { %v3384_v14 = vadd.f32 %v3383_v25, %v5628_v46  ;;  %v3425_v10 = vadd.f32 %v3424_v11, %v5628_v46  ;;  %v3385_v48 = vpop.f32.mrb[1].mxu0  ;;  %v3426_v18 = vpop.f32.mrb[1].mxu1  ;;  %v244_v25 = vmax.f32 %v236_v62, 0.0  ;;  %v246_v11 = vmax.f32 %v238_v6, 0.0 }
 0x3c2   : > { %v3386_v16 = vadd.f32 %v3385_v48, %v5628_v46  ;;  %v3427_v42 = vadd.f32 %v3426_v18, %v5628_v46  ;;  %v3387_v63 = vpop.f32.mrb[2].mxu0  ;;  %v3428_v21 = vpop.f32.mrb[2].mxu1 }
 0x3c3   : > { %v3555_v35 = vsel %vm3547_vm1, %v3384_v14, 0.0  ;;  %v3557_v29 = vsel %vm3549_vm2, %v3425_v10, 0.0  ;;  %v3388_v49 = vpop.f32.mrb[3].mxu0  ;;  %v3429_v39 = vpop.f32.mrb[3].mxu1  ;;  %v245_v14 = vmax.f32 %v237_v34, 0.0  ;;  %v247_v10 = vmax.f32 %v239_v59, 0.0 }
 0x3c4   : > { %v3556_v22 = vsel %vm3548_vm3, %v3386_v16, 0.0  ;;  %v3563_v2 = vrot.slane %v3555_v35, 4  ;;  %v3558_v50 = vsel %vm3550_vm4, %v3427_v42, 0.0  ;;  %v3575_v26 = vrot.slane %v3557_v29, 4 }
 0x3c5   : > { %v3569_v27 = vrot.slane %v3556_v22, 4  ;;  %v3581_v36 = vrot.slane %v3558_v50, 4  ;;  %v252_v48 = vmin.f32 %v244_v25, 0.99  ;;  %v254_v18 = vmin.f32 %v246_v11, 0.99 }
 0x3c6   : > { %v3564_v60 = vadd.f32 %v3563_v2, %v3555_v35  ;;  %v3576_v19 = vadd.f32 %v3575_v26, %v3557_v29  ;;  %v253_v16 = vmin.f32 %v245_v14, 0.99  ;;  %v255_v42 = vmin.f32 %v247_v10, 0.99 }
 0x3c7   : > { %v3570_v0 = vadd.f32 %v3569_v27, %v3556_v22  ;;  %v3582_v31 = vadd.f32 %v3581_v36, %v3558_v50  ;;  %v260_v63 = vmul.f32 2.0, %v252_v48  ;;  %v262_v21 = vmul.f32 2.0, %v254_v18 }
 0x3c8   : > { %v3565_v23 = vrot.slane %v3564_v60, 2  ;;  %v3577_v17 = vrot.slane %v3576_v19, 2  ;;  %v261_v35 = vmul.f32 2.0, %v253_v16  ;;  %v263_v29 = vmul.f32 2.0, %v255_v42 }
 0x3c9   : > { %v3571_v41 = vrot.slane %v3570_v0, 2  ;;  %v3583_v30 = vrot.slane %v3582_v31, 2  ;;  %v3941_v49 = vtrunc.f32 %v260_v63  ;;  %v3945_v39 = vtrunc.f32 %v262_v21 }
 0x3ca   : > { %v3566_v54 = vadd.f32 %v3565_v23, %v3564_v60  ;;  %v3578_v32 = vadd.f32 %v3577_v17, %v3576_v19  ;;  %v3943_v22 = vtrunc.f32 %v261_v35  ;;  %v3947_v2 = vtrunc.f32 %v263_v29 }
 0x3cb   : > { %v3572_v55 = vadd.f32 %v3571_v41, %v3570_v0  ;;  %v3584_v44 = vadd.f32 %v3583_v30, %v3582_v31  ;;  %v3942_v50 = vcvt.f32.s32 %v3941_v49  ;;  %v3946_v26 = vcvt.f32.s32 %v3945_v39 }
 0x3cc   : > { %v3567_v1 = vrot.slane %v3566_v54, 1  ;;  %v3579_v53 = vrot.slane %v3578_v32, 1  ;;  %v3944_v27 = vcvt.f32.s32 %v3943_v22  ;;  %v3948_v36 = vcvt.f32.s32 %v3947_v2 }
 0x3cd   : > { %v3573_v45 = vrot.slane %v3572_v55, 1  ;;  %v3585_v47 = vrot.slane %v3584_v44, 1  ;;  %v276_v60 = vmul.u32 2, %v3942_v50  ;;  %v278_v19 = vmul.u32 2, %v3946_v26 }
 0x3ce   : > { %v3568_v52 = vadd.f32 %v3567_v1, %v3566_v54  ;;  %v3580_v56 = vadd.f32 %v3579_v53, %v3578_v32  ;;  %v277_v0 = vmul.u32 2, %v3944_v27  ;;  %v279_v9 = vmul.u32 2, %v3948_v36 }
 0x3cf   : > { %v3574_v28 = vadd.f32 %v3573_v45, %v3572_v55  ;;  %v3586_v40 = vadd.f32 %v3585_v47, %v3584_v44  ;;  %v284_v20 = vrot.slane %v276_v60, 1  ;;  %v300_v31 = vmul.u32 4, %v3942_v50 }
 0x3d0   : > { %v286_v23 = vrot.slane %v278_v19, 1  ;;  %v302_v17 = vmul.u32 4, %v3946_v26  ;;  %v285_v41 = vrot.slane %v277_v0, 1  ;;  %v287_v30 = vrot.slane %v279_v9, 1 }
 0x3d1   : > { %v3619_v38 = vcombine.low %v3568_v52, %v3574_v28  ;;  %v3620_v24 = vcombine.low %v3580_v56, %v3586_v40  ;;  %v301_v54 = vmul.u32 4, %v3944_v27  ;;  %v303_v32 = vmul.u32 4, %v3948_v36 }
 0x3d2   : > { %v292_v55 = vadd.s32 %v3942_v50, %v284_v20  ;;  %v308_v61 = vrot.slane %v300_v31, 2  ;;  %v294_v44 = vadd.s32 %v3946_v26, %v286_v23  ;;  %v310_v1 = vrot.slane %v302_v17, 2 }
 0x3d3   : > { %v5642_v15 = vrot.slane %v3619_v38, %v5639_v51  ;;  %v5645_v37 = vrot.slane %v3620_v24, %v5639_v51  ;;  %v293_v53 = vadd.s32 %v3944_v27, %v285_v41  ;;  %v309_v45 = vrot.slane %v301_v54, 2 }
 0x3d4   : > { %v295_v47 = vadd.s32 %v3948_v36, %v287_v30  ;;  %v311_v52 = vrot.slane %v303_v32, 2  ;;  %v316_v56 = vadd.s32 %v308_v61, %v292_v55  ;;  %v318_v28 = vadd.s32 %v310_v1, %v294_v44 }
 0x3d5   : > { %v3651_v3 = vcombine.low %v5642_v15, %v5645_v37  ;;  %v317_v40 = vadd.s32 %v309_v45, %v293_v53 }
 0x3d6   : > { %v319_v38 = vadd.s32 %v311_v52, %v295_v47  ;;  %v3534_v24 = vrot.slane %v316_v56, %v5622_v12  ;;  %v3542_v4 = vrot.slane %v318_v28, %v5622_v12 }
 0x3d7   : > { %v3538_v13 = vrot.slane %v317_v40, %v5622_v12  ;;  %v3659_v61 = vrot.slane %v3651_v3, %v5639_v51 }
 0x3d8   : > { %v3546_v33 = vrot.slane %v319_v38, %v5622_v12  ;;  %vm3551_vm5 = vcmp.eq.s32.totalorder %v5619_v57, %v3534_v24  ;;  %vm3553_vm6 = vcmp.eq.s32.totalorder %v5619_v57, %v3542_v4 }
 0x3d9   : > { %vm3552_vm7 = vcmp.eq.s32.totalorder %v5619_v57, %v3538_v13 }
 0x3da   : > { %vm3554_vm8 = vcmp.eq.s32.totalorder %v5619_v57, %v3546_v33 }
 0x440   : > { %v3465_v58 = vpop.f32.mrb[4].mxu0  ;;  %v3506_v8 = vpop.f32.mrb[4].mxu1 }
 0x441   : > { %v3466_v5 = vadd.f32 %v3465_v58, %v5628_v46  ;;  %v3507_v43 = vadd.f32 %v3506_v8, %v5628_v46  ;;  %v3467_v7 = vpop.f32.mrb[5].mxu0  ;;  %v3508_v62 = vpop.f32.mrb[5].mxu1 }
 0x442   : > { %v3468_v6 = vadd.f32 %v3467_v7, %v5628_v46  ;;  %v3509_v12 = vadd.f32 %v3508_v62, %v5628_v46  ;;  %v3469_v34 = vpop.f32.mrb[6].mxu0  ;;  %v3510_v59 = vpop.f32.mrb[6].mxu1 }
 0x443   : > { %v3559_v25 = vsel %vm3551_vm5, %v3466_v5, 0.0  ;;  %v3561_v11 = vsel %vm3553_vm6, %v3507_v43, 0.0  ;;  %v3470_v14 = vpop.f32.mrb[7].mxu0  ;;  %v3511_v10 = vpop.f32.mrb[7].mxu1 }
 0x444   : > { %v3587_v48 = vrot.slane %v3559_v25, 4  ;;  %v3599_v18 = vrot.slane %v3561_v11, 4  ;;  %v3560_v16 = vsel %vm3552_vm7, %v3468_v6, 0.0  ;;  %v3562_v42 = vsel %vm3554_vm8, %v3509_v12, 0.0 }
 0x445   : > { %v3593_v63 = vrot.slane %v3560_v16, 4  ;;  %v3605_v21 = vrot.slane %v3562_v42, 4 }
 0x446   : > { %v3588_v35 = vadd.f32 %v3587_v48, %v3559_v25  ;;  %v3600_v29 = vadd.f32 %v3599_v18, %v3561_v11 }
 0x447   : > { %v3594_v49 = vadd.f32 %v3593_v63, %v3560_v16  ;;  %v3606_v57 = vadd.f32 %v3605_v21, %v3562_v42 }
 0x448   : > { %v3589_v39 = vrot.slane %v3588_v35, 2  ;;  %v3601_v22 = vrot.slane %v3600_v29, 2 }
 0x449   : > { %v3595_v46 = vrot.slane %v3594_v49, 2  ;;  %v3607_v2 = vrot.slane %v3606_v57, 2 }
 0x44a   : > { %v3590_v50 = vadd.f32 %v3589_v39, %v3588_v35  ;;  %v3602_v26 = vadd.f32 %v3601_v22, %v3600_v29 }
 0x44b   : > { %v3596_v27 = vadd.f32 %v3595_v46, %v3594_v49  ;;  %v3608_v36 = vadd.f32 %v3607_v2, %v3606_v57 }
 0x44c   : > { %v3591_v60 = vrot.slane %v3590_v50, 1  ;;  %v3603_v19 = vrot.slane %v3602_v26, 1 }
 0x44d   : > { %v3597_v0 = vrot.slane %v3596_v27, 1  ;;  %v3609_v9 = vrot.slane %v3608_v36, 1 }
 0x44e   : > { %v3592_v20 = vadd.f32 %v3591_v60, %v3590_v50  ;;  %v3604_v31 = vadd.f32 %v3603_v19, %v3602_v26 }
 0x44f   : > { %v3598_v23 = vadd.f32 %v3597_v0, %v3596_v27  ;;  %v3610_v17 = vadd.f32 %v3609_v9, %v3608_v36 }
 0x451   : > { %v3621_v41 = vcombine.low %v3592_v20, %v3598_v23  ;;  %v3622_v30 = vcombine.low %v3604_v31, %v3610_v17 }
 0x453   : > { %v3643_v54 = vrot.slane %v3621_v41, %v5639_v51  ;;  %v3650_v32 = vrot.slane %v3622_v30, %v5639_v51 }
 0x455   : > { %v3652_v55 = vcombine.low %v3643_v54, %v3650_v32 }
 0x457   : > { %v3666_v44 = vrot.slane %v3652_v55, %v5639_v51 }
 0x459   : > { %v3667_v1 = vcombine.low %v3659_v61, %v3666_v44 }
 0x45b   : > { %3669 = vst [vmem:[%s213_s12] sm:$0xff] %v3667_v1 }
 0x45c   : > { %4137 = shalt.err (!%p4134_p4)
}
 0x45d   : > { %s4138_s7 = scalar_lea.hbm %s5677_s25, 128  ;;  %s4142_s26 = scalar_lea.hbm %s5725_s4, 256 }
 0x45e   : > { %p4139_p5 = scmp.ne.s32.totalorder %s5677_s25, %s4138_s7  ;;  %p4143_p0 = scmp.lt.u32.totalorder %s5677_s25, %s5725_s4 }
 0x45f   : > { %p4144_p1 = scmp.lt.u32.totalorder %s4142_s26, %s4138_s7  ;;  %p4146_p6 = scmp.lt.u32.totalorder %s4138_s7, %s5677_s25 }
 0x460   : > { %p4140_p8 = pnand %p4139_p5, %p5734_p11 }
 0x461   : > { %p4145_p3 = por %p4144_p1, %p4143_p0 }
 0x462   : > { %p4141_p9 = pneg %p4140_p8 }
 0x463   : > { %p4147_p12 = por %p4146_p6, %p4145_p3 }
 0x465   : > { %p4148_p13 = pnand %p4147_p12, %p4141_p9 }
 0x467   : > { %4151 = shalt.err (!%p4148_p13)
}
 0x468   : > { %3951 = dma.vmem_to_hbm [thread:$0]  (%p5734_p11), %s5679_s20, 128, %s5677_s25, %s3671_s19  }
 0x469 PF: > { %s3697_s14 = sand.u32 1, %s4178_s15   ;;  %p5735_p7 = scmp.ne.s32.totalorder %s5730_s28, 0 }
 0x46a   : > { %p5736_p10 = scmp.ge.s32.totalorder %s4190_s18, 2  ;;  %s3698_s11 = scalar_lea.sflag [#allocation4], %s3697_s14 }
 0x46c   : > { %p3958_p2 = pnand %p5736_p10, %p5735_p7 }
 0x46e   : > { %4173 = dma.done.wait (!%p3958_p2), %s3698_s11, 128  }
 0x46f   : > { %4175 = vsyncadd (!%p3958_p2), %s3698_s11, 4294967168  ;;  %p17_p4 = scmp.ge.s32.totalorder %s4248_s21, 4   ;;  %s5737_s15 = smov %s4182_s16 }
 0x470   : > { %s5738_s16 = smov %s4186_s17  ;;  %s5739_s17 = smov %s4260_s24 }
 0x471   : > { %s5740_s18 = smov %s4248_s21  ;;  %19 = sbr.rel (!%p17_p4) target bundleno = 5 (0x5), region = 81 }
 0x478   :  { %3703 = vsyncpa [#allocation3], 1 }
 0x479   :  { %3705 = vsyncpa [#allocation3 + $0x1], 1 }
 0x47a   :  { %3706 = vsyncpa [#allocation4], 1 }
 0x47b   :  { %3708 = vsyncpa [#allocation4 + $0x1], 1 }

</bundles_post_ra>
